<compile_context>
chip_gen: v6e
topology: v6e:2x2x1
jax: 0.10.0
libtpu: 0.0.40
codegen_flags: <defaults>
</compile_context>

<pallas_src>
import functools

import jax
import jax.numpy as jnp
from jax.experimental import pallas as pl
from jax.experimental.pallas import tpu as pltpu


# -----------------------------------------------------------------------------
# Fused Pallas kernel: all LSTM layers + final Linear
# -----------------------------------------------------------------------------
def make_fused_lstm_fc_kernel(num_layers, seq_len, batch):
    """Kernel for a static number of layers / timesteps / batch.

    Ref order: x_ref, (w_ih_t, w_hh_t, bias) * num_layers, w_fc_t, b_fc, out_ref
      x_ref : (T*B, I)   time-major input rows (rows t*B .. t*B+B-1 = step t)
      w_ih_t: (in_dim, 4H) transposed input-to-hidden weights (gate order i,f,g,o)
      w_hh_t: (H, 4H)      transposed hidden-to-hidden weights
      bias  : (1, 4H)      combined bias (b_ih + b_hh)
      w_fc_t: (H, O)       transposed FC weight
      b_fc  : (1, O)       FC bias
      out   : (B, O)       FC applied to last-layer, last-step hidden state
    """
    T, B = seq_len, batch

    def kernel(*refs):
        x_ref = refs[0]
        layer_refs = refs[1:1 + 3 * num_layers]
        w_fc_ref = refs[1 + 3 * num_layers]
        b_fc_ref = refs[2 + 3 * num_layers]
        out_ref = refs[3 + 3 * num_layers]

        H = layer_refs[1].shape[0]  # w_hh of layer 0 is (H, 4H)

        def run_layer(xw_steps, w_hh):
            """Serial recurrence given per-step pre-projected gate inputs."""
            h = jnp.zeros((B, H), jnp.float32)
            c = jnp.zeros((B, H), jnp.float32)
            hs = []
            for t in range(T):  # fully unrolled (static trip count)
                gates = xw_steps[t] + jnp.dot(
                    h, w_hh, preferred_element_type=jnp.float32
                )  # (B, 4H)
                sig = jax.nn.sigmoid(gates)  # one full-width EUP pass
                tnh = jnp.tanh(gates)        # one full-width EUP pass
                i_g = sig[:, 0 * H:1 * H]
                f_g = sig[:, 1 * H:2 * H]
                g_g = tnh[:, 2 * H:3 * H]
                o_g = sig[:, 3 * H:4 * H]
                c = f_g * c + i_g * g_g
                h = o_g * jnp.tanh(c)
                hs.append(h)
            return hs

        # ---- Layer 0: single merged projection over all timesteps ----------
        w_ih0 = layer_refs[0][...]   # (I, 4H)
        w_hh0 = layer_refs[1][...]   # (H, 4H)
        b0 = layer_refs[2][...]      # (1, 4H)
        xw_all = jnp.dot(x_ref[...], w_ih0,
                         preferred_element_type=jnp.float32) + b0  # (T*B, 4H)
        xw0 = [xw_all[t * B:(t + 1) * B, :] for t in range(T)]
        hs = run_layer(xw0, w_hh0)

        # ---- Layers >= 1: per-step hoisted projection (wavefront-friendly) --
        for l in range(1, num_layers):
            w_ih = layer_refs[3 * l][...]      # (H, 4H)
            w_hh = layer_refs[3 * l + 1][...]  # (H, 4H)
            b = layer_refs[3 * l + 2][...]     # (1, 4H)
            xw_l = [
                jnp.dot(hs[t], w_ih, preferred_element_type=jnp.float32) + b
                for t in range(T)
            ]
            hs = run_layer(xw_l, w_hh)

        # ---- Final Linear on the last timestep of the last layer ------------
        out_ref[...] = (
            jnp.dot(hs[-1], w_fc_ref[...], preferred_element_type=jnp.float32)
            + b_fc_ref[...]
        ).astype(out_ref.dtype)

    return kernel


# -----------------------------------------------------------------------------
# Wrapper around pallas_call
# -----------------------------------------------------------------------------
def run_lstm_fc_fused(x_seq2d, lstm_params, w_fc_t, b_fc, *, seq_len, batch):
    """x_seq2d: (T*B, I) time-major rows -> (B, O)."""
    TB, I = x_seq2d.shape
    H = lstm_params[0]["w_hh_t"].shape[0]
    O = w_fc_t.shape[1]
    num_layers = len(lstm_params)

    args = [x_seq2d]
    in_specs = [pl.BlockSpec((TB, I), lambda i: (0, 0))]
    for lp in lstm_params:
        in_dim = lp["w_ih_t"].shape[0]
        args += [lp["w_ih_t"], lp["w_hh_t"], lp["bias"].reshape(1, 4 * H)]
        in_specs += [
            pl.BlockSpec((in_dim, 4 * H), lambda i: (0, 0)),
            pl.BlockSpec((H, 4 * H), lambda i: (0, 0)),
            pl.BlockSpec((1, 4 * H), lambda i: (0, 0)),
        ]
    args += [w_fc_t, b_fc.reshape(1, O)]
    in_specs += [
        pl.BlockSpec((H, O), lambda i: (0, 0)),
        pl.BlockSpec((1, O), lambda i: (0, 0)),
    ]

    kernel = make_fused_lstm_fc_kernel(num_layers, seq_len, batch)

    return pl.pallas_call(
        kernel,
        out_shape=jax.ShapeDtypeStruct((batch, O), jnp.float32),
        grid=(1,),
        in_specs=in_specs,
        out_specs=pl.BlockSpec((batch, O), lambda i: (0, 0)),
        compiler_params=pltpu.CompilerParams(
            dimension_semantics=("arbitrary",),
        ),
    )(*args)


# -----------------------------------------------------------------------------
# Model: parameter init + forward
# -----------------------------------------------------------------------------
def init_params(key, input_size, hidden_size, num_layers, output_size):
    """Deterministic init mirroring torch's U(-1/sqrt(H), 1/sqrt(H))."""
    bound = 1.0 / jnp.sqrt(jnp.float32(hidden_size))
    params = {"lstm": []}
    for layer in range(num_layers):
        in_dim = input_size if layer == 0 else hidden_size
        key, k1, k2, k3, k4 = jax.random.split(key, 5)
        w_ih = jax.random.uniform(k1, (4 * hidden_size, in_dim), jnp.float32, -bound, bound)
        w_hh = jax.random.uniform(k2, (4 * hidden_size, hidden_size), jnp.float32, -bound, bound)
        b_ih = jax.random.uniform(k3, (4 * hidden_size,), jnp.float32, -bound, bound)
        b_hh = jax.random.uniform(k4, (4 * hidden_size,), jnp.float32, -bound, bound)
        params["lstm"].append(
            {
                "w_ih_t": w_ih.T,       # (in_dim, 4H)
                "w_hh_t": w_hh.T,       # (H, 4H)
                "bias": b_ih + b_hh,    # (4H,)
            }
        )
    key, k5, k6 = jax.random.split(key, 3)
    w_fc = jax.random.uniform(k5, (output_size, hidden_size), jnp.float32, -bound, bound)
    b_fc = jax.random.uniform(k6, (output_size,), jnp.float32, -bound, bound)
    params["w_fc_t"] = w_fc.T           # (H, O)
    params["b_fc"] = b_fc               # (O,)
    return params


@functools.partial(jax.jit, static_argnames=("input_size",))
def lstm_model_forward(x, params, *, input_size):
    B = x.shape[0]
    # torch: x.reshape(len(x), input_size, -1).permute(0, 2, 1) -> (B, T, I)
    xr = x.reshape(B, input_size, -1)                        # (B, I, T)
    xr = jnp.transpose(xr, (0, 2, 1))                        # (B, T, I) batch_first
    seq = jnp.transpose(xr, (1, 0, 2)).astype(jnp.float32)   # (T, B, I) time-major
    T = seq.shape[0]
    x2d = seq.reshape(T * B, input_size)                     # rows t*B+b

    out = run_lstm_fc_fused(
        x2d, params["lstm"], params["w_fc_t"], params["b_fc"],
        seq_len=T, batch=B,
    )                                                        # (B, O)
    return jnp.squeeze(out)                                  # matches torch .squeeze()


# Pure-JAX reference (no Pallas) for correctness checking.
def lstm_model_forward_ref(x, params, *, input_size):
    B = x.shape[0]
    xr = x.reshape(B, input_size, -1)
    xr = jnp.transpose(xr, (0, 2, 1))        # (B, T, I)
    seq = jnp.transpose(xr, (1, 0, 2))       # (T, B, I)
    T = seq.shape[0]
    for lp in params["lstm"]:
        H = lp["w_hh_t"].shape[0]
        h = jnp.zeros((B, H), jnp.float32)
        c = jnp.zeros((B, H), jnp.float32)
        outs = []
        for t in range(T):
            gates = seq[t] @ lp["w_ih_t"] + h @ lp["w_hh_t"] + lp["bias"]
            i_g = jax.nn.sigmoid(gates[:, 0 * H:1 * H])
            f_g = jax.nn.sigmoid(gates[:, 1 * H:2 * H])
            g_g = jnp.tanh(gates[:, 2 * H:3 * H])
            o_g = jax.nn.sigmoid(gates[:, 3 * H:4 * H])
            c = f_g * c + i_g * g_g
            h = o_g * jnp.tanh(c)
            outs.append(h)
        seq = jnp.stack(outs, axis=0)
    out = seq[-1] @ params["w_fc_t"] + params["b_fc"]
    return jnp.squeeze(out)


# -----------------------------------------------------------------------------
if __name__ == "__main__":
    input_size = 4
    hidden_size = 32
    num_layers = 2
    output_size = 1

    B, T = 2, 16
    key = jax.random.PRNGKey(0)
    key, xkey = jax.random.split(key)
    # x: (B, input_size, T); forward reshapes via (B, input_size, -1) identically.
    x = jax.random.normal(xkey, (B, input_size, T), dtype=jnp.float32)

    params = init_params(key, input_size, hidden_size, num_layers, output_size)

    out = lstm_model_forward(x, params, input_size=input_size)
    out = jax.block_until_ready(out)

    ref = lstm_model_forward_ref(x, params, input_size=input_size)
    ref = jax.block_until_ready(ref)

    assert out.shape == (B,), f"unexpected output shape {out.shape}"
    assert jnp.allclose(out, ref, atol=1e-4, rtol=1e-4), (out, ref)
    print("KERNEL_OK")
</pallas_src>

<mosaic_0001>
module attributes {stable_mosaic.version = 11 : i64} {
  func.func @kernel(%arg0: i32, %arg1: memref<32x4xf32, #tpu.memory_space<vmem>>, %arg2: memref<4x128xf32, #tpu.memory_space<vmem>>, %arg3: memref<32x128xf32, #tpu.memory_space<vmem>>, %arg4: memref<1x128xf32, #tpu.memory_space<vmem>>, %arg5: memref<32x128xf32, #tpu.memory_space<vmem>>, %arg6: memref<32x128xf32, #tpu.memory_space<vmem>>, %arg7: memref<1x128xf32, #tpu.memory_space<vmem>>, %arg8: memref<32x1xf32, #tpu.memory_space<vmem>>, %arg9: memref<1x1xf32, #tpu.memory_space<vmem>>, %arg10: memref<2x1xf32, #tpu.memory_space<vmem>>) attributes {dimension_semantics = [#tpu.dimension_semantics<arbitrary>], iteration_bounds = array<i64: 1>, scalar_prefetch = 0 : i64, scratch_operands = 0 : i64, tpu.core_type = #tpu.core_type<tc>, window_params = [{pipeline_mode = #tpu.pipeline_mode<synchronous>, transform_indices = @transform_0, window_bounds = array<i64: 32, 4>}, {pipeline_mode = #tpu.pipeline_mode<synchronous>, transform_indices = @transform_1, window_bounds = array<i64: 4, 128>}, {pipeline_mode = #tpu.pipeline_mode<synchronous>, transform_indices = @transform_2, window_bounds = array<i64: 32, 128>}, {pipeline_mode = #tpu.pipeline_mode<synchronous>, transform_indices = @transform_3, window_bounds = array<i64: 1, 128>}, {pipeline_mode = #tpu.pipeline_mode<synchronous>, transform_indices = @transform_4, window_bounds = array<i64: 32, 128>}, {pipeline_mode = #tpu.pipeline_mode<synchronous>, transform_indices = @transform_5, window_bounds = array<i64: 32, 128>}, {pipeline_mode = #tpu.pipeline_mode<synchronous>, transform_indices = @transform_6, window_bounds = array<i64: 1, 128>}, {pipeline_mode = #tpu.pipeline_mode<synchronous>, transform_indices = @transform_7, window_bounds = array<i64: 32, 1>}, {pipeline_mode = #tpu.pipeline_mode<synchronous>, transform_indices = @transform_8, window_bounds = array<i64: 1, 1>}, {pipeline_mode = #tpu.pipeline_mode<synchronous>, transform_indices = @transform_9, window_bounds = array<i64: 2, 1>}]} {
    %c0 = arith.constant 0 : index
    %c0_0 = arith.constant 0 : index
    %0 = vector.load %arg2[%c0, %c0_0] : memref<4x128xf32, #tpu.memory_space<vmem>>, vector<4x128xf32>
    %c0_1 = arith.constant 0 : index
    %c0_2 = arith.constant 0 : index
    %1 = vector.load %arg3[%c0_1, %c0_2] : memref<32x128xf32, #tpu.memory_space<vmem>>, vector<32x128xf32>
    %c0_3 = arith.constant 0 : index
    %c0_4 = arith.constant 0 : index
    %2 = vector.load %arg4[%c0_3, %c0_4] : memref<1x128xf32, #tpu.memory_space<vmem>>, vector<1x128xf32>
    %c0_5 = arith.constant 0 : index
    %c0_6 = arith.constant 0 : index
    %3 = vector.load %arg1[%c0_5, %c0_6] : memref<32x4xf32, #tpu.memory_space<vmem>>, vector<32x4xf32>
    %cst = arith.constant dense<0.000000e+00> : vector<32x128xf32>
    %4 = tpu.matmul %3, %0, %cst {dimension_numbers = #tpu.dot_dimension_numbers<[1], [0], [0], [1], [0, 0, 1, 1], [], []>} : vector<32x4xf32>, vector<4x128xf32>, vector<32x128xf32> -> vector<32x128xf32>
    %5 = vector.broadcast %2 : vector<1x128xf32> to vector<32x128xf32>
    %6 = arith.addf %4, %5 : vector<32x128xf32>
    %7 = vector.extract_strided_slice %6 {offsets = [0, 0], sizes = [2, 128], strides = [1, 1]} : vector<32x128xf32> to vector<2x128xf32>
    %8 = vector.extract_strided_slice %6 {offsets = [2, 0], sizes = [2, 128], strides = [1, 1]} : vector<32x128xf32> to vector<2x128xf32>
    %9 = vector.extract_strided_slice %6 {offsets = [4, 0], sizes = [2, 128], strides = [1, 1]} : vector<32x128xf32> to vector<2x128xf32>
    %10 = vector.extract_strided_slice %6 {offsets = [6, 0], sizes = [2, 128], strides = [1, 1]} : vector<32x128xf32> to vector<2x128xf32>
    %11 = vector.extract_strided_slice %6 {offsets = [8, 0], sizes = [2, 128], strides = [1, 1]} : vector<32x128xf32> to vector<2x128xf32>
    %12 = vector.extract_strided_slice %6 {offsets = [10, 0], sizes = [2, 128], strides = [1, 1]} : vector<32x128xf32> to vector<2x128xf32>
    %13 = vector.extract_strided_slice %6 {offsets = [12, 0], sizes = [2, 128], strides = [1, 1]} : vector<32x128xf32> to vector<2x128xf32>
    %14 = vector.extract_strided_slice %6 {offsets = [14, 0], sizes = [2, 128], strides = [1, 1]} : vector<32x128xf32> to vector<2x128xf32>
    %15 = vector.extract_strided_slice %6 {offsets = [16, 0], sizes = [2, 128], strides = [1, 1]} : vector<32x128xf32> to vector<2x128xf32>
    %16 = vector.extract_strided_slice %6 {offsets = [18, 0], sizes = [2, 128], strides = [1, 1]} : vector<32x128xf32> to vector<2x128xf32>
    %17 = vector.extract_strided_slice %6 {offsets = [20, 0], sizes = [2, 128], strides = [1, 1]} : vector<32x128xf32> to vector<2x128xf32>
    %18 = vector.extract_strided_slice %6 {offsets = [22, 0], sizes = [2, 128], strides = [1, 1]} : vector<32x128xf32> to vector<2x128xf32>
    %19 = vector.extract_strided_slice %6 {offsets = [24, 0], sizes = [2, 128], strides = [1, 1]} : vector<32x128xf32> to vector<2x128xf32>
    %20 = vector.extract_strided_slice %6 {offsets = [26, 0], sizes = [2, 128], strides = [1, 1]} : vector<32x128xf32> to vector<2x128xf32>
    %21 = vector.extract_strided_slice %6 {offsets = [28, 0], sizes = [2, 128], strides = [1, 1]} : vector<32x128xf32> to vector<2x128xf32>
    %22 = vector.extract_strided_slice %6 {offsets = [30, 0], sizes = [2, 128], strides = [1, 1]} : vector<32x128xf32> to vector<2x128xf32>
    %cst_7 = arith.constant 0.000000e+00 : f32
    %23 = vector.broadcast %cst_7 : f32 to vector<2x32xf32>
    %cst_8 = arith.constant 0.000000e+00 : f32
    %24 = vector.broadcast %cst_8 : f32 to vector<2x32xf32>
    %cst_9 = arith.constant dense<0.000000e+00> : vector<2x128xf32>
    %25 = tpu.matmul %23, %1, %cst_9 {dimension_numbers = #tpu.dot_dimension_numbers<[1], [0], [0], [1], [0, 0, 1, 1], [], []>} : vector<2x32xf32>, vector<32x128xf32>, vector<2x128xf32> -> vector<2x128xf32>
    %26 = arith.addf %7, %25 : vector<2x128xf32>
    %27 = arith.negf %26 : vector<2x128xf32>
    %28 = math.exp %27 : vector<2x128xf32>
    %cst_10 = arith.constant 1.000000e+00 : f32
    %29 = vector.broadcast %cst_10 : f32 to vector<2x128xf32>
    %30 = arith.addf %29, %28 : vector<2x128xf32>
    %31 = arith.divf %29, %30 : vector<2x128xf32>
    %32 = math.tanh %26 : vector<2x128xf32>
    %33 = vector.extract_strided_slice %31 {offsets = [0, 0], sizes = [2, 32], strides = [1, 1]} : vector<2x128xf32> to vector<2x32xf32>
    %34 = vector.extract_strided_slice %31 {offsets = [0, 32], sizes = [2, 32], strides = [1, 1]} : vector<2x128xf32> to vector<2x32xf32>
    %35 = vector.extract_strided_slice %32 {offsets = [0, 64], sizes = [2, 32], strides = [1, 1]} : vector<2x128xf32> to vector<2x32xf32>
    %36 = vector.extract_strided_slice %31 {offsets = [0, 96], sizes = [2, 32], strides = [1, 1]} : vector<2x128xf32> to vector<2x32xf32>
    %37 = arith.mulf %34, %24 : vector<2x32xf32>
    %38 = arith.mulf %33, %35 : vector<2x32xf32>
    %39 = arith.addf %37, %38 : vector<2x32xf32>
    %40 = math.tanh %39 : vector<2x32xf32>
    %41 = arith.mulf %36, %40 : vector<2x32xf32>
    %cst_11 = arith.constant dense<0.000000e+00> : vector<2x128xf32>
    %42 = tpu.matmul %41, %1, %cst_11 {dimension_numbers = #tpu.dot_dimension_numbers<[1], [0], [0], [1], [0, 0, 1, 1], [], []>} : vector<2x32xf32>, vector<32x128xf32>, vector<2x128xf32> -> vector<2x128xf32>
    %43 = arith.addf %8, %42 : vector<2x128xf32>
    %44 = arith.negf %43 : vector<2x128xf32>
    %45 = math.exp %44 : vector<2x128xf32>
    %cst_12 = arith.constant 1.000000e+00 : f32
    %46 = vector.broadcast %cst_12 : f32 to vector<2x128xf32>
    %47 = arith.addf %46, %45 : vector<2x128xf32>
    %48 = arith.divf %46, %47 : vector<2x128xf32>
    %49 = math.tanh %43 : vector<2x128xf32>
    %50 = vector.extract_strided_slice %48 {offsets = [0, 0], sizes = [2, 32], strides = [1, 1]} : vector<2x128xf32> to vector<2x32xf32>
    %51 = vector.extract_strided_slice %48 {offsets = [0, 32], sizes = [2, 32], strides = [1, 1]} : vector<2x128xf32> to vector<2x32xf32>
    %52 = vector.extract_strided_slice %49 {offsets = [0, 64], sizes = [2, 32], strides = [1, 1]} : vector<2x128xf32> to vector<2x32xf32>
    %53 = vector.extract_strided_slice %48 {offsets = [0, 96], sizes = [2, 32], strides = [1, 1]} : vector<2x128xf32> to vector<2x32xf32>
    %54 = arith.mulf %51, %39 : vector<2x32xf32>
    %55 = arith.mulf %50, %52 : vector<2x32xf32>
    %56 = arith.addf %54, %55 : vector<2x32xf32>
    %57 = math.tanh %56 : vector<2x32xf32>
    %58 = arith.mulf %53, %57 : vector<2x32xf32>
    %cst_13 = arith.constant dense<0.000000e+00> : vector<2x128xf32>
    %59 = tpu.matmul %58, %1, %cst_13 {dimension_numbers = #tpu.dot_dimension_numbers<[1], [0], [0], [1], [0, 0, 1, 1], [], []>} : vector<2x32xf32>, vector<32x128xf32>, vector<2x128xf32> -> vector<2x128xf32>
    %60 = arith.addf %9, %59 : vector<2x128xf32>
    %61 = arith.negf %60 : vector<2x128xf32>
    %62 = math.exp %61 : vector<2x128xf32>
    %cst_14 = arith.constant 1.000000e+00 : f32
    %63 = vector.broadcast %cst_14 : f32 to vector<2x128xf32>
    %64 = arith.addf %63, %62 : vector<2x128xf32>
    %65 = arith.divf %63, %64 : vector<2x128xf32>
    %66 = math.tanh %60 : vector<2x128xf32>
    %67 = vector.extract_strided_slice %65 {offsets = [0, 0], sizes = [2, 32], strides = [1, 1]} : vector<2x128xf32> to vector<2x32xf32>
    %68 = vector.extract_strided_slice %65 {offsets = [0, 32], sizes = [2, 32], strides = [1, 1]} : vector<2x128xf32> to vector<2x32xf32>
    %69 = vector.extract_strided_slice %66 {offsets = [0, 64], sizes = [2, 32], strides = [1, 1]} : vector<2x128xf32> to vector<2x32xf32>
    %70 = vector.extract_strided_slice %65 {offsets = [0, 96], sizes = [2, 32], strides = [1, 1]} : vector<2x128xf32> to vector<2x32xf32>
    %71 = arith.mulf %68, %56 : vector<2x32xf32>
    %72 = arith.mulf %67, %69 : vector<2x32xf32>
    %73 = arith.addf %71, %72 : vector<2x32xf32>
    %74 = math.tanh %73 : vector<2x32xf32>
    %75 = arith.mulf %70, %74 : vector<2x32xf32>
    %cst_15 = arith.constant dense<0.000000e+00> : vector<2x128xf32>
    %76 = tpu.matmul %75, %1, %cst_15 {dimension_numbers = #tpu.dot_dimension_numbers<[1], [0], [0], [1], [0, 0, 1, 1], [], []>} : vector<2x32xf32>, vector<32x128xf32>, vector<2x128xf32> -> vector<2x128xf32>
    %77 = arith.addf %10, %76 : vector<2x128xf32>
    %78 = arith.negf %77 : vector<2x128xf32>
    %79 = math.exp %78 : vector<2x128xf32>
    %cst_16 = arith.constant 1.000000e+00 : f32
    %80 = vector.broadcast %cst_16 : f32 to vector<2x128xf32>
    %81 = arith.addf %80, %79 : vector<2x128xf32>
    %82 = arith.divf %80, %81 : vector<2x128xf32>
    %83 = math.tanh %77 : vector<2x128xf32>
    %84 = vector.extract_strided_slice %82 {offsets = [0, 0], sizes = [2, 32], strides = [1, 1]} : vector<2x128xf32> to vector<2x32xf32>
    %85 = vector.extract_strided_slice %82 {offsets = [0, 32], sizes = [2, 32], strides = [1, 1]} : vector<2x128xf32> to vector<2x32xf32>
    %86 = vector.extract_strided_slice %83 {offsets = [0, 64], sizes = [2, 32], strides = [1, 1]} : vector<2x128xf32> to vector<2x32xf32>
    %87 = vector.extract_strided_slice %82 {offsets = [0, 96], sizes = [2, 32], strides = [1, 1]} : vector<2x128xf32> to vector<2x32xf32>
    %88 = arith.mulf %85, %73 : vector<2x32xf32>
    %89 = arith.mulf %84, %86 : vector<2x32xf32>
    %90 = arith.addf %88, %89 : vector<2x32xf32>
    %91 = math.tanh %90 : vector<2x32xf32>
    %92 = arith.mulf %87, %91 : vector<2x32xf32>
    %cst_17 = arith.constant dense<0.000000e+00> : vector<2x128xf32>
    %93 = tpu.matmul %92, %1, %cst_17 {dimension_numbers = #tpu.dot_dimension_numbers<[1], [0], [0], [1], [0, 0, 1, 1], [], []>} : vector<2x32xf32>, vector<32x128xf32>, vector<2x128xf32> -> vector<2x128xf32>
    %94 = arith.addf %11, %93 : vector<2x128xf32>
    %95 = arith.negf %94 : vector<2x128xf32>
    %96 = math.exp %95 : vector<2x128xf32>
    %cst_18 = arith.constant 1.000000e+00 : f32
    %97 = vector.broadcast %cst_18 : f32 to vector<2x128xf32>
    %98 = arith.addf %97, %96 : vector<2x128xf32>
    %99 = arith.divf %97, %98 : vector<2x128xf32>
    %100 = math.tanh %94 : vector<2x128xf32>
    %101 = vector.extract_strided_slice %99 {offsets = [0, 0], sizes = [2, 32], strides = [1, 1]} : vector<2x128xf32> to vector<2x32xf32>
    %102 = vector.extract_strided_slice %99 {offsets = [0, 32], sizes = [2, 32], strides = [1, 1]} : vector<2x128xf32> to vector<2x32xf32>
    %103 = vector.extract_strided_slice %100 {offsets = [0, 64], sizes = [2, 32], strides = [1, 1]} : vector<2x128xf32> to vector<2x32xf32>
    %104 = vector.extract_strided_slice %99 {offsets = [0, 96], sizes = [2, 32], strides = [1, 1]} : vector<2x128xf32> to vector<2x32xf32>
    %105 = arith.mulf %102, %90 : vector<2x32xf32>
    %106 = arith.mulf %101, %103 : vector<2x32xf32>
    %107 = arith.addf %105, %106 : vector<2x32xf32>
    %108 = math.tanh %107 : vector<2x32xf32>
    %109 = arith.mulf %104, %108 : vector<2x32xf32>
    %cst_19 = arith.constant dense<0.000000e+00> : vector<2x128xf32>
    %110 = tpu.matmul %109, %1, %cst_19 {dimension_numbers = #tpu.dot_dimension_numbers<[1], [0], [0], [1], [0, 0, 1, 1], [], []>} : vector<2x32xf32>, vector<32x128xf32>, vector<2x128xf32> -> vector<2x128xf32>
    %111 = arith.addf %12, %110 : vector<2x128xf32>
    %112 = arith.negf %111 : vector<2x128xf32>
    %113 = math.exp %112 : vector<2x128xf32>
    %cst_20 = arith.constant 1.000000e+00 : f32
    %114 = vector.broadcast %cst_20 : f32 to vector<2x128xf32>
    %115 = arith.addf %114, %113 : vector<2x128xf32>
    %116 = arith.divf %114, %115 : vector<2x128xf32>
    %117 = math.tanh %111 : vector<2x128xf32>
    %118 = vector.extract_strided_slice %116 {offsets = [0, 0], sizes = [2, 32], strides = [1, 1]} : vector<2x128xf32> to vector<2x32xf32>
    %119 = vector.extract_strided_slice %116 {offsets = [0, 32], sizes = [2, 32], strides = [1, 1]} : vector<2x128xf32> to vector<2x32xf32>
    %120 = vector.extract_strided_slice %117 {offsets = [0, 64], sizes = [2, 32], strides = [1, 1]} : vector<2x128xf32> to vector<2x32xf32>
    %121 = vector.extract_strided_slice %116 {offsets = [0, 96], sizes = [2, 32], strides = [1, 1]} : vector<2x128xf32> to vector<2x32xf32>
    %122 = arith.mulf %119, %107 : vector<2x32xf32>
    %123 = arith.mulf %118, %120 : vector<2x32xf32>
    %124 = arith.addf %122, %123 : vector<2x32xf32>
    %125 = math.tanh %124 : vector<2x32xf32>
    %126 = arith.mulf %121, %125 : vector<2x32xf32>
    %cst_21 = arith.constant dense<0.000000e+00> : vector<2x128xf32>
    %127 = tpu.matmul %126, %1, %cst_21 {dimension_numbers = #tpu.dot_dimension_numbers<[1], [0], [0], [1], [0, 0, 1, 1], [], []>} : vector<2x32xf32>, vector<32x128xf32>, vector<2x128xf32> -> vector<2x128xf32>
    %128 = arith.addf %13, %127 : vector<2x128xf32>
    %129 = arith.negf %128 : vector<2x128xf32>
    %130 = math.exp %129 : vector<2x128xf32>
    %cst_22 = arith.constant 1.000000e+00 : f32
    %131 = vector.broadcast %cst_22 : f32 to vector<2x128xf32>
    %132 = arith.addf %131, %130 : vector<2x128xf32>
    %133 = arith.divf %131, %132 : vector<2x128xf32>
    %134 = math.tanh %128 : vector<2x128xf32>
    %135 = vector.extract_strided_slice %133 {offsets = [0, 0], sizes = [2, 32], strides = [1, 1]} : vector<2x128xf32> to vector<2x32xf32>
    %136 = vector.extract_strided_slice %133 {offsets = [0, 32], sizes = [2, 32], strides = [1, 1]} : vector<2x128xf32> to vector<2x32xf32>
    %137 = vector.extract_strided_slice %134 {offsets = [0, 64], sizes = [2, 32], strides = [1, 1]} : vector<2x128xf32> to vector<2x32xf32>
    %138 = vector.extract_strided_slice %133 {offsets = [0, 96], sizes = [2, 32], strides = [1, 1]} : vector<2x128xf32> to vector<2x32xf32>
    %139 = arith.mulf %136, %124 : vector<2x32xf32>
    %140 = arith.mulf %135, %137 : vector<2x32xf32>
    %141 = arith.addf %139, %140 : vector<2x32xf32>
    %142 = math.tanh %141 : vector<2x32xf32>
    %143 = arith.mulf %138, %142 : vector<2x32xf32>
    %cst_23 = arith.constant dense<0.000000e+00> : vector<2x128xf32>
    %144 = tpu.matmul %143, %1, %cst_23 {dimension_numbers = #tpu.dot_dimension_numbers<[1], [0], [0], [1], [0, 0, 1, 1], [], []>} : vector<2x32xf32>, vector<32x128xf32>, vector<2x128xf32> -> vector<2x128xf32>
    %145 = arith.addf %14, %144 : vector<2x128xf32>
    %146 = arith.negf %145 : vector<2x128xf32>
    %147 = math.exp %146 : vector<2x128xf32>
    %cst_24 = arith.constant 1.000000e+00 : f32
    %148 = vector.broadcast %cst_24 : f32 to vector<2x128xf32>
    %149 = arith.addf %148, %147 : vector<2x128xf32>
    %150 = arith.divf %148, %149 : vector<2x128xf32>
    %151 = math.tanh %145 : vector<2x128xf32>
    %152 = vector.extract_strided_slice %150 {offsets = [0, 0], sizes = [2, 32], strides = [1, 1]} : vector<2x128xf32> to vector<2x32xf32>
    %153 = vector.extract_strided_slice %150 {offsets = [0, 32], sizes = [2, 32], strides = [1, 1]} : vector<2x128xf32> to vector<2x32xf32>
    %154 = vector.extract_strided_slice %151 {offsets = [0, 64], sizes = [2, 32], strides = [1, 1]} : vector<2x128xf32> to vector<2x32xf32>
    %155 = vector.extract_strided_slice %150 {offsets = [0, 96], sizes = [2, 32], strides = [1, 1]} : vector<2x128xf32> to vector<2x32xf32>
    %156 = arith.mulf %153, %141 : vector<2x32xf32>
    %157 = arith.mulf %152, %154 : vector<2x32xf32>
    %158 = arith.addf %156, %157 : vector<2x32xf32>
    %159 = math.tanh %158 : vector<2x32xf32>
    %160 = arith.mulf %155, %159 : vector<2x32xf32>
    %cst_25 = arith.constant dense<0.000000e+00> : vector<2x128xf32>
    %161 = tpu.matmul %160, %1, %cst_25 {dimension_numbers = #tpu.dot_dimension_numbers<[1], [0], [0], [1], [0, 0, 1, 1], [], []>} : vector<2x32xf32>, vector<32x128xf32>, vector<2x128xf32> -> vector<2x128xf32>
    %162 = arith.addf %15, %161 : vector<2x128xf32>
    %163 = arith.negf %162 : vector<2x128xf32>
    %164 = math.exp %163 : vector<2x128xf32>
    %cst_26 = arith.constant 1.000000e+00 : f32
    %165 = vector.broadcast %cst_26 : f32 to vector<2x128xf32>
    %166 = arith.addf %165, %164 : vector<2x128xf32>
    %167 = arith.divf %165, %166 : vector<2x128xf32>
    %168 = math.tanh %162 : vector<2x128xf32>
    %169 = vector.extract_strided_slice %167 {offsets = [0, 0], sizes = [2, 32], strides = [1, 1]} : vector<2x128xf32> to vector<2x32xf32>
    %170 = vector.extract_strided_slice %167 {offsets = [0, 32], sizes = [2, 32], strides = [1, 1]} : vector<2x128xf32> to vector<2x32xf32>
    %171 = vector.extract_strided_slice %168 {offsets = [0, 64], sizes = [2, 32], strides = [1, 1]} : vector<2x128xf32> to vector<2x32xf32>
    %172 = vector.extract_strided_slice %167 {offsets = [0, 96], sizes = [2, 32], strides = [1, 1]} : vector<2x128xf32> to vector<2x32xf32>
    %173 = arith.mulf %170, %158 : vector<2x32xf32>
    %174 = arith.mulf %169, %171 : vector<2x32xf32>
    %175 = arith.addf %173, %174 : vector<2x32xf32>
    %176 = math.tanh %175 : vector<2x32xf32>
    %177 = arith.mulf %172, %176 : vector<2x32xf32>
    %cst_27 = arith.constant dense<0.000000e+00> : vector<2x128xf32>
    %178 = tpu.matmul %177, %1, %cst_27 {dimension_numbers = #tpu.dot_dimension_numbers<[1], [0], [0], [1], [0, 0, 1, 1], [], []>} : vector<2x32xf32>, vector<32x128xf32>, vector<2x128xf32> -> vector<2x128xf32>
    %179 = arith.addf %16, %178 : vector<2x128xf32>
    %180 = arith.negf %179 : vector<2x128xf32>
    %181 = math.exp %180 : vector<2x128xf32>
    %cst_28 = arith.constant 1.000000e+00 : f32
    %182 = vector.broadcast %cst_28 : f32 to vector<2x128xf32>
    %183 = arith.addf %182, %181 : vector<2x128xf32>
    %184 = arith.divf %182, %183 : vector<2x128xf32>
    %185 = math.tanh %179 : vector<2x128xf32>
    %186 = vector.extract_strided_slice %184 {offsets = [0, 0], sizes = [2, 32], strides = [1, 1]} : vector<2x128xf32> to vector<2x32xf32>
    %187 = vector.extract_strided_slice %184 {offsets = [0, 32], sizes = [2, 32], strides = [1, 1]} : vector<2x128xf32> to vector<2x32xf32>
    %188 = vector.extract_strided_slice %185 {offsets = [0, 64], sizes = [2, 32], strides = [1, 1]} : vector<2x128xf32> to vector<2x32xf32>
    %189 = vector.extract_strided_slice %184 {offsets = [0, 96], sizes = [2, 32], strides = [1, 1]} : vector<2x128xf32> to vector<2x32xf32>
    %190 = arith.mulf %187, %175 : vector<2x32xf32>
    %191 = arith.mulf %186, %188 : vector<2x32xf32>
    %192 = arith.addf %190, %191 : vector<2x32xf32>
    %193 = math.tanh %192 : vector<2x32xf32>
    %194 = arith.mulf %189, %193 : vector<2x32xf32>
    %cst_29 = arith.constant dense<0.000000e+00> : vector<2x128xf32>
    %195 = tpu.matmul %194, %1, %cst_29 {dimension_numbers = #tpu.dot_dimension_numbers<[1], [0], [0], [1], [0, 0, 1, 1], [], []>} : vector<2x32xf32>, vector<32x128xf32>, vector<2x128xf32> -> vector<2x128xf32>
    %196 = arith.addf %17, %195 : vector<2x128xf32>
    %197 = arith.negf %196 : vector<2x128xf32>
    %198 = math.exp %197 : vector<2x128xf32>
    %cst_30 = arith.constant 1.000000e+00 : f32
    %199 = vector.broadcast %cst_30 : f32 to vector<2x128xf32>
    %200 = arith.addf %199, %198 : vector<2x128xf32>
    %201 = arith.divf %199, %200 : vector<2x128xf32>
    %202 = math.tanh %196 : vector<2x128xf32>
    %203 = vector.extract_strided_slice %201 {offsets = [0, 0], sizes = [2, 32], strides = [1, 1]} : vector<2x128xf32> to vector<2x32xf32>
    %204 = vector.extract_strided_slice %201 {offsets = [0, 32], sizes = [2, 32], strides = [1, 1]} : vector<2x128xf32> to vector<2x32xf32>
    %205 = vector.extract_strided_slice %202 {offsets = [0, 64], sizes = [2, 32], strides = [1, 1]} : vector<2x128xf32> to vector<2x32xf32>
    %206 = vector.extract_strided_slice %201 {offsets = [0, 96], sizes = [2, 32], strides = [1, 1]} : vector<2x128xf32> to vector<2x32xf32>
    %207 = arith.mulf %204, %192 : vector<2x32xf32>
    %208 = arith.mulf %203, %205 : vector<2x32xf32>
    %209 = arith.addf %207, %208 : vector<2x32xf32>
    %210 = math.tanh %209 : vector<2x32xf32>
    %211 = arith.mulf %206, %210 : vector<2x32xf32>
    %cst_31 = arith.constant dense<0.000000e+00> : vector<2x128xf32>
    %212 = tpu.matmul %211, %1, %cst_31 {dimension_numbers = #tpu.dot_dimension_numbers<[1], [0], [0], [1], [0, 0, 1, 1], [], []>} : vector<2x32xf32>, vector<32x128xf32>, vector<2x128xf32> -> vector<2x128xf32>
    %213 = arith.addf %18, %212 : vector<2x128xf32>
    %214 = arith.negf %213 : vector<2x128xf32>
    %215 = math.exp %214 : vector<2x128xf32>
    %cst_32 = arith.constant 1.000000e+00 : f32
    %216 = vector.broadcast %cst_32 : f32 to vector<2x128xf32>
    %217 = arith.addf %216, %215 : vector<2x128xf32>
    %218 = arith.divf %216, %217 : vector<2x128xf32>
    %219 = math.tanh %213 : vector<2x128xf32>
    %220 = vector.extract_strided_slice %218 {offsets = [0, 0], sizes = [2, 32], strides = [1, 1]} : vector<2x128xf32> to vector<2x32xf32>
    %221 = vector.extract_strided_slice %218 {offsets = [0, 32], sizes = [2, 32], strides = [1, 1]} : vector<2x128xf32> to vector<2x32xf32>
    %222 = vector.extract_strided_slice %219 {offsets = [0, 64], sizes = [2, 32], strides = [1, 1]} : vector<2x128xf32> to vector<2x32xf32>
    %223 = vector.extract_strided_slice %218 {offsets = [0, 96], sizes = [2, 32], strides = [1, 1]} : vector<2x128xf32> to vector<2x32xf32>
    %224 = arith.mulf %221, %209 : vector<2x32xf32>
    %225 = arith.mulf %220, %222 : vector<2x32xf32>
    %226 = arith.addf %224, %225 : vector<2x32xf32>
    %227 = math.tanh %226 : vector<2x32xf32>
    %228 = arith.mulf %223, %227 : vector<2x32xf32>
    %cst_33 = arith.constant dense<0.000000e+00> : vector<2x128xf32>
    %229 = tpu.matmul %228, %1, %cst_33 {dimension_numbers = #tpu.dot_dimension_numbers<[1], [0], [0], [1], [0, 0, 1, 1], [], []>} : vector<2x32xf32>, vector<32x128xf32>, vector<2x128xf32> -> vector<2x128xf32>
    %230 = arith.addf %19, %229 : vector<2x128xf32>
    %231 = arith.negf %230 : vector<2x128xf32>
    %232 = math.exp %231 : vector<2x128xf32>
    %cst_34 = arith.constant 1.000000e+00 : f32
    %233 = vector.broadcast %cst_34 : f32 to vector<2x128xf32>
    %234 = arith.addf %233, %232 : vector<2x128xf32>
    %235 = arith.divf %233, %234 : vector<2x128xf32>
    %236 = math.tanh %230 : vector<2x128xf32>
    %237 = vector.extract_strided_slice %235 {offsets = [0, 0], sizes = [2, 32], strides = [1, 1]} : vector<2x128xf32> to vector<2x32xf32>
    %238 = vector.extract_strided_slice %235 {offsets = [0, 32], sizes = [2, 32], strides = [1, 1]} : vector<2x128xf32> to vector<2x32xf32>
    %239 = vector.extract_strided_slice %236 {offsets = [0, 64], sizes = [2, 32], strides = [1, 1]} : vector<2x128xf32> to vector<2x32xf32>
    %240 = vector.extract_strided_slice %235 {offsets = [0, 96], sizes = [2, 32], strides = [1, 1]} : vector<2x128xf32> to vector<2x32xf32>
    %241 = arith.mulf %238, %226 : vector<2x32xf32>
    %242 = arith.mulf %237, %239 : vector<2x32xf32>
    %243 = arith.addf %241, %242 : vector<2x32xf32>
    %244 = math.tanh %243 : vector<2x32xf32>
    %245 = arith.mulf %240, %244 : vector<2x32xf32>
    %cst_35 = arith.constant dense<0.000000e+00> : vector<2x128xf32>
    %246 = tpu.matmul %245, %1, %cst_35 {dimension_numbers = #tpu.dot_dimension_numbers<[1], [0], [0], [1], [0, 0, 1, 1], [], []>} : vector<2x32xf32>, vector<32x128xf32>, vector<2x128xf32> -> vector<2x128xf32>
    %247 = arith.addf %20, %246 : vector<2x128xf32>
    %248 = arith.negf %247 : vector<2x128xf32>
    %249 = math.exp %248 : vector<2x128xf32>
    %cst_36 = arith.constant 1.000000e+00 : f32
    %250 = vector.broadcast %cst_36 : f32 to vector<2x128xf32>
    %251 = arith.addf %250, %249 : vector<2x128xf32>
    %252 = arith.divf %250, %251 : vector<2x128xf32>
    %253 = math.tanh %247 : vector<2x128xf32>
    %254 = vector.extract_strided_slice %252 {offsets = [0, 0], sizes = [2, 32], strides = [1, 1]} : vector<2x128xf32> to vector<2x32xf32>
    %255 = vector.extract_strided_slice %252 {offsets = [0, 32], sizes = [2, 32], strides = [1, 1]} : vector<2x128xf32> to vector<2x32xf32>
    %256 = vector.extract_strided_slice %253 {offsets = [0, 64], sizes = [2, 32], strides = [1, 1]} : vector<2x128xf32> to vector<2x32xf32>
    %257 = vector.extract_strided_slice %252 {offsets = [0, 96], sizes = [2, 32], strides = [1, 1]} : vector<2x128xf32> to vector<2x32xf32>
    %258 = arith.mulf %255, %243 : vector<2x32xf32>
    %259 = arith.mulf %254, %256 : vector<2x32xf32>
    %260 = arith.addf %258, %259 : vector<2x32xf32>
    %261 = math.tanh %260 : vector<2x32xf32>
    %262 = arith.mulf %257, %261 : vector<2x32xf32>
    %cst_37 = arith.constant dense<0.000000e+00> : vector<2x128xf32>
    %263 = tpu.matmul %262, %1, %cst_37 {dimension_numbers = #tpu.dot_dimension_numbers<[1], [0], [0], [1], [0, 0, 1, 1], [], []>} : vector<2x32xf32>, vector<32x128xf32>, vector<2x128xf32> -> vector<2x128xf32>
    %264 = arith.addf %21, %263 : vector<2x128xf32>
    %265 = arith.negf %264 : vector<2x128xf32>
    %266 = math.exp %265 : vector<2x128xf32>
    %cst_38 = arith.constant 1.000000e+00 : f32
    %267 = vector.broadcast %cst_38 : f32 to vector<2x128xf32>
    %268 = arith.addf %267, %266 : vector<2x128xf32>
    %269 = arith.divf %267, %268 : vector<2x128xf32>
    %270 = math.tanh %264 : vector<2x128xf32>
    %271 = vector.extract_strided_slice %269 {offsets = [0, 0], sizes = [2, 32], strides = [1, 1]} : vector<2x128xf32> to vector<2x32xf32>
    %272 = vector.extract_strided_slice %269 {offsets = [0, 32], sizes = [2, 32], strides = [1, 1]} : vector<2x128xf32> to vector<2x32xf32>
    %273 = vector.extract_strided_slice %270 {offsets = [0, 64], sizes = [2, 32], strides = [1, 1]} : vector<2x128xf32> to vector<2x32xf32>
    %274 = vector.extract_strided_slice %269 {offsets = [0, 96], sizes = [2, 32], strides = [1, 1]} : vector<2x128xf32> to vector<2x32xf32>
    %275 = arith.mulf %272, %260 : vector<2x32xf32>
    %276 = arith.mulf %271, %273 : vector<2x32xf32>
    %277 = arith.addf %275, %276 : vector<2x32xf32>
    %278 = math.tanh %277 : vector<2x32xf32>
    %279 = arith.mulf %274, %278 : vector<2x32xf32>
    %cst_39 = arith.constant dense<0.000000e+00> : vector<2x128xf32>
    %280 = tpu.matmul %279, %1, %cst_39 {dimension_numbers = #tpu.dot_dimension_numbers<[1], [0], [0], [1], [0, 0, 1, 1], [], []>} : vector<2x32xf32>, vector<32x128xf32>, vector<2x128xf32> -> vector<2x128xf32>
    %281 = arith.addf %22, %280 : vector<2x128xf32>
    %282 = arith.negf %281 : vector<2x128xf32>
    %283 = math.exp %282 : vector<2x128xf32>
    %cst_40 = arith.constant 1.000000e+00 : f32
    %284 = vector.broadcast %cst_40 : f32 to vector<2x128xf32>
    %285 = arith.addf %284, %283 : vector<2x128xf32>
    %286 = arith.divf %284, %285 : vector<2x128xf32>
    %287 = math.tanh %281 : vector<2x128xf32>
    %288 = vector.extract_strided_slice %286 {offsets = [0, 0], sizes = [2, 32], strides = [1, 1]} : vector<2x128xf32> to vector<2x32xf32>
    %289 = vector.extract_strided_slice %286 {offsets = [0, 32], sizes = [2, 32], strides = [1, 1]} : vector<2x128xf32> to vector<2x32xf32>
    %290 = vector.extract_strided_slice %287 {offsets = [0, 64], sizes = [2, 32], strides = [1, 1]} : vector<2x128xf32> to vector<2x32xf32>
    %291 = vector.extract_strided_slice %286 {offsets = [0, 96], sizes = [2, 32], strides = [1, 1]} : vector<2x128xf32> to vector<2x32xf32>
    %292 = arith.mulf %289, %277 : vector<2x32xf32>
    %293 = arith.mulf %288, %290 : vector<2x32xf32>
    %294 = arith.addf %292, %293 : vector<2x32xf32>
    %295 = math.tanh %294 : vector<2x32xf32>
    %296 = arith.mulf %291, %295 : vector<2x32xf32>
    %c0_41 = arith.constant 0 : index
    %c0_42 = arith.constant 0 : index
    %297 = vector.load %arg5[%c0_41, %c0_42] : memref<32x128xf32, #tpu.memory_space<vmem>>, vector<32x128xf32>
    %c0_43 = arith.constant 0 : index
    %c0_44 = arith.constant 0 : index
    %298 = vector.load %arg6[%c0_43, %c0_44] : memref<32x128xf32, #tpu.memory_space<vmem>>, vector<32x128xf32>
    %c0_45 = arith.constant 0 : index
    %c0_46 = arith.constant 0 : index
    %299 = vector.load %arg7[%c0_45, %c0_46] : memref<1x128xf32, #tpu.memory_space<vmem>>, vector<1x128xf32>
    %cst_47 = arith.constant dense<0.000000e+00> : vector<2x128xf32>
    %300 = tpu.matmul %41, %297, %cst_47 {dimension_numbers = #tpu.dot_dimension_numbers<[1], [0], [0], [1], [0, 0, 1, 1], [], []>} : vector<2x32xf32>, vector<32x128xf32>, vector<2x128xf32> -> vector<2x128xf32>
    %301 = vector.broadcast %299 : vector<1x128xf32> to vector<2x128xf32>
    %302 = arith.addf %300, %301 : vector<2x128xf32>
    %cst_48 = arith.constant dense<0.000000e+00> : vector<2x128xf32>
    %303 = tpu.matmul %58, %297, %cst_48 {dimension_numbers = #tpu.dot_dimension_numbers<[1], [0], [0], [1], [0, 0, 1, 1], [], []>} : vector<2x32xf32>, vector<32x128xf32>, vector<2x128xf32> -> vector<2x128xf32>
    %304 = vector.broadcast %299 : vector<1x128xf32> to vector<2x128xf32>
    %305 = arith.addf %303, %304 : vector<2x128xf32>
    %cst_49 = arith.constant dense<0.000000e+00> : vector<2x128xf32>
    %306 = tpu.matmul %75, %297, %cst_49 {dimension_numbers = #tpu.dot_dimension_numbers<[1], [0], [0], [1], [0, 0, 1, 1], [], []>} : vector<2x32xf32>, vector<32x128xf32>, vector<2x128xf32> -> vector<2x128xf32>
    %307 = vector.broadcast %299 : vector<1x128xf32> to vector<2x128xf32>
    %308 = arith.addf %306, %307 : vector<2x128xf32>
    %cst_50 = arith.constant dense<0.000000e+00> : vector<2x128xf32>
    %309 = tpu.matmul %92, %297, %cst_50 {dimension_numbers = #tpu.dot_dimension_numbers<[1], [0], [0], [1], [0, 0, 1, 1], [], []>} : vector<2x32xf32>, vector<32x128xf32>, vector<2x128xf32> -> vector<2x128xf32>
    %310 = vector.broadcast %299 : vector<1x128xf32> to vector<2x128xf32>
    %311 = arith.addf %309, %310 : vector<2x128xf32>
    %cst_51 = arith.constant dense<0.000000e+00> : vector<2x128xf32>
    %312 = tpu.matmul %109, %297, %cst_51 {dimension_numbers = #tpu.dot_dimension_numbers<[1], [0], [0], [1], [0, 0, 1, 1], [], []>} : vector<2x32xf32>, vector<32x128xf32>, vector<2x128xf32> -> vector<2x128xf32>
    %313 = vector.broadcast %299 : vector<1x128xf32> to vector<2x128xf32>
    %314 = arith.addf %312, %313 : vector<2x128xf32>
    %cst_52 = arith.constant dense<0.000000e+00> : vector<2x128xf32>
    %315 = tpu.matmul %126, %297, %cst_52 {dimension_numbers = #tpu.dot_dimension_numbers<[1], [0], [0], [1], [0, 0, 1, 1], [], []>} : vector<2x32xf32>, vector<32x128xf32>, vector<2x128xf32> -> vector<2x128xf32>
    %316 = vector.broadcast %299 : vector<1x128xf32> to vector<2x128xf32>
    %317 = arith.addf %315, %316 : vector<2x128xf32>
    %cst_53 = arith.constant dense<0.000000e+00> : vector<2x128xf32>
    %318 = tpu.matmul %143, %297, %cst_53 {dimension_numbers = #tpu.dot_dimension_numbers<[1], [0], [0], [1], [0, 0, 1, 1], [], []>} : vector<2x32xf32>, vector<32x128xf32>, vector<2x128xf32> -> vector<2x128xf32>
    %319 = vector.broadcast %299 : vector<1x128xf32> to vector<2x128xf32>
    %320 = arith.addf %318, %319 : vector<2x128xf32>
    %cst_54 = arith.constant dense<0.000000e+00> : vector<2x128xf32>
    %321 = tpu.matmul %160, %297, %cst_54 {dimension_numbers = #tpu.dot_dimension_numbers<[1], [0], [0], [1], [0, 0, 1, 1], [], []>} : vector<2x32xf32>, vector<32x128xf32>, vector<2x128xf32> -> vector<2x128xf32>
    %322 = vector.broadcast %299 : vector<1x128xf32> to vector<2x128xf32>
    %323 = arith.addf %321, %322 : vector<2x128xf32>
    %cst_55 = arith.constant dense<0.000000e+00> : vector<2x128xf32>
    %324 = tpu.matmul %177, %297, %cst_55 {dimension_numbers = #tpu.dot_dimension_numbers<[1], [0], [0], [1], [0, 0, 1, 1], [], []>} : vector<2x32xf32>, vector<32x128xf32>, vector<2x128xf32> -> vector<2x128xf32>
    %325 = vector.broadcast %299 : vector<1x128xf32> to vector<2x128xf32>
    %326 = arith.addf %324, %325 : vector<2x128xf32>
    %cst_56 = arith.constant dense<0.000000e+00> : vector<2x128xf32>
    %327 = tpu.matmul %194, %297, %cst_56 {dimension_numbers = #tpu.dot_dimension_numbers<[1], [0], [0], [1], [0, 0, 1, 1], [], []>} : vector<2x32xf32>, vector<32x128xf32>, vector<2x128xf32> -> vector<2x128xf32>
    %328 = vector.broadcast %299 : vector<1x128xf32> to vector<2x128xf32>
    %329 = arith.addf %327, %328 : vector<2x128xf32>
    %cst_57 = arith.constant dense<0.000000e+00> : vector<2x128xf32>
    %330 = tpu.matmul %211, %297, %cst_57 {dimension_numbers = #tpu.dot_dimension_numbers<[1], [0], [0], [1], [0, 0, 1, 1], [], []>} : vector<2x32xf32>, vector<32x128xf32>, vector<2x128xf32> -> vector<2x128xf32>
    %331 = vector.broadcast %299 : vector<1x128xf32> to vector<2x128xf32>
    %332 = arith.addf %330, %331 : vector<2x128xf32>
    %cst_58 = arith.constant dense<0.000000e+00> : vector<2x128xf32>
    %333 = tpu.matmul %228, %297, %cst_58 {dimension_numbers = #tpu.dot_dimension_numbers<[1], [0], [0], [1], [0, 0, 1, 1], [], []>} : vector<2x32xf32>, vector<32x128xf32>, vector<2x128xf32> -> vector<2x128xf32>
    %334 = vector.broadcast %299 : vector<1x128xf32> to vector<2x128xf32>
    %335 = arith.addf %333, %334 : vector<2x128xf32>
    %cst_59 = arith.constant dense<0.000000e+00> : vector<2x128xf32>
    %336 = tpu.matmul %245, %297, %cst_59 {dimension_numbers = #tpu.dot_dimension_numbers<[1], [0], [0], [1], [0, 0, 1, 1], [], []>} : vector<2x32xf32>, vector<32x128xf32>, vector<2x128xf32> -> vector<2x128xf32>
    %337 = vector.broadcast %299 : vector<1x128xf32> to vector<2x128xf32>
    %338 = arith.addf %336, %337 : vector<2x128xf32>
    %cst_60 = arith.constant dense<0.000000e+00> : vector<2x128xf32>
    %339 = tpu.matmul %262, %297, %cst_60 {dimension_numbers = #tpu.dot_dimension_numbers<[1], [0], [0], [1], [0, 0, 1, 1], [], []>} : vector<2x32xf32>, vector<32x128xf32>, vector<2x128xf32> -> vector<2x128xf32>
    %340 = vector.broadcast %299 : vector<1x128xf32> to vector<2x128xf32>
    %341 = arith.addf %339, %340 : vector<2x128xf32>
    %cst_61 = arith.constant dense<0.000000e+00> : vector<2x128xf32>
    %342 = tpu.matmul %279, %297, %cst_61 {dimension_numbers = #tpu.dot_dimension_numbers<[1], [0], [0], [1], [0, 0, 1, 1], [], []>} : vector<2x32xf32>, vector<32x128xf32>, vector<2x128xf32> -> vector<2x128xf32>
    %343 = vector.broadcast %299 : vector<1x128xf32> to vector<2x128xf32>
    %344 = arith.addf %342, %343 : vector<2x128xf32>
    %cst_62 = arith.constant dense<0.000000e+00> : vector<2x128xf32>
    %345 = tpu.matmul %296, %297, %cst_62 {dimension_numbers = #tpu.dot_dimension_numbers<[1], [0], [0], [1], [0, 0, 1, 1], [], []>} : vector<2x32xf32>, vector<32x128xf32>, vector<2x128xf32> -> vector<2x128xf32>
    %346 = vector.broadcast %299 : vector<1x128xf32> to vector<2x128xf32>
    %347 = arith.addf %345, %346 : vector<2x128xf32>
    %cst_63 = arith.constant 0.000000e+00 : f32
    %348 = vector.broadcast %cst_63 : f32 to vector<2x32xf32>
    %cst_64 = arith.constant 0.000000e+00 : f32
    %349 = vector.broadcast %cst_64 : f32 to vector<2x32xf32>
    %cst_65 = arith.constant dense<0.000000e+00> : vector<2x128xf32>
    %350 = tpu.matmul %348, %298, %cst_65 {dimension_numbers = #tpu.dot_dimension_numbers<[1], [0], [0], [1], [0, 0, 1, 1], [], []>} : vector<2x32xf32>, vector<32x128xf32>, vector<2x128xf32> -> vector<2x128xf32>
    %351 = arith.addf %302, %350 : vector<2x128xf32>
    %352 = arith.negf %351 : vector<2x128xf32>
    %353 = math.exp %352 : vector<2x128xf32>
    %cst_66 = arith.constant 1.000000e+00 : f32
    %354 = vector.broadcast %cst_66 : f32 to vector<2x128xf32>
    %355 = arith.addf %354, %353 : vector<2x128xf32>
    %356 = arith.divf %354, %355 : vector<2x128xf32>
    %357 = math.tanh %351 : vector<2x128xf32>
    %358 = vector.extract_strided_slice %356 {offsets = [0, 0], sizes = [2, 32], strides = [1, 1]} : vector<2x128xf32> to vector<2x32xf32>
    %359 = vector.extract_strided_slice %356 {offsets = [0, 32], sizes = [2, 32], strides = [1, 1]} : vector<2x128xf32> to vector<2x32xf32>
    %360 = vector.extract_strided_slice %357 {offsets = [0, 64], sizes = [2, 32], strides = [1, 1]} : vector<2x128xf32> to vector<2x32xf32>
    %361 = vector.extract_strided_slice %356 {offsets = [0, 96], sizes = [2, 32], strides = [1, 1]} : vector<2x128xf32> to vector<2x32xf32>
    %362 = arith.mulf %359, %349 : vector<2x32xf32>
    %363 = arith.mulf %358, %360 : vector<2x32xf32>
    %364 = arith.addf %362, %363 : vector<2x32xf32>
    %365 = math.tanh %364 : vector<2x32xf32>
    %366 = arith.mulf %361, %365 : vector<2x32xf32>
    %cst_67 = arith.constant dense<0.000000e+00> : vector<2x128xf32>
    %367 = tpu.matmul %366, %298, %cst_67 {dimension_numbers = #tpu.dot_dimension_numbers<[1], [0], [0], [1], [0, 0, 1, 1], [], []>} : vector<2x32xf32>, vector<32x128xf32>, vector<2x128xf32> -> vector<2x128xf32>
    %368 = arith.addf %305, %367 : vector<2x128xf32>
    %369 = arith.negf %368 : vector<2x128xf32>
    %370 = math.exp %369 : vector<2x128xf32>
    %cst_68 = arith.constant 1.000000e+00 : f32
    %371 = vector.broadcast %cst_68 : f32 to vector<2x128xf32>
    %372 = arith.addf %371, %370 : vector<2x128xf32>
    %373 = arith.divf %371, %372 : vector<2x128xf32>
    %374 = math.tanh %368 : vector<2x128xf32>
    %375 = vector.extract_strided_slice %373 {offsets = [0, 0], sizes = [2, 32], strides = [1, 1]} : vector<2x128xf32> to vector<2x32xf32>
    %376 = vector.extract_strided_slice %373 {offsets = [0, 32], sizes = [2, 32], strides = [1, 1]} : vector<2x128xf32> to vector<2x32xf32>
    %377 = vector.extract_strided_slice %374 {offsets = [0, 64], sizes = [2, 32], strides = [1, 1]} : vector<2x128xf32> to vector<2x32xf32>
    %378 = vector.extract_strided_slice %373 {offsets = [0, 96], sizes = [2, 32], strides = [1, 1]} : vector<2x128xf32> to vector<2x32xf32>
    %379 = arith.mulf %376, %364 : vector<2x32xf32>
    %380 = arith.mulf %375, %377 : vector<2x32xf32>
    %381 = arith.addf %379, %380 : vector<2x32xf32>
    %382 = math.tanh %381 : vector<2x32xf32>
    %383 = arith.mulf %378, %382 : vector<2x32xf32>
    %cst_69 = arith.constant dense<0.000000e+00> : vector<2x128xf32>
    %384 = tpu.matmul %383, %298, %cst_69 {dimension_numbers = #tpu.dot_dimension_numbers<[1], [0], [0], [1], [0, 0, 1, 1], [], []>} : vector<2x32xf32>, vector<32x128xf32>, vector<2x128xf32> -> vector<2x128xf32>
    %385 = arith.addf %308, %384 : vector<2x128xf32>
    %386 = arith.negf %385 : vector<2x128xf32>
    %387 = math.exp %386 : vector<2x128xf32>
    %cst_70 = arith.constant 1.000000e+00 : f32
    %388 = vector.broadcast %cst_70 : f32 to vector<2x128xf32>
    %389 = arith.addf %388, %387 : vector<2x128xf32>
    %390 = arith.divf %388, %389 : vector<2x128xf32>
    %391 = math.tanh %385 : vector<2x128xf32>
    %392 = vector.extract_strided_slice %390 {offsets = [0, 0], sizes = [2, 32], strides = [1, 1]} : vector<2x128xf32> to vector<2x32xf32>
    %393 = vector.extract_strided_slice %390 {offsets = [0, 32], sizes = [2, 32], strides = [1, 1]} : vector<2x128xf32> to vector<2x32xf32>
    %394 = vector.extract_strided_slice %391 {offsets = [0, 64], sizes = [2, 32], strides = [1, 1]} : vector<2x128xf32> to vector<2x32xf32>
    %395 = vector.extract_strided_slice %390 {offsets = [0, 96], sizes = [2, 32], strides = [1, 1]} : vector<2x128xf32> to vector<2x32xf32>
    %396 = arith.mulf %393, %381 : vector<2x32xf32>
    %397 = arith.mulf %392, %394 : vector<2x32xf32>
    %398 = arith.addf %396, %397 : vector<2x32xf32>
    %399 = math.tanh %398 : vector<2x32xf32>
    %400 = arith.mulf %395, %399 : vector<2x32xf32>
    %cst_71 = arith.constant dense<0.000000e+00> : vector<2x128xf32>
    %401 = tpu.matmul %400, %298, %cst_71 {dimension_numbers = #tpu.dot_dimension_numbers<[1], [0], [0], [1], [0, 0, 1, 1], [], []>} : vector<2x32xf32>, vector<32x128xf32>, vector<2x128xf32> -> vector<2x128xf32>
    %402 = arith.addf %311, %401 : vector<2x128xf32>
    %403 = arith.negf %402 : vector<2x128xf32>
    %404 = math.exp %403 : vector<2x128xf32>
    %cst_72 = arith.constant 1.000000e+00 : f32
    %405 = vector.broadcast %cst_72 : f32 to vector<2x128xf32>
    %406 = arith.addf %405, %404 : vector<2x128xf32>
    %407 = arith.divf %405, %406 : vector<2x128xf32>
    %408 = math.tanh %402 : vector<2x128xf32>
    %409 = vector.extract_strided_slice %407 {offsets = [0, 0], sizes = [2, 32], strides = [1, 1]} : vector<2x128xf32> to vector<2x32xf32>
    %410 = vector.extract_strided_slice %407 {offsets = [0, 32], sizes = [2, 32], strides = [1, 1]} : vector<2x128xf32> to vector<2x32xf32>
    %411 = vector.extract_strided_slice %408 {offsets = [0, 64], sizes = [2, 32], strides = [1, 1]} : vector<2x128xf32> to vector<2x32xf32>
    %412 = vector.extract_strided_slice %407 {offsets = [0, 96], sizes = [2, 32], strides = [1, 1]} : vector<2x128xf32> to vector<2x32xf32>
    %413 = arith.mulf %410, %398 : vector<2x32xf32>
    %414 = arith.mulf %409, %411 : vector<2x32xf32>
    %415 = arith.addf %413, %414 : vector<2x32xf32>
    %416 = math.tanh %415 : vector<2x32xf32>
    %417 = arith.mulf %412, %416 : vector<2x32xf32>
    %cst_73 = arith.constant dense<0.000000e+00> : vector<2x128xf32>
    %418 = tpu.matmul %417, %298, %cst_73 {dimension_numbers = #tpu.dot_dimension_numbers<[1], [0], [0], [1], [0, 0, 1, 1], [], []>} : vector<2x32xf32>, vector<32x128xf32>, vector<2x128xf32> -> vector<2x128xf32>
    %419 = arith.addf %314, %418 : vector<2x128xf32>
    %420 = arith.negf %419 : vector<2x128xf32>
    %421 = math.exp %420 : vector<2x128xf32>
    %cst_74 = arith.constant 1.000000e+00 : f32
    %422 = vector.broadcast %cst_74 : f32 to vector<2x128xf32>
    %423 = arith.addf %422, %421 : vector<2x128xf32>
    %424 = arith.divf %422, %423 : vector<2x128xf32>
    %425 = math.tanh %419 : vector<2x128xf32>
    %426 = vector.extract_strided_slice %424 {offsets = [0, 0], sizes = [2, 32], strides = [1, 1]} : vector<2x128xf32> to vector<2x32xf32>
    %427 = vector.extract_strided_slice %424 {offsets = [0, 32], sizes = [2, 32], strides = [1, 1]} : vector<2x128xf32> to vector<2x32xf32>
    %428 = vector.extract_strided_slice %425 {offsets = [0, 64], sizes = [2, 32], strides = [1, 1]} : vector<2x128xf32> to vector<2x32xf32>
    %429 = vector.extract_strided_slice %424 {offsets = [0, 96], sizes = [2, 32], strides = [1, 1]} : vector<2x128xf32> to vector<2x32xf32>
    %430 = arith.mulf %427, %415 : vector<2x32xf32>
    %431 = arith.mulf %426, %428 : vector<2x32xf32>
    %432 = arith.addf %430, %431 : vector<2x32xf32>
    %433 = math.tanh %432 : vector<2x32xf32>
    %434 = arith.mulf %429, %433 : vector<2x32xf32>
    %cst_75 = arith.constant dense<0.000000e+00> : vector<2x128xf32>
    %435 = tpu.matmul %434, %298, %cst_75 {dimension_numbers = #tpu.dot_dimension_numbers<[1], [0], [0], [1], [0, 0, 1, 1], [], []>} : vector<2x32xf32>, vector<32x128xf32>, vector<2x128xf32> -> vector<2x128xf32>
    %436 = arith.addf %317, %435 : vector<2x128xf32>
    %437 = arith.negf %436 : vector<2x128xf32>
    %438 = math.exp %437 : vector<2x128xf32>
    %cst_76 = arith.constant 1.000000e+00 : f32
    %439 = vector.broadcast %cst_76 : f32 to vector<2x128xf32>
    %440 = arith.addf %439, %438 : vector<2x128xf32>
    %441 = arith.divf %439, %440 : vector<2x128xf32>
    %442 = math.tanh %436 : vector<2x128xf32>
    %443 = vector.extract_strided_slice %441 {offsets = [0, 0], sizes = [2, 32], strides = [1, 1]} : vector<2x128xf32> to vector<2x32xf32>
    %444 = vector.extract_strided_slice %441 {offsets = [0, 32], sizes = [2, 32], strides = [1, 1]} : vector<2x128xf32> to vector<2x32xf32>
    %445 = vector.extract_strided_slice %442 {offsets = [0, 64], sizes = [2, 32], strides = [1, 1]} : vector<2x128xf32> to vector<2x32xf32>
    %446 = vector.extract_strided_slice %441 {offsets = [0, 96], sizes = [2, 32], strides = [1, 1]} : vector<2x128xf32> to vector<2x32xf32>
    %447 = arith.mulf %444, %432 : vector<2x32xf32>
    %448 = arith.mulf %443, %445 : vector<2x32xf32>
    %449 = arith.addf %447, %448 : vector<2x32xf32>
    %450 = math.tanh %449 : vector<2x32xf32>
    %451 = arith.mulf %446, %450 : vector<2x32xf32>
    %cst_77 = arith.constant dense<0.000000e+00> : vector<2x128xf32>
    %452 = tpu.matmul %451, %298, %cst_77 {dimension_numbers = #tpu.dot_dimension_numbers<[1], [0], [0], [1], [0, 0, 1, 1], [], []>} : vector<2x32xf32>, vector<32x128xf32>, vector<2x128xf32> -> vector<2x128xf32>
    %453 = arith.addf %320, %452 : vector<2x128xf32>
    %454 = arith.negf %453 : vector<2x128xf32>
    %455 = math.exp %454 : vector<2x128xf32>
    %cst_78 = arith.constant 1.000000e+00 : f32
    %456 = vector.broadcast %cst_78 : f32 to vector<2x128xf32>
    %457 = arith.addf %456, %455 : vector<2x128xf32>
    %458 = arith.divf %456, %457 : vector<2x128xf32>
    %459 = math.tanh %453 : vector<2x128xf32>
    %460 = vector.extract_strided_slice %458 {offsets = [0, 0], sizes = [2, 32], strides = [1, 1]} : vector<2x128xf32> to vector<2x32xf32>
    %461 = vector.extract_strided_slice %458 {offsets = [0, 32], sizes = [2, 32], strides = [1, 1]} : vector<2x128xf32> to vector<2x32xf32>
    %462 = vector.extract_strided_slice %459 {offsets = [0, 64], sizes = [2, 32], strides = [1, 1]} : vector<2x128xf32> to vector<2x32xf32>
    %463 = vector.extract_strided_slice %458 {offsets = [0, 96], sizes = [2, 32], strides = [1, 1]} : vector<2x128xf32> to vector<2x32xf32>
    %464 = arith.mulf %461, %449 : vector<2x32xf32>
    %465 = arith.mulf %460, %462 : vector<2x32xf32>
    %466 = arith.addf %464, %465 : vector<2x32xf32>
    %467 = math.tanh %466 : vector<2x32xf32>
    %468 = arith.mulf %463, %467 : vector<2x32xf32>
    %cst_79 = arith.constant dense<0.000000e+00> : vector<2x128xf32>
    %469 = tpu.matmul %468, %298, %cst_79 {dimension_numbers = #tpu.dot_dimension_numbers<[1], [0], [0], [1], [0, 0, 1, 1], [], []>} : vector<2x32xf32>, vector<32x128xf32>, vector<2x128xf32> -> vector<2x128xf32>
    %470 = arith.addf %323, %469 : vector<2x128xf32>
    %471 = arith.negf %470 : vector<2x128xf32>
    %472 = math.exp %471 : vector<2x128xf32>
    %cst_80 = arith.constant 1.000000e+00 : f32
    %473 = vector.broadcast %cst_80 : f32 to vector<2x128xf32>
    %474 = arith.addf %473, %472 : vector<2x128xf32>
    %475 = arith.divf %473, %474 : vector<2x128xf32>
    %476 = math.tanh %470 : vector<2x128xf32>
    %477 = vector.extract_strided_slice %475 {offsets = [0, 0], sizes = [2, 32], strides = [1, 1]} : vector<2x128xf32> to vector<2x32xf32>
    %478 = vector.extract_strided_slice %475 {offsets = [0, 32], sizes = [2, 32], strides = [1, 1]} : vector<2x128xf32> to vector<2x32xf32>
    %479 = vector.extract_strided_slice %476 {offsets = [0, 64], sizes = [2, 32], strides = [1, 1]} : vector<2x128xf32> to vector<2x32xf32>
    %480 = vector.extract_strided_slice %475 {offsets = [0, 96], sizes = [2, 32], strides = [1, 1]} : vector<2x128xf32> to vector<2x32xf32>
    %481 = arith.mulf %478, %466 : vector<2x32xf32>
    %482 = arith.mulf %477, %479 : vector<2x32xf32>
    %483 = arith.addf %481, %482 : vector<2x32xf32>
    %484 = math.tanh %483 : vector<2x32xf32>
    %485 = arith.mulf %480, %484 : vector<2x32xf32>
    %cst_81 = arith.constant dense<0.000000e+00> : vector<2x128xf32>
    %486 = tpu.matmul %485, %298, %cst_81 {dimension_numbers = #tpu.dot_dimension_numbers<[1], [0], [0], [1], [0, 0, 1, 1], [], []>} : vector<2x32xf32>, vector<32x128xf32>, vector<2x128xf32> -> vector<2x128xf32>
    %487 = arith.addf %326, %486 : vector<2x128xf32>
    %488 = arith.negf %487 : vector<2x128xf32>
    %489 = math.exp %488 : vector<2x128xf32>
    %cst_82 = arith.constant 1.000000e+00 : f32
    %490 = vector.broadcast %cst_82 : f32 to vector<2x128xf32>
    %491 = arith.addf %490, %489 : vector<2x128xf32>
    %492 = arith.divf %490, %491 : vector<2x128xf32>
    %493 = math.tanh %487 : vector<2x128xf32>
    %494 = vector.extract_strided_slice %492 {offsets = [0, 0], sizes = [2, 32], strides = [1, 1]} : vector<2x128xf32> to vector<2x32xf32>
    %495 = vector.extract_strided_slice %492 {offsets = [0, 32], sizes = [2, 32], strides = [1, 1]} : vector<2x128xf32> to vector<2x32xf32>
    %496 = vector.extract_strided_slice %493 {offsets = [0, 64], sizes = [2, 32], strides = [1, 1]} : vector<2x128xf32> to vector<2x32xf32>
    %497 = vector.extract_strided_slice %492 {offsets = [0, 96], sizes = [2, 32], strides = [1, 1]} : vector<2x128xf32> to vector<2x32xf32>
    %498 = arith.mulf %495, %483 : vector<2x32xf32>
    %499 = arith.mulf %494, %496 : vector<2x32xf32>
    %500 = arith.addf %498, %499 : vector<2x32xf32>
    %501 = math.tanh %500 : vector<2x32xf32>
    %502 = arith.mulf %497, %501 : vector<2x32xf32>
    %cst_83 = arith.constant dense<0.000000e+00> : vector<2x128xf32>
    %503 = tpu.matmul %502, %298, %cst_83 {dimension_numbers = #tpu.dot_dimension_numbers<[1], [0], [0], [1], [0, 0, 1, 1], [], []>} : vector<2x32xf32>, vector<32x128xf32>, vector<2x128xf32> -> vector<2x128xf32>
    %504 = arith.addf %329, %503 : vector<2x128xf32>
    %505 = arith.negf %504 : vector<2x128xf32>
    %506 = math.exp %505 : vector<2x128xf32>
    %cst_84 = arith.constant 1.000000e+00 : f32
    %507 = vector.broadcast %cst_84 : f32 to vector<2x128xf32>
    %508 = arith.addf %507, %506 : vector<2x128xf32>
    %509 = arith.divf %507, %508 : vector<2x128xf32>
    %510 = math.tanh %504 : vector<2x128xf32>
    %511 = vector.extract_strided_slice %509 {offsets = [0, 0], sizes = [2, 32], strides = [1, 1]} : vector<2x128xf32> to vector<2x32xf32>
    %512 = vector.extract_strided_slice %509 {offsets = [0, 32], sizes = [2, 32], strides = [1, 1]} : vector<2x128xf32> to vector<2x32xf32>
    %513 = vector.extract_strided_slice %510 {offsets = [0, 64], sizes = [2, 32], strides = [1, 1]} : vector<2x128xf32> to vector<2x32xf32>
    %514 = vector.extract_strided_slice %509 {offsets = [0, 96], sizes = [2, 32], strides = [1, 1]} : vector<2x128xf32> to vector<2x32xf32>
    %515 = arith.mulf %512, %500 : vector<2x32xf32>
    %516 = arith.mulf %511, %513 : vector<2x32xf32>
    %517 = arith.addf %515, %516 : vector<2x32xf32>
    %518 = math.tanh %517 : vector<2x32xf32>
    %519 = arith.mulf %514, %518 : vector<2x32xf32>
    %cst_85 = arith.constant dense<0.000000e+00> : vector<2x128xf32>
    %520 = tpu.matmul %519, %298, %cst_85 {dimension_numbers = #tpu.dot_dimension_numbers<[1], [0], [0], [1], [0, 0, 1, 1], [], []>} : vector<2x32xf32>, vector<32x128xf32>, vector<2x128xf32> -> vector<2x128xf32>
    %521 = arith.addf %332, %520 : vector<2x128xf32>
    %522 = arith.negf %521 : vector<2x128xf32>
    %523 = math.exp %522 : vector<2x128xf32>
    %cst_86 = arith.constant 1.000000e+00 : f32
    %524 = vector.broadcast %cst_86 : f32 to vector<2x128xf32>
    %525 = arith.addf %524, %523 : vector<2x128xf32>
    %526 = arith.divf %524, %525 : vector<2x128xf32>
    %527 = math.tanh %521 : vector<2x128xf32>
    %528 = vector.extract_strided_slice %526 {offsets = [0, 0], sizes = [2, 32], strides = [1, 1]} : vector<2x128xf32> to vector<2x32xf32>
    %529 = vector.extract_strided_slice %526 {offsets = [0, 32], sizes = [2, 32], strides = [1, 1]} : vector<2x128xf32> to vector<2x32xf32>
    %530 = vector.extract_strided_slice %527 {offsets = [0, 64], sizes = [2, 32], strides = [1, 1]} : vector<2x128xf32> to vector<2x32xf32>
    %531 = vector.extract_strided_slice %526 {offsets = [0, 96], sizes = [2, 32], strides = [1, 1]} : vector<2x128xf32> to vector<2x32xf32>
    %532 = arith.mulf %529, %517 : vector<2x32xf32>
    %533 = arith.mulf %528, %530 : vector<2x32xf32>
    %534 = arith.addf %532, %533 : vector<2x32xf32>
    %535 = math.tanh %534 : vector<2x32xf32>
    %536 = arith.mulf %531, %535 : vector<2x32xf32>
    %cst_87 = arith.constant dense<0.000000e+00> : vector<2x128xf32>
    %537 = tpu.matmul %536, %298, %cst_87 {dimension_numbers = #tpu.dot_dimension_numbers<[1], [0], [0], [1], [0, 0, 1, 1], [], []>} : vector<2x32xf32>, vector<32x128xf32>, vector<2x128xf32> -> vector<2x128xf32>
    %538 = arith.addf %335, %537 : vector<2x128xf32>
    %539 = arith.negf %538 : vector<2x128xf32>
    %540 = math.exp %539 : vector<2x128xf32>
    %cst_88 = arith.constant 1.000000e+00 : f32
    %541 = vector.broadcast %cst_88 : f32 to vector<2x128xf32>
    %542 = arith.addf %541, %540 : vector<2x128xf32>
    %543 = arith.divf %541, %542 : vector<2x128xf32>
    %544 = math.tanh %538 : vector<2x128xf32>
    %545 = vector.extract_strided_slice %543 {offsets = [0, 0], sizes = [2, 32], strides = [1, 1]} : vector<2x128xf32> to vector<2x32xf32>
    %546 = vector.extract_strided_slice %543 {offsets = [0, 32], sizes = [2, 32], strides = [1, 1]} : vector<2x128xf32> to vector<2x32xf32>
    %547 = vector.extract_strided_slice %544 {offsets = [0, 64], sizes = [2, 32], strides = [1, 1]} : vector<2x128xf32> to vector<2x32xf32>
    %548 = vector.extract_strided_slice %543 {offsets = [0, 96], sizes = [2, 32], strides = [1, 1]} : vector<2x128xf32> to vector<2x32xf32>
    %549 = arith.mulf %546, %534 : vector<2x32xf32>
    %550 = arith.mulf %545, %547 : vector<2x32xf32>
    %551 = arith.addf %549, %550 : vector<2x32xf32>
    %552 = math.tanh %551 : vector<2x32xf32>
    %553 = arith.mulf %548, %552 : vector<2x32xf32>
    %cst_89 = arith.constant dense<0.000000e+00> : vector<2x128xf32>
    %554 = tpu.matmul %553, %298, %cst_89 {dimension_numbers = #tpu.dot_dimension_numbers<[1], [0], [0], [1], [0, 0, 1, 1], [], []>} : vector<2x32xf32>, vector<32x128xf32>, vector<2x128xf32> -> vector<2x128xf32>
    %555 = arith.addf %338, %554 : vector<2x128xf32>
    %556 = arith.negf %555 : vector<2x128xf32>
    %557 = math.exp %556 : vector<2x128xf32>
    %cst_90 = arith.constant 1.000000e+00 : f32
    %558 = vector.broadcast %cst_90 : f32 to vector<2x128xf32>
    %559 = arith.addf %558, %557 : vector<2x128xf32>
    %560 = arith.divf %558, %559 : vector<2x128xf32>
    %561 = math.tanh %555 : vector<2x128xf32>
    %562 = vector.extract_strided_slice %560 {offsets = [0, 0], sizes = [2, 32], strides = [1, 1]} : vector<2x128xf32> to vector<2x32xf32>
    %563 = vector.extract_strided_slice %560 {offsets = [0, 32], sizes = [2, 32], strides = [1, 1]} : vector<2x128xf32> to vector<2x32xf32>
    %564 = vector.extract_strided_slice %561 {offsets = [0, 64], sizes = [2, 32], strides = [1, 1]} : vector<2x128xf32> to vector<2x32xf32>
    %565 = vector.extract_strided_slice %560 {offsets = [0, 96], sizes = [2, 32], strides = [1, 1]} : vector<2x128xf32> to vector<2x32xf32>
    %566 = arith.mulf %563, %551 : vector<2x32xf32>
    %567 = arith.mulf %562, %564 : vector<2x32xf32>
    %568 = arith.addf %566, %567 : vector<2x32xf32>
    %569 = math.tanh %568 : vector<2x32xf32>
    %570 = arith.mulf %565, %569 : vector<2x32xf32>
    %cst_91 = arith.constant dense<0.000000e+00> : vector<2x128xf32>
    %571 = tpu.matmul %570, %298, %cst_91 {dimension_numbers = #tpu.dot_dimension_numbers<[1], [0], [0], [1], [0, 0, 1, 1], [], []>} : vector<2x32xf32>, vector<32x128xf32>, vector<2x128xf32> -> vector<2x128xf32>
    %572 = arith.addf %341, %571 : vector<2x128xf32>
    %573 = arith.negf %572 : vector<2x128xf32>
    %574 = math.exp %573 : vector<2x128xf32>
    %cst_92 = arith.constant 1.000000e+00 : f32
    %575 = vector.broadcast %cst_92 : f32 to vector<2x128xf32>
    %576 = arith.addf %575, %574 : vector<2x128xf32>
    %577 = arith.divf %575, %576 : vector<2x128xf32>
    %578 = math.tanh %572 : vector<2x128xf32>
    %579 = vector.extract_strided_slice %577 {offsets = [0, 0], sizes = [2, 32], strides = [1, 1]} : vector<2x128xf32> to vector<2x32xf32>
    %580 = vector.extract_strided_slice %577 {offsets = [0, 32], sizes = [2, 32], strides = [1, 1]} : vector<2x128xf32> to vector<2x32xf32>
    %581 = vector.extract_strided_slice %578 {offsets = [0, 64], sizes = [2, 32], strides = [1, 1]} : vector<2x128xf32> to vector<2x32xf32>
    %582 = vector.extract_strided_slice %577 {offsets = [0, 96], sizes = [2, 32], strides = [1, 1]} : vector<2x128xf32> to vector<2x32xf32>
    %583 = arith.mulf %580, %568 : vector<2x32xf32>
    %584 = arith.mulf %579, %581 : vector<2x32xf32>
    %585 = arith.addf %583, %584 : vector<2x32xf32>
    %586 = math.tanh %585 : vector<2x32xf32>
    %587 = arith.mulf %582, %586 : vector<2x32xf32>
    %cst_93 = arith.constant dense<0.000000e+00> : vector<2x128xf32>
    %588 = tpu.matmul %587, %298, %cst_93 {dimension_numbers = #tpu.dot_dimension_numbers<[1], [0], [0], [1], [0, 0, 1, 1], [], []>} : vector<2x32xf32>, vector<32x128xf32>, vector<2x128xf32> -> vector<2x128xf32>
    %589 = arith.addf %344, %588 : vector<2x128xf32>
    %590 = arith.negf %589 : vector<2x128xf32>
    %591 = math.exp %590 : vector<2x128xf32>
    %cst_94 = arith.constant 1.000000e+00 : f32
    %592 = vector.broadcast %cst_94 : f32 to vector<2x128xf32>
    %593 = arith.addf %592, %591 : vector<2x128xf32>
    %594 = arith.divf %592, %593 : vector<2x128xf32>
    %595 = math.tanh %589 : vector<2x128xf32>
    %596 = vector.extract_strided_slice %594 {offsets = [0, 0], sizes = [2, 32], strides = [1, 1]} : vector<2x128xf32> to vector<2x32xf32>
    %597 = vector.extract_strided_slice %594 {offsets = [0, 32], sizes = [2, 32], strides = [1, 1]} : vector<2x128xf32> to vector<2x32xf32>
    %598 = vector.extract_strided_slice %595 {offsets = [0, 64], sizes = [2, 32], strides = [1, 1]} : vector<2x128xf32> to vector<2x32xf32>
    %599 = vector.extract_strided_slice %594 {offsets = [0, 96], sizes = [2, 32], strides = [1, 1]} : vector<2x128xf32> to vector<2x32xf32>
    %600 = arith.mulf %597, %585 : vector<2x32xf32>
    %601 = arith.mulf %596, %598 : vector<2x32xf32>
    %602 = arith.addf %600, %601 : vector<2x32xf32>
    %603 = math.tanh %602 : vector<2x32xf32>
    %604 = arith.mulf %599, %603 : vector<2x32xf32>
    %cst_95 = arith.constant dense<0.000000e+00> : vector<2x128xf32>
    %605 = tpu.matmul %604, %298, %cst_95 {dimension_numbers = #tpu.dot_dimension_numbers<[1], [0], [0], [1], [0, 0, 1, 1], [], []>} : vector<2x32xf32>, vector<32x128xf32>, vector<2x128xf32> -> vector<2x128xf32>
    %606 = arith.addf %347, %605 : vector<2x128xf32>
    %607 = arith.negf %606 : vector<2x128xf32>
    %608 = math.exp %607 : vector<2x128xf32>
    %cst_96 = arith.constant 1.000000e+00 : f32
    %609 = vector.broadcast %cst_96 : f32 to vector<2x128xf32>
    %610 = arith.addf %609, %608 : vector<2x128xf32>
    %611 = arith.divf %609, %610 : vector<2x128xf32>
    %612 = math.tanh %606 : vector<2x128xf32>
    %613 = vector.extract_strided_slice %611 {offsets = [0, 0], sizes = [2, 32], strides = [1, 1]} : vector<2x128xf32> to vector<2x32xf32>
    %614 = vector.extract_strided_slice %611 {offsets = [0, 32], sizes = [2, 32], strides = [1, 1]} : vector<2x128xf32> to vector<2x32xf32>
    %615 = vector.extract_strided_slice %612 {offsets = [0, 64], sizes = [2, 32], strides = [1, 1]} : vector<2x128xf32> to vector<2x32xf32>
    %616 = vector.extract_strided_slice %611 {offsets = [0, 96], sizes = [2, 32], strides = [1, 1]} : vector<2x128xf32> to vector<2x32xf32>
    %617 = arith.mulf %614, %602 : vector<2x32xf32>
    %618 = arith.mulf %613, %615 : vector<2x32xf32>
    %619 = arith.addf %617, %618 : vector<2x32xf32>
    %620 = math.tanh %619 : vector<2x32xf32>
    %621 = arith.mulf %616, %620 : vector<2x32xf32>
    %c0_97 = arith.constant 0 : index
    %c0_98 = arith.constant 0 : index
    %622 = vector.load %arg8[%c0_97, %c0_98] : memref<32x1xf32, #tpu.memory_space<vmem>>, vector<32x1xf32>
    %cst_99 = arith.constant dense<0.000000e+00> : vector<2x1xf32>
    %623 = tpu.matmul %621, %622, %cst_99 {dimension_numbers = #tpu.dot_dimension_numbers<[1], [0], [0], [1], [0, 0, 1, 1], [], []>} : vector<2x32xf32>, vector<32x1xf32>, vector<2x1xf32> -> vector<2x1xf32>
    %c0_100 = arith.constant 0 : index
    %c0_101 = arith.constant 0 : index
    %624 = vector.load %arg9[%c0_100, %c0_101] : memref<1x1xf32, #tpu.memory_space<vmem>>, vector<1x1xf32>
    %625 = vector.broadcast %624 : vector<1x1xf32> to vector<2x1xf32>
    %626 = arith.addf %623, %625 : vector<2x1xf32>
    %c0_102 = arith.constant 0 : index
    %c0_103 = arith.constant 0 : index
    %627 = vector.load %arg10[%c0_102, %c0_103] : memref<2x1xf32, #tpu.memory_space<vmem>>, vector<2x1xf32>
    tpu.vector_store %arg10[%c0_102, %c0_103], %626 {strides = array<i32>} : memref<2x1xf32, #tpu.memory_space<vmem>>, vector<2x1xf32>,
    return
  }
  func.func @transform_0(%arg0: i32) -> (i32, i32) {
    %c0_i32 = arith.constant 0 : i32
    %c0_i32_0 = arith.constant 0 : i32
    %c0_i32_1 = arith.constant 0 : i32
    return %c0_i32, %c0_i32_0 : i32, i32
  }
  func.func @transform_1(%arg0: i32) -> (i32, i32) {
    %c0_i32 = arith.constant 0 : i32
    %c0_i32_0 = arith.constant 0 : i32
    %c0_i32_1 = arith.constant 0 : i32
    return %c0_i32, %c0_i32_0 : i32, i32
  }
  func.func @transform_2(%arg0: i32) -> (i32, i32) {
    %c0_i32 = arith.constant 0 : i32
    %c0_i32_0 = arith.constant 0 : i32
    %c0_i32_1 = arith.constant 0 : i32
    return %c0_i32, %c0_i32_0 : i32, i32
  }
  func.func @transform_3(%arg0: i32) -> (i32, i32) {
    %c0_i32 = arith.constant 0 : i32
    %c0_i32_0 = arith.constant 0 : i32
    %c0_i32_1 = arith.constant 0 : i32
    return %c0_i32, %c0_i32_0 : i32, i32
  }
  func.func @transform_4(%arg0: i32) -> (i32, i32) {
    %c0_i32 = arith.constant 0 : i32
    %c0_i32_0 = arith.constant 0 : i32
    %c0_i32_1 = arith.constant 0 : i32
    return %c0_i32, %c0_i32_0 : i32, i32
  }
  func.func @transform_5(%arg0: i32) -> (i32, i32) {
    %c0_i32 = arith.constant 0 : i32
    %c0_i32_0 = arith.constant 0 : i32
    %c0_i32_1 = arith.constant 0 : i32
    return %c0_i32, %c0_i32_0 : i32, i32
  }
  func.func @transform_6(%arg0: i32) -> (i32, i32) {
    %c0_i32 = arith.constant 0 : i32
    %c0_i32_0 = arith.constant 0 : i32
    %c0_i32_1 = arith.constant 0 : i32
    return %c0_i32, %c0_i32_0 : i32, i32
  }
  func.func @transform_7(%arg0: i32) -> (i32, i32) {
    %c0_i32 = arith.constant 0 : i32
    %c0_i32_0 = arith.constant 0 : i32
    %c0_i32_1 = arith.constant 0 : i32
    return %c0_i32, %c0_i32_0 : i32, i32
  }
  func.func @transform_8(%arg0: i32) -> (i32, i32) {
    %c0_i32 = arith.constant 0 : i32
    %c0_i32_0 = arith.constant 0 : i32
    %c0_i32_1 = arith.constant 0 : i32
    return %c0_i32, %c0_i32_0 : i32, i32
  }
  func.func @transform_9(%arg0: i32) -> (i32, i32) {
    %c0_i32 = arith.constant 0 : i32
    %c0_i32_0 = arith.constant 0 : i32
    %c0_i32_1 = arith.constant 0 : i32
    return %c0_i32, %c0_i32_0 : i32, i32
  }
}

</mosaic_0001>

<bundles_post_ra>
// kernel: lstm_model_forward.1
= control target key start
LH: loop header
LB: loop body
LE: loop exit
PB: predicated region body
PF: predicated region fallthrough
CT: control target
= control target key end

     0   :  { %s6863_s0 = inlined_call_operand.vmem [shape: f32[32,4], index: 0, kind: input, shape index: {}]   ;;  %s6864_s1 = inlined_call_operand.vmem [shape: f32[4,128], index: 1, kind: input, shape index: {}]   ;;  %s6865_s2 = inlined_call_operand.vmem [shape: f32[32,128], index: 2, kind: input, shape index: {}]   ;;  %s6866_s3 = inlined_call_operand.vmem [shape: f32[1,128], index: 3, kind: input, shape index: {}]   ;;  %s6867_s4 = inlined_call_operand.vmem [shape: f32[32,128], index: 4, kind: input, shape index: {}]   ;;  %s6868_s5 = inlined_call_operand.hbm [shape: f32[32,128], index: 5, kind: input, shape index: {}]   ;;  %s6869_s6 = inlined_call_operand.vmem [shape: f32[1,128], index: 6, kind: input, shape index: {}]   ;;  %s6870_s7 = inlined_call_operand.vmem [shape: f32[32,1], index: 7, kind: input, shape index: {}]   ;;  %s6871_s8 = inlined_call_operand.<no memory space> [shape: f32[1,1], index: 8, kind: input, shape index: {}]   ;;  %s6872_s9 = inlined_call_operand.vmem [shape: f32[2,1], index: 9, kind: output, shape index: {}]  }
   0x1   :  { %v14_v0 = vstv %s6871_s8 }
   0x2   :  { %15 = vst [vmem:[#allocation2] sm:$0x1] %v14_v0 }
   0x3   :  { %16 = vsyncpa [#allocation4], 0  ;;  %s5864_s11 = smov [#allocation3]  }
   0x4   :  { %s32_s12 = sshll.u32 %s5864_s11, 4  ;;  %s33_s12 = int_to_ptr.vmem [resolvable:$true] %s32_s12 }
   0x5   :  { %s5850_s13 = scalar_lea.vmem %s33_s12, 512  ;;  %p5855_p1 = scmp.lt.s32.totalorder %s33_s12, %s33_s12 }
   0x6   :  { %p5851_p0 = scmp.ne.s32.totalorder %s33_s12, %s5850_s13  ;;  %p5856_p2 = scmp.lt.s32.totalorder %s5850_s13, %s5850_s13 }
   0x8   :  { %p5857_p3 = por %p5856_p2, %p5855_p1 }
   0xa   :  { %p5858_p4 = pnand %p5857_p3, %p5851_p0 }
   0xc   :  { %5861 = shalt.err (!%p5858_p4)
}
   0xd   :  { %s5865_s14 = smov 128   ;;  %s5866_s15 = smov 8  }
   0xe   :  { %38 = dma.hbm_to_vmem [thread:$0]  %s6868_s5, 512, %s33_s12, [#allocation4], %s5865_s14, %s5865_s14, %s5866_s15  }
   0xf   :  { %5862 = dma.done.wait [#allocation4], 512  }
  0x10   :  { %5863 = vsyncadd [#allocation4], 4294966784  ;;  %v5867_v1 = vmov 0.0   ;;  %vm5868_vm0 = vmmov 0   ;;  %vm77_vm1 = vcmask 1043456   ;;  %vm64_vm2 = vcmask 31744  }
  0x11   :  { %5031 = vmatprep.subr.mxu1 %v5867_v1  ;;  %5039 = vmatprep.mubr.msk.f32.mxu1 %vm5868_vm0, %v5867_v1  ;;  %v48_v2 = vld [vmem:[%s6864_s1] sm:$0xf]  ;;  %v5936_v3 = vld [vmem:[%s6865_s2 + $0x18] sm:$0xff]  ;;  %v55_v5 = vld [vmem:[%s6863_s0 + $0x8] sm:$0xff]  ;;  %s5869_s10 = smov 64   ;;  %vm166_vm3 = vcmask 261120  }
  0x12   :  { %v54_v4 = vld [vmem:[%s6863_s0] sm:$0xff]  ;;  %5023 = vmatprep.subr.msk.mxu0 %vm77_vm1, %v48_v2  ;;  %5032 = vmatpush3.msra.mxu1 %v5936_v3  ;;  %v5948_v6 = vld [vmem:[%s6865_s2 + $0x10] sm:$0xff]  ;;  %v5956_v7 = vld [vmem:[%s6865_s2 + $0x8] sm:$0xff]  ;;  %vm4679_vm4 = vcmask 1024  }
  0x13   :  { %5024 = vmatpush3.msk.msra.mxu0 %vm77_vm1, %v48_v2  ;;  %5025 = vmatprep.mubr.msk.f32.mxu0 %vm64_vm2, %v54_v4  ;;  %v5964_v8 = vld [vmem:[%s6865_s2] sm:$0xff]  ;;  %v56_v26 = vld [vmem:[%s6863_s0 + $0x10] sm:$0xff]  ;;  %v57_v27 = vld [vmem:[%s6863_s0 + $0x18] sm:$0xff] }
  0x14   :  { %5033 = vmatprep.subr.mxu1 %v5867_v1  ;;  %5026 = vmatmul.mubr.msk.f32.vlgmr.msra.gmra.mxu0 %vm64_vm2, %v55_v5  ;;  %v5994_v10 = vld [vmem:[%s6866_s3] ss:$0 sm:$0xff]  ;;  %s5870_s3 = smov 32  }
  0x15   :  { %5034 = vmatpush3.msra.mxu1 %v5948_v6  ;;  %5042 = vmatprep.subr.mxu0 %v5867_v1 }
  0x16   :  { %5035 = vmatprep.subr.mxu1 %v5867_v1  ;;  %5043 = vmatpush3.msra.mxu0 %v5936_v3 }
  0x17   :  { %5036 = vmatpush3.msra.mxu1 %v5956_v7  ;;  %5044 = vmatprep.subr.mxu0 %v5867_v1 }
  0x18   :  { %5037 = vmatprep.subr.mxu1 %v5867_v1  ;;  %5045 = vmatpush3.msra.mxu0 %v5948_v6 }
  0x19   :  { %5038 = vmatpush3.msra.mxu1 %v5964_v8  ;;  %5046 = vmatprep.subr.mxu0 %v5867_v1 }
  0x1a   :  { %5040 = vmatmul.mubr.f32.vlgmr.msra.gmra.mxu1 %v5867_v1  ;;  %5047 = vmatpush3.msra.mxu0 %v5956_v7 }
  0x1b   :  { %5048 = vmatprep.subr.mxu0 %v5867_v1  ;;  %5053 = vmatprep.subr.mxu1 %v5867_v1 }
  0x1c   :  { %5049 = vmatpush3.msra.mxu0 %v5964_v8  ;;  %5054 = vmatpush3.msra.mxu1 %v5936_v3 }
  0x1d   :  { %5055 = vmatprep.subr.mxu1 %v5867_v1  ;;  %5061 = vmatprep.mubr.msk.f32.mxu1 %vm5868_vm0, %v5867_v1 }
  0x1e   :  { %5056 = vmatpush3.msra.mxu1 %v5948_v6  ;;  %5064 = vmatprep.subr.mxu0 %v5867_v1 }
  0x1f   :  { %5057 = vmatprep.subr.mxu1 %v5867_v1  ;;  %5028 = vmatprep.mubr.msk.f32.mxu0 %vm64_vm2, %v56_v26 }
  0x20   :  { %5058 = vmatpush3.msra.mxu1 %v5956_v7  ;;  %5029 = vmatmul.mubr.msk.f32.gmra.mxu0 %vm64_vm2, %v57_v27 }
  0x21   :  { %5059 = vmatprep.subr.mxu1 %v5867_v1  ;;  %5050 = vmatprep.mubr.msk.f32.mxu0 %vm5868_vm0, %v5867_v1 }
  0x22   :  { %5060 = vmatpush3.msra.mxu1 %v5964_v8 }
  0x23   :  { %5075 = vmatprep.subr.mxu1 %v5867_v1 }
  0xd4   :  { %v5989_v9 = vpop.f32.mrf.mxu0 }
  0xd6   :  { %v147_v11 = vpop.f32.mrf.mxu0 }
  0xd7   :  { %v5997_v12 = vadd.f32 %v5994_v10, %v147_v11 }
  0xda   :  { %v236_v13 = vpop.f32.mrf.mxu1 }
  0xdb   :  { %v240_v14 = vadd.f32 %v236_v13, %v5997_v12 }
  0xdc   :  { %v5041_v15 = vpop.f32.mrf.mxu1 }
  0xdd   :  { %5577 = vtanh.f32 %v240_v14  ;;  %v4692_v17 = vmul.f32 -1.442695, %v240_v14 }
  0xdf   :  { %5579 = vpow2.f32 %v4692_v17 }
  0xe0   :  { %v6028_v32 = vpop.f32.mrf.mxu0 }
  0xe2   :  { %v6030_v33 = vpop.f32.mrf.mxu0 }
  0xea   :  { %v5578_v16 = vpop.eup %5577 }
  0xeb   :  { %250 = vrot.lane.b32.xlu0 %v5578_v16, %s5869_s10 }
  0xec   :  { %v5580_v18 = vpop.eup %5579 }
  0xed   :  { %v244_v19 = vadd.f32 1.0, %v5580_v18 }
  0xef   :  { %5581 = vrcp.f32 %v244_v19 }
  0xfc   :  { %v5582_v20 = vpop.eup %5581 }
  0xfd   :  { %v248_v23 = vmul.f32 0.0, %v5582_v20 }
 0x15d   :  { %v251_v21 = vpop.permute.xlu0 %250 }
 0x15e   :  { %v253_v22 = vmul.f32 %v5582_v20, %v251_v21 }
 0x160   :  { %255 = vrot.lane.b32.xlu0 %v253_v22, %s5870_s3 }
 0x1d2   :  { %v256_v24 = vpop.permute.xlu0 %255 }
 0x1d3   :  { %v258_v25 = vadd.f32 %v256_v24, %v248_v23 }
 0x1d5   :  { %5583 = vtanh.f32 %v258_v25  ;;  %v352_v45 = vrot.slane %v258_v25, 6 }
 0x1e2   :  { %v5584_v28 = vpop.eup %5583 }
 0x1e3   :  { %261 = vrot.lane.b32.xlu1 %v5584_v28, %s5869_s10 }
 0x255   :  { %v262_v29 = vpop.permute.xlu1 %261 }
 0x256   :  { %v264_v30 = vmul.f32 %v5582_v20, %v262_v29 }
 0x258   :  { %266 = vrot.lane.b32.xlu1 %v264_v30, %s5870_s3 }
 0x2ca   :  { %v6014_v31 = vpop.permute.xlu1 %266 }
 0x2cb   :  { %5051 = vmatmul.mubr.msk.f32.vlgmr.msra.gmra.mxu0 %vm166_vm3, %v6014_v31 }
 0x2cc   :  { %5065 = vmatpush3.msra.mxu0 %v5936_v3  ;;  %5072 = vmatprep.mubr.msk.f32.mxu0 %vm5868_vm0, %v5867_v1 }
 0x2cd   :  { %5066 = vmatprep.subr.mxu0 %v5867_v1 }
 0x2ce   :  { %5067 = vmatpush3.msra.mxu0 %v5948_v6 }
 0x2cf   :  { %5068 = vmatprep.subr.mxu0 %v5867_v1 }
 0x2d0   :  { %5069 = vmatpush3.msra.mxu0 %v5956_v7 }
 0x2d1   :  { %5070 = vmatprep.subr.mxu0 %v5867_v1 }
 0x2d2   :  { %5071 = vmatpush3.msra.mxu0 %v5964_v8 }
 0x2d3   :  { %5086 = vmatprep.subr.mxu0 %v5867_v1 }
 0x38b   :  { %v336_v34 = vpop.f32.mrf.mxu0 }
 0x38c   :  { %v341_v35 = vrot.slane %v336_v34, 6 }
 0x38d   :  { %v5052_v36 = vpop.f32.mrf.mxu0 }
 0x38e   :  { %v343_v37 = vadd.f32 %v341_v35, %v5997_v12 }
 0x390   :  { %5585 = vtanh.f32 %v343_v37  ;;  %v4694_v39 = vmul.f32 -1.442695, %v343_v37 }
 0x392   :  { %5587 = vpow2.f32 %v4694_v39 }
 0x39d   :  { %v5586_v38 = vpop.eup %5585 }
 0x39e   :  { %356 = vrot.lane.b32.xlu0 %v5586_v38, %s5869_s10 }
 0x39f   :  { %v5588_v40 = vpop.eup %5587 }
 0x3a0   :  { %v347_v41 = vadd.f32 1.0, %v5588_v40  ;;  %v6091_v40 = vadd.f32 %v5989_v9, %v5994_v10 }
 0x3a2   :  { %5589 = vrcp.f32 %v347_v41 }
 0x3af   :  { %v5590_v42 = vpop.eup %5589 }
 0x3b0   :  { %v354_v46 = vmul.f32 %v5590_v42, %v352_v45 }
 0x410   :  { %v357_v43 = vpop.permute.xlu0 %356 }
 0x411   :  { %v359_v44 = vmul.f32 %v5590_v42, %v357_v43 }
 0x413   :  { %361 = vrot.lane.b32.xlu1 %v359_v44, %s5870_s3 }
 0x485   :  { %v362_v47 = vpop.permute.xlu1 %361 }
 0x486   :  { %v364_v48 = vadd.f32 %v362_v47, %v354_v46 }
 0x488   :  { %5591 = vtanh.f32 %v364_v48  ;;  %v459_v2 = vrot.slane %v364_v48, 6 }
 0x495   :  { %v5592_v49 = vpop.eup %5591 }
 0x496   :  { %367 = vrot.lane.b32.xlu0 %v5592_v49, %s5869_s10 }
 0x508   :  { %v368_v50 = vpop.permute.xlu0 %367 }
 0x509   :  { %v370_v51 = vmul.f32 %v5590_v42, %v368_v50 }
 0x50b   :  { %v372_v52 = vrot.slane %v370_v51, 2 }
 0x50d   :  { %373 = vrot.lane.b32.xlu1 %v372_v52, %s5870_s3 }
 0x57f   :  { %v6037_v53 = vpop.permute.xlu1 %373 }
 0x580   :  { %5062 = vmatmul.mubr.msk.f32.vlgmr.msra.gmra.mxu1 %vm166_vm3, %v6037_v53 }
 0x581   :  { %5076 = vmatpush3.msra.mxu1 %v5936_v3  ;;  %5083 = vmatprep.mubr.msk.f32.mxu1 %vm5868_vm0, %v5867_v1 }
 0x582   :  { %5077 = vmatprep.subr.mxu1 %v5867_v1 }
 0x583   :  { %5078 = vmatpush3.msra.mxu1 %v5948_v6 }
 0x584   :  { %5079 = vmatprep.subr.mxu1 %v5867_v1 }
 0x585   :  { %5080 = vmatpush3.msra.mxu1 %v5956_v7 }
 0x586   :  { %5081 = vmatprep.subr.mxu1 %v5867_v1 }
 0x587   :  { %5082 = vmatpush3.msra.mxu1 %v5964_v8 }
 0x588   :  { %5097 = vmatprep.subr.mxu1 %v5867_v1 }
 0x640   :  { %v443_v54 = vpop.f32.mrf.mxu1 }
 0x641   :  { %v448_v55 = vrot.slane %v443_v54, 4 }
 0x642   :  { %v5063_v56 = vpop.f32.mrf.mxu1 }
 0x643   :  { %v450_v57 = vadd.f32 %v448_v55, %v5997_v12 }
 0x645   :  { %5593 = vtanh.f32 %v450_v57  ;;  %v4696_v59 = vmul.f32 -1.442695, %v450_v57 }
 0x647   :  { %5595 = vpow2.f32 %v4696_v59 }
 0x652   :  { %v5594_v58 = vpop.eup %5593 }
 0x653   :  { %463 = vrot.lane.b32.xlu0 %v5594_v58, %s5869_s10 }
 0x654   :  { %v5596_v60 = vpop.eup %5595 }
 0x655   :  { %v454_v61 = vadd.f32 1.0, %v5596_v60 }
 0x657   :  { %5597 = vrcp.f32 %v454_v61 }
 0x664   :  { %v5598_v62 = vpop.eup %5597 }
 0x665   :  { %v461_v4 = vmul.f32 %v5598_v62, %v459_v2 }
 0x6c5   :  { %v464_v63 = vpop.permute.xlu0 %463 }
 0x6c6   :  { %v466_v0 = vmul.f32 %v5598_v62, %v464_v63 }
 0x6c8   :  { %468 = vrot.lane.b32.xlu1 %v466_v0, %s5870_s3 }
 0x73a   :  { %v469_v5 = vpop.permute.xlu1 %468 }
 0x73b   :  { %v471_v11 = vadd.f32 %v469_v5, %v461_v4 }
 0x73d   :  { %5599 = vtanh.f32 %v471_v11  ;;  %v566_v29 = vrot.slane %v471_v11, 6 }
 0x74a   :  { %v5600_v13 = vpop.eup %5599 }
 0x74b   :  { %474 = vrot.lane.b32.xlu0 %v5600_v13, %s5869_s10 }
 0x7bd   :  { %v475_v14 = vpop.permute.xlu0 %474 }
 0x7be   :  { %v477_v15 = vmul.f32 %v5598_v62, %v475_v14 }
 0x7c0   :  { %v479_v16 = vrot.slane %v477_v15, 4 }
 0x7c2   :  { %480 = vrot.lane.b32.xlu1 %v479_v16, %s5870_s3 }
 0x834   :  { %v6056_v17 = vpop.permute.xlu1 %480 }
 0x835   :  { %5073 = vmatmul.mubr.msk.f32.vlgmr.msra.gmra.mxu0 %vm166_vm3, %v6056_v17 }
 0x836   :  { %5087 = vmatpush3.msra.mxu0 %v5936_v3  ;;  %5094 = vmatprep.mubr.msk.f32.mxu0 %vm5868_vm0, %v5867_v1 }
 0x837   :  { %5088 = vmatprep.subr.mxu0 %v5867_v1 }
 0x838   :  { %5089 = vmatpush3.msra.mxu0 %v5948_v6 }
 0x839   :  { %5090 = vmatprep.subr.mxu0 %v5867_v1 }
 0x83a   :  { %5091 = vmatpush3.msra.mxu0 %v5956_v7 }
 0x83b   :  { %5092 = vmatprep.subr.mxu0 %v5867_v1 }
 0x83c   :  { %5093 = vmatpush3.msra.mxu0 %v5964_v8 }
 0x83d   :  { %5108 = vmatprep.subr.mxu0 %v5867_v1 }
 0x8f5   :  { %v550_v18 = vpop.f32.mrf.mxu0 }
 0x8f6   :  { %v555_v19 = vrot.slane %v550_v18, 2 }
 0x8f7   :  { %v5074_v20 = vpop.f32.mrf.mxu0 }
 0x8f8   :  { %v557_v21 = vadd.f32 %v555_v19, %v5997_v12 }
 0x8fa   :  { %5601 = vtanh.f32 %v557_v21  ;;  %v4698_v23 = vmul.f32 -1.442695, %v557_v21 }
 0x8fc   :  { %5603 = vpow2.f32 %v4698_v23 }
 0x907   :  { %v5602_v22 = vpop.eup %5601 }
 0x908   :  { %570 = vrot.lane.b32.xlu0 %v5602_v22, %s5869_s10 }
 0x909   :  { %v5604_v24 = vpop.eup %5603 }
 0x90a   :  { %v561_v25 = vadd.f32 1.0, %v5604_v24 }
 0x90c   :  { %5605 = vrcp.f32 %v561_v25 }
 0x919   :  { %v5606_v26 = vpop.eup %5605 }
 0x91a   :  { %v568_v30 = vmul.f32 %v5606_v26, %v566_v29 }
 0x97a   :  { %v571_v27 = vpop.permute.xlu0 %570 }
 0x97b   :  { %v573_v28 = vmul.f32 %v5606_v26, %v571_v27 }
 0x97d   :  { %575 = vrot.lane.b32.xlu1 %v573_v28, %s5870_s3 }
 0x9ef   :  { %v576_v34 = vpop.permute.xlu1 %575 }
 0x9f0   :  { %v578_v35 = vadd.f32 %v576_v34, %v568_v30 }
 0x9f2   :  { %5607 = vtanh.f32 %v578_v35  ;;  %v670_v9 = vrot.slane %v578_v35, 6 }
 0x9ff   :  { %v5608_v12 = vpop.eup %5607 }
 0xa00   :  { %581 = vrot.lane.b32.xlu0 %v5608_v12, %s5869_s10 }
 0xa72   :  { %v582_v36 = vpop.permute.xlu0 %581 }
 0xa73   :  { %v584_v37 = vmul.f32 %v5606_v26, %v582_v36 }
 0xa75   :  { %v586_v38 = vrot.slane %v584_v37, 6 }
 0xa77   :  { %587 = vrot.lane.b32.xlu1 %v586_v38, %s5870_s3 }
 0xae9   :  { %v6075_v39 = vpop.permute.xlu1 %587 }
 0xaea   :  { %5084 = vmatmul.mubr.msk.f32.vlgmr.msra.gmra.mxu1 %vm166_vm3, %v6075_v39 }
 0xaeb   :  { %5098 = vmatpush3.msra.mxu1 %v5936_v3  ;;  %5105 = vmatprep.mubr.msk.f32.mxu1 %vm5868_vm0, %v5867_v1 }
 0xaec   :  { %5099 = vmatprep.subr.mxu1 %v5867_v1 }
 0xaed   :  { %5100 = vmatpush3.msra.mxu1 %v5948_v6 }
 0xaee   :  { %5101 = vmatprep.subr.mxu1 %v5867_v1 }
 0xaef   :  { %5102 = vmatpush3.msra.mxu1 %v5956_v7 }
 0xaf0   :  { %5103 = vmatprep.subr.mxu1 %v5867_v1 }
 0xaf1   :  { %5104 = vmatpush3.msra.mxu1 %v5964_v8 }
 0xaf2   :  { %5119 = vmatprep.subr.mxu1 %v5867_v1 }
 0xbaa   :  { %v657_v41 = vpop.f32.mrf.mxu1 }
 0xbab   :  { %v661_v42 = vadd.f32 %v657_v41, %v6091_v40 }
 0xbac   :  { %v5085_v43 = vpop.f32.mrf.mxu1 }
 0xbad   :  { %5609 = vtanh.f32 %v661_v42  ;;  %v4700_v45 = vmul.f32 -1.442695, %v661_v42 }
 0xbaf   :  { %5611 = vpow2.f32 %v4700_v45 }
 0xbba   :  { %v5610_v44 = vpop.eup %5609 }
 0xbbb   :  { %674 = vrot.lane.b32.xlu0 %v5610_v44, %s5869_s10 }
 0xbbc   :  { %v5612_v46 = vpop.eup %5611 }
 0xbbd   :  { %v665_v47 = vadd.f32 1.0, %v5612_v46 }
 0xbbf   :  { %5613 = vrcp.f32 %v665_v47 }
 0xbcc   :  { %v5614_v48 = vpop.eup %5613 }
 0xbcd   :  { %v672_v51 = vmul.f32 %v5614_v48, %v670_v9 }
 0xc2d   :  { %v675_v49 = vpop.permute.xlu0 %674 }
 0xc2e   :  { %v677_v50 = vmul.f32 %v5614_v48, %v675_v49 }
 0xc30   :  { %679 = vrot.lane.b32.xlu1 %v677_v50, %s5870_s3 }
 0xca2   :  { %v680_v52 = vpop.permute.xlu1 %679 }
 0xca3   :  { %v682_v54 = vadd.f32 %v680_v52, %v672_v51 }
 0xca5   :  { %5615 = vtanh.f32 %v682_v54  ;;  %v776_v14 = vrot.slane %v682_v54, 6 }
 0xcb2   :  { %v5616_v55 = vpop.eup %5615 }
 0xcb3   :  { %685 = vrot.lane.b32.xlu0 %v5616_v55, %s5869_s10 }
 0xd25   :  { %v686_v56 = vpop.permute.xlu0 %685 }
 0xd26   :  { %v688_v57 = vmul.f32 %v5614_v48, %v686_v56 }
 0xd28   :  { %690 = vrot.lane.b32.xlu1 %v688_v57, %s5870_s3 }
 0xd9a   :  { %v6098_v58 = vpop.permute.xlu1 %690 }
 0xd9b   :  { %5095 = vmatmul.mubr.msk.f32.vlgmr.msra.gmra.mxu0 %vm166_vm3, %v6098_v58 }
 0xd9c   :  { %5109 = vmatpush3.msra.mxu0 %v5936_v3  ;;  %5116 = vmatprep.mubr.msk.f32.mxu0 %vm5868_vm0, %v5867_v1 }
 0xd9d   :  { %5110 = vmatprep.subr.mxu0 %v5867_v1 }
 0xd9e   :  { %5111 = vmatpush3.msra.mxu0 %v5948_v6 }
 0xd9f   :  { %5112 = vmatprep.subr.mxu0 %v5867_v1 }
 0xda0   :  { %5113 = vmatpush3.msra.mxu0 %v5956_v7 }
 0xda1   :  { %5114 = vmatprep.subr.mxu0 %v5867_v1 }
 0xda2   :  { %5115 = vmatpush3.msra.mxu0 %v5964_v8 }
 0xda3   :  { %5130 = vmatprep.subr.mxu0 %v5867_v1 }
 0xe5b   :  { %v760_v59 = vpop.f32.mrf.mxu0 }
 0xe5c   :  { %v765_v60 = vrot.slane %v760_v59, 6 }
 0xe5d   :  { %v5096_v61 = vpop.f32.mrf.mxu0 }
 0xe5e   :  { %v767_v62 = vadd.f32 %v765_v60, %v6091_v40 }
 0xe60   :  { %5617 = vtanh.f32 %v767_v62  ;;  %v4702_v0 = vmul.f32 -1.442695, %v767_v62 }
 0xe62   :  { %5619 = vpow2.f32 %v4702_v0 }
 0xe6d   :  { %v5618_v63 = vpop.eup %5617 }
 0xe6e   :  { %780 = vrot.lane.b32.xlu0 %v5618_v63, %s5869_s10 }
 0xe6f   :  { %v5620_v2 = vpop.eup %5619 }
 0xe70   :  { %v771_v4 = vadd.f32 1.0, %v5620_v2 }
 0xe72   :  { %5621 = vrcp.f32 %v771_v4 }
 0xe7f   :  { %v5622_v5 = vpop.eup %5621 }
 0xe80   :  { %v778_v15 = vmul.f32 %v5622_v5, %v776_v14 }
 0xee0   :  { %v781_v11 = vpop.permute.xlu0 %780 }
 0xee1   :  { %v783_v13 = vmul.f32 %v5622_v5, %v781_v11  ;;  %v6171_v11 = vadd.f32 %v5994_v10, %v6030_v33 }
 0xee3   :  { %785 = vrot.lane.b32.xlu1 %v783_v13, %s5870_s3 }
 0xf55   :  { %v786_v16 = vpop.permute.xlu1 %785 }
 0xf56   :  { %v788_v18 = vadd.f32 %v786_v16, %v778_v15 }
 0xf58   :  { %5623 = vtanh.f32 %v788_v18  ;;  %v883_v37 = vrot.slane %v788_v18, 6 }
 0xf65   :  { %v5624_v19 = vpop.eup %5623 }
 0xf66   :  { %791 = vrot.lane.b32.xlu0 %v5624_v19, %s5869_s10 }
 0xfd8   :  { %v792_v20 = vpop.permute.xlu0 %791 }
 0xfd9   :  { %v794_v21 = vmul.f32 %v5622_v5, %v792_v20 }
 0xfdb   :  { %v796_v22 = vrot.slane %v794_v21, 2 }
 0xfdd   :  { %797 = vrot.lane.b32.xlu1 %v796_v22, %s5870_s3 }
0x104f   :  { %v6117_v23 = vpop.permute.xlu1 %797 }
0x1050   :  { %5106 = vmatmul.mubr.msk.f32.vlgmr.msra.gmra.mxu1 %vm166_vm3, %v6117_v23 }
0x1051   :  { %5120 = vmatpush3.msra.mxu1 %v5936_v3  ;;  %5127 = vmatprep.mubr.msk.f32.mxu1 %vm5868_vm0, %v5867_v1 }
0x1052   :  { %5121 = vmatprep.subr.mxu1 %v5867_v1 }
0x1053   :  { %5122 = vmatpush3.msra.mxu1 %v5948_v6 }
0x1054   :  { %5123 = vmatprep.subr.mxu1 %v5867_v1 }
0x1055   :  { %5124 = vmatpush3.msra.mxu1 %v5956_v7 }
0x1056   :  { %5125 = vmatprep.subr.mxu1 %v5867_v1 }
0x1057   :  { %5126 = vmatpush3.msra.mxu1 %v5964_v8 }
0x1058   :  { %5141 = vmatprep.subr.mxu1 %v5867_v1 }
0x1110   :  { %v867_v24 = vpop.f32.mrf.mxu1 }
0x1111   :  { %v872_v25 = vrot.slane %v867_v24, 4 }
0x1112   :  { %v5107_v26 = vpop.f32.mrf.mxu1 }
0x1113   :  { %v874_v27 = vadd.f32 %v872_v25, %v6091_v40 }
0x1115   :  { %5625 = vtanh.f32 %v874_v27  ;;  %v4704_v29 = vmul.f32 -1.442695, %v874_v27 }
0x1117   :  { %5627 = vpow2.f32 %v4704_v29 }
0x1122   :  { %v5626_v28 = vpop.eup %5625 }
0x1123   :  { %887 = vrot.lane.b32.xlu0 %v5626_v28, %s5869_s10 }
0x1124   :  { %v5628_v30 = vpop.eup %5627 }
0x1125   :  { %v878_v34 = vadd.f32 1.0, %v5628_v30 }
0x1127   :  { %5629 = vrcp.f32 %v878_v34 }
0x1134   :  { %v5630_v35 = vpop.eup %5629 }
0x1135   :  { %v885_v38 = vmul.f32 %v5630_v35, %v883_v37 }
0x1195   :  { %v888_v12 = vpop.permute.xlu0 %887 }
0x1196   :  { %v890_v36 = vmul.f32 %v5630_v35, %v888_v12 }
0x1198   :  { %892 = vrot.lane.b32.xlu1 %v890_v36, %s5870_s3 }
0x120a   :  { %v893_v41 = vpop.permute.xlu1 %892 }
0x120b   :  { %v895_v42 = vadd.f32 %v893_v41, %v885_v38 }
0x120d   :  { %5631 = vtanh.f32 %v895_v42  ;;  %v990_v60 = vrot.slane %v895_v42, 6 }
0x121a   :  { %v5632_v43 = vpop.eup %5631 }
0x121b   :  { %898 = vrot.lane.b32.xlu0 %v5632_v43, %s5869_s10 }
0x128d   :  { %v899_v44 = vpop.permute.xlu0 %898 }
0x128e   :  { %v901_v45 = vmul.f32 %v5630_v35, %v899_v44 }
0x1290   :  { %v903_v46 = vrot.slane %v901_v45, 4 }
0x1292   :  { %904 = vrot.lane.b32.xlu1 %v903_v46, %s5870_s3 }
0x1304   :  { %v6136_v47 = vpop.permute.xlu1 %904 }
0x1305   :  { %5117 = vmatmul.mubr.msk.f32.vlgmr.msra.gmra.mxu0 %vm166_vm3, %v6136_v47 }
0x1306   :  { %5131 = vmatpush3.msra.mxu0 %v5936_v3  ;;  %5138 = vmatprep.mubr.msk.f32.mxu0 %vm5868_vm0, %v5867_v1 }
0x1307   :  { %5132 = vmatprep.subr.mxu0 %v5867_v1 }
0x1308   :  { %5133 = vmatpush3.msra.mxu0 %v5948_v6 }
0x1309   :  { %5134 = vmatprep.subr.mxu0 %v5867_v1 }
0x130a   :  { %5135 = vmatpush3.msra.mxu0 %v5956_v7 }
0x130b   :  { %5136 = vmatprep.subr.mxu0 %v5867_v1 }
0x130c   :  { %5137 = vmatpush3.msra.mxu0 %v5964_v8 }
0x130d   :  { %5152 = vmatprep.subr.mxu0 %v5867_v1 }
0x13c5   :  { %v974_v48 = vpop.f32.mrf.mxu0 }
0x13c6   :  { %v979_v49 = vrot.slane %v974_v48, 2 }
0x13c7   :  { %v5118_v50 = vpop.f32.mrf.mxu0 }
0x13c8   :  { %v981_v9 = vadd.f32 %v979_v49, %v6091_v40 }
0x13ca   :  { %5633 = vtanh.f32 %v981_v9  ;;  %v4706_v52 = vmul.f32 -1.442695, %v981_v9 }
0x13cc   :  { %5635 = vpow2.f32 %v4706_v52 }
0x13d7   :  { %v5634_v51 = vpop.eup %5633 }
0x13d8   :  { %994 = vrot.lane.b32.xlu0 %v5634_v51, %s5869_s10 }
0x13d9   :  { %v5636_v54 = vpop.eup %5635 }
0x13da   :  { %v985_v55 = vadd.f32 1.0, %v5636_v54 }
0x13dc   :  { %5637 = vrcp.f32 %v985_v55 }
0x13e9   :  { %v5638_v56 = vpop.eup %5637 }
0x13ea   :  { %v992_v61 = vmul.f32 %v5638_v56, %v990_v60 }
0x144a   :  { %v995_v57 = vpop.permute.xlu0 %994 }
0x144b   :  { %v997_v59 = vmul.f32 %v5638_v56, %v995_v57 }
0x144d   :  { %999 = vrot.lane.b32.xlu1 %v997_v59, %s5870_s3 }
0x14bf   :  { %v1000_v62 = vpop.permute.xlu1 %999 }
0x14c0   :  { %v1002_v63 = vadd.f32 %v1000_v62, %v992_v61 }
0x14c2   :  { %5639 = vtanh.f32 %v1002_v63  ;;  %v1094_v33 = vrot.slane %v1002_v63, 6 }
0x14cf   :  { %v5640_v40 = vpop.eup %5639 }
0x14d0   :  { %1005 = vrot.lane.b32.xlu0 %v5640_v40, %s5869_s10 }
0x1542   :  { %v1006_v0 = vpop.permute.xlu0 %1005 }
0x1543   :  { %v1008_v2 = vmul.f32 %v5638_v56, %v1006_v0 }
0x1545   :  { %v1010_v4 = vrot.slane %v1008_v2, 6 }
0x1547   :  { %1011 = vrot.lane.b32.xlu1 %v1010_v4, %s5870_s3 }
0x15b9   :  { %v6155_v5 = vpop.permute.xlu1 %1011 }
0x15ba   :  { %5128 = vmatmul.mubr.msk.f32.vlgmr.msra.gmra.mxu1 %vm166_vm3, %v6155_v5 }
0x15bb   :  { %5142 = vmatpush3.msra.mxu1 %v5936_v3  ;;  %5149 = vmatprep.mubr.msk.f32.mxu1 %vm5868_vm0, %v5867_v1 }
0x15bc   :  { %5143 = vmatprep.subr.mxu1 %v5867_v1 }
0x15bd   :  { %5144 = vmatpush3.msra.mxu1 %v5948_v6 }
0x15be   :  { %5145 = vmatprep.subr.mxu1 %v5867_v1 }
0x15bf   :  { %5146 = vmatpush3.msra.mxu1 %v5956_v7 }
0x15c0   :  { %5147 = vmatprep.subr.mxu1 %v5867_v1 }
0x15c1   :  { %5148 = vmatpush3.msra.mxu1 %v5964_v8 }
0x15c2   :  { %5163 = vmatprep.subr.mxu1 %v5867_v1 }
0x167a   :  { %v1081_v13 = vpop.f32.mrf.mxu1 }
0x167b   :  { %v1085_v14 = vadd.f32 %v1081_v13, %v6171_v11 }
0x167c   :  { %v5129_v15 = vpop.f32.mrf.mxu1 }
0x167d   :  { %5641 = vtanh.f32 %v1085_v14  ;;  %v4708_v18 = vmul.f32 -1.442695, %v1085_v14 }
0x167f   :  { %5643 = vpow2.f32 %v4708_v18 }
0x168a   :  { %v5642_v16 = vpop.eup %5641 }
0x168b   :  { %1098 = vrot.lane.b32.xlu0 %v5642_v16, %s5869_s10 }
0x168c   :  { %v5644_v19 = vpop.eup %5643 }
0x168d   :  { %v1089_v20 = vadd.f32 1.0, %v5644_v19 }
0x168f   :  { %5645 = vrcp.f32 %v1089_v20 }
0x169c   :  { %v5646_v21 = vpop.eup %5645 }
0x169d   :  { %v1096_v25 = vmul.f32 %v5646_v21, %v1094_v33 }
0x16fd   :  { %v1099_v22 = vpop.permute.xlu0 %1098 }
0x16fe   :  { %v1101_v24 = vmul.f32 %v5646_v21, %v1099_v22 }
0x1700   :  { %1103 = vrot.lane.b32.xlu1 %v1101_v24, %s5870_s3 }
0x1772   :  { %v1104_v26 = vpop.permute.xlu1 %1103 }
0x1773   :  { %v1106_v27 = vadd.f32 %v1104_v26, %v1096_v25 }
0x1775   :  { %5647 = vtanh.f32 %v1106_v27  ;;  %v1200_v48 = vrot.slane %v1106_v27, 6 }
0x1782   :  { %v5648_v28 = vpop.eup %5647 }
0x1783   :  { %1109 = vrot.lane.b32.xlu0 %v5648_v28, %s5869_s10 }
0x17f5   :  { %v1110_v29 = vpop.permute.xlu0 %1109 }
0x17f6   :  { %v1112_v30 = vmul.f32 %v5646_v21, %v1110_v29 }
0x17f8   :  { %1114 = vrot.lane.b32.xlu1 %v1112_v30, %s5870_s3 }
0x186a   :  { %v6178_v34 = vpop.permute.xlu1 %1114 }
0x186b   :  { %5139 = vmatmul.mubr.msk.f32.vlgmr.msra.gmra.mxu0 %vm166_vm3, %v6178_v34 }
0x186c   :  { %5153 = vmatpush3.msra.mxu0 %v5936_v3  ;;  %5160 = vmatprep.mubr.msk.f32.mxu0 %vm5868_vm0, %v5867_v1 }
0x186d   :  { %5154 = vmatprep.subr.mxu0 %v5867_v1 }
0x186e   :  { %5155 = vmatpush3.msra.mxu0 %v5948_v6 }
0x186f   :  { %5156 = vmatprep.subr.mxu0 %v5867_v1 }
0x1870   :  { %5157 = vmatpush3.msra.mxu0 %v5956_v7 }
0x1871   :  { %5158 = vmatprep.subr.mxu0 %v5867_v1 }
0x1872   :  { %5159 = vmatpush3.msra.mxu0 %v5964_v8 }
0x1873   :  { %5174 = vmatprep.subr.mxu0 %v5867_v1 }
0x192b   :  { %v1184_v35 = vpop.f32.mrf.mxu0 }
0x192c   :  { %v1189_v12 = vrot.slane %v1184_v35, 6 }
0x192d   :  { %v5140_v36 = vpop.f32.mrf.mxu0 }
0x192e   :  { %v1191_v37 = vadd.f32 %v1189_v12, %v6171_v11 }
0x1930   :  { %5649 = vtanh.f32 %v1191_v37  ;;  %v4710_v41 = vmul.f32 -1.442695, %v1191_v37 }
0x1932   :  { %5651 = vpow2.f32 %v4710_v41 }
0x193d   :  { %v5650_v38 = vpop.eup %5649 }
0x193e   :  { %1204 = vrot.lane.b32.xlu0 %v5650_v38, %s5869_s10 }
0x193f   :  { %v5652_v42 = vpop.eup %5651 }
0x1940   :  { %v1195_v43 = vadd.f32 1.0, %v5652_v42 }
0x1942   :  { %5653 = vrcp.f32 %v1195_v43 }
0x194f   :  { %v5654_v44 = vpop.eup %5653 }
0x1950   :  { %v1202_v49 = vmul.f32 %v5654_v44, %v1200_v48 }
0x19b0   :  { %v1205_v45 = vpop.permute.xlu0 %1204 }
0x19b1   :  { %v1207_v46 = vmul.f32 %v5654_v44, %v1205_v45 }
0x19b3   :  { %1209 = vrot.lane.b32.xlu1 %v1207_v46, %s5870_s3 }
0x1a25   :  { %v1210_v50 = vpop.permute.xlu1 %1209 }
0x1a26   :  { %v1212_v9 = vadd.f32 %v1210_v50, %v1202_v49 }
0x1a28   :  { %5655 = vtanh.f32 %v1212_v9  ;;  %v1307_v14 = vrot.slane %v1212_v9, 6 }
0x1a35   :  { %v5656_v51 = vpop.eup %5655 }
0x1a36   :  { %1215 = vrot.lane.b32.xlu0 %v5656_v51, %s5869_s10 }
0x1aa8   :  { %v1216_v52 = vpop.permute.xlu0 %1215 }
0x1aa9   :  { %v1218_v54 = vmul.f32 %v5654_v44, %v1216_v52 }
0x1aab   :  { %v1220_v55 = vrot.slane %v1218_v54, 2 }
0x1aad   :  { %1221 = vrot.lane.b32.xlu1 %v1220_v55, %s5870_s3 }
0x1b1f   :  { %v6197_v56 = vpop.permute.xlu1 %1221 }
0x1b20   :  { %5150 = vmatmul.mubr.msk.f32.vlgmr.msra.gmra.mxu1 %vm166_vm3, %v6197_v56 }
0x1b21   :  { %5164 = vmatpush3.msra.mxu1 %v5936_v3  ;;  %5171 = vmatprep.mubr.msk.f32.mxu1 %vm5868_vm0, %v5867_v1 }
0x1b22   :  { %5165 = vmatprep.subr.mxu1 %v5867_v1 }
0x1b23   :  { %5166 = vmatpush3.msra.mxu1 %v5948_v6 }
0x1b24   :  { %5167 = vmatprep.subr.mxu1 %v5867_v1 }
0x1b25   :  { %5168 = vmatpush3.msra.mxu1 %v5956_v7 }
0x1b26   :  { %5169 = vmatprep.subr.mxu1 %v5867_v1 }
0x1b27   :  { %5170 = vmatpush3.msra.mxu1 %v5964_v8 }
0x1b28   :  { %5185 = vmatprep.subr.mxu1 %v5867_v1 }
0x1be0   :  { %v1291_v57 = vpop.f32.mrf.mxu1 }
0x1be1   :  { %v1296_v59 = vrot.slane %v1291_v57, 4 }
0x1be2   :  { %v5151_v60 = vpop.f32.mrf.mxu1 }
0x1be3   :  { %v1298_v61 = vadd.f32 %v1296_v59, %v6171_v11 }
0x1be5   :  { %5657 = vtanh.f32 %v1298_v61  ;;  %v4712_v63 = vmul.f32 -1.442695, %v1298_v61 }
0x1be7   :  { %5659 = vpow2.f32 %v4712_v63 }
0x1bf2   :  { %v5658_v62 = vpop.eup %5657 }
0x1bf3   :  { %1311 = vrot.lane.b32.xlu0 %v5658_v62, %s5869_s10 }
0x1bf4   :  { %v5660_v40 = vpop.eup %5659 }
0x1bf5   :  { %v1302_v0 = vadd.f32 1.0, %v5660_v40  ;;  %v5833_v40 = vld [vmem:[%s6865_s2 + $0x18] sm:$0xff] }
0x1bf7   :  { %5661 = vrcp.f32 %v1302_v0  ;;  %v5834_v0 = vld [vmem:[%s6865_s2 + $0x10] sm:$0xff] }
0x1c04   :  { %v5662_v2 = vpop.eup %5661 }
0x1c05   :  { %v1309_v15 = vmul.f32 %v5662_v2, %v1307_v14 }
0x1c65   :  { %v1312_v4 = vpop.permute.xlu0 %1311 }
0x1c66   :  { %v1314_v13 = vmul.f32 %v5662_v2, %v1312_v4  ;;  %v5836_v4 = vld [vmem:[%s6865_s2] sm:$0xff] }
0x1c68   :  { %1316 = vrot.lane.b32.xlu1 %v1314_v13, %s5870_s3 }
0x1cda   :  { %v1317_v16 = vpop.permute.xlu1 %1316 }
0x1cdb   :  { %v1319_v18 = vadd.f32 %v1317_v16, %v1309_v15 }
0x1cdd   :  { %5663 = vtanh.f32 %v1319_v18  ;;  %v1414_v38 = vrot.slane %v1319_v18, 6 }
0x1cea   :  { %v5664_v19 = vpop.eup %5663 }
0x1ceb   :  { %1322 = vrot.lane.b32.xlu0 %v5664_v19, %s5869_s10 }
0x1d5d   :  { %v1323_v20 = vpop.permute.xlu0 %1322 }
0x1d5e   :  { %v1325_v21 = vmul.f32 %v5662_v2, %v1323_v20  ;;  %v5835_v2 = vld [vmem:[%s6865_s2 + $0x8] sm:$0xff] }
0x1d60   :  { %v1327_v22 = vrot.slane %v1325_v21, 4 }
0x1d62   :  { %1328 = vrot.lane.b32.xlu1 %v1327_v22, %s5870_s3 }
0x1dd4   :  { %v6216_v24 = vpop.permute.xlu1 %1328 }
0x1dd5   :  { %5161 = vmatmul.mubr.msk.f32.vlgmr.msra.gmra.mxu0 %vm166_vm3, %v6216_v24 }
0x1dd6   :  { %5175 = vmatpush3.msra.mxu0 %v5936_v3  ;;  %5182 = vmatprep.mubr.msk.f32.mxu0 %vm5868_vm0, %v5867_v1 }
0x1dd7   :  { %5176 = vmatprep.subr.mxu0 %v5867_v1 }
0x1dd8   :  { %5177 = vmatpush3.msra.mxu0 %v5948_v6 }
0x1dd9   :  { %5178 = vmatprep.subr.mxu0 %v5867_v1 }
0x1dda   :  { %5179 = vmatpush3.msra.mxu0 %v5956_v7 }
0x1ddb   :  { %5180 = vmatprep.subr.mxu0 %v5867_v1 }
0x1ddc   :  { %5181 = vmatpush3.msra.mxu0 %v5964_v8 }
0x1ddd   :  { %5196 = vmatprep.subr.mxu0 %v5867_v1 }
0x1e95   :  { %v1398_v33 = vpop.f32.mrf.mxu0 }
0x1e96   :  { %v1403_v25 = vrot.slane %v1398_v33, 2 }
0x1e97   :  { %v5162_v26 = vpop.f32.mrf.mxu0 }
0x1e98   :  { %v1405_v27 = vadd.f32 %v1403_v25, %v6171_v11 }
0x1e9a   :  { %5665 = vtanh.f32 %v1405_v27  ;;  %v4714_v29 = vmul.f32 -1.442695, %v1405_v27 }
0x1e9c   :  { %5667 = vpow2.f32 %v4714_v29 }
0x1ea7   :  { %v5666_v28 = vpop.eup %5665 }
0x1ea8   :  { %1418 = vrot.lane.b32.xlu0 %v5666_v28, %s5869_s10 }
0x1ea9   :  { %v5668_v30 = vpop.eup %5667 }
0x1eaa   :  { %v1409_v35 = vadd.f32 1.0, %v5668_v30 }
0x1eac   :  { %5669 = vrcp.f32 %v1409_v35 }
0x1eb9   :  { %v5670_v12 = vpop.eup %5669 }
0x1eba   :  { %v1416_v41 = vmul.f32 %v5670_v12, %v1414_v38 }
0x1f1a   :  { %v1419_v36 = vpop.permute.xlu0 %1418 }
0x1f1b   :  { %v1421_v37 = vmul.f32 %v5670_v12, %v1419_v36 }
0x1f1d   :  { %1423 = vrot.lane.b32.xlu1 %v1421_v37, %s5870_s3  ;;  %v6291_v37 = vld [vmem:[%s6867_s4 + $0x18] sm:$0xff] }
0x1f8f   :  { %v1424_v42 = vpop.permute.xlu1 %1423 }
0x1f90   :  { %v1426_v43 = vadd.f32 %v1424_v42, %v1416_v41  ;;  %v6300_v41 = vld [vmem:[%s6867_s4 + $0x10] sm:$0xff]  ;;  %v6309_v42 = vld [vmem:[%s6867_s4 + $0x8] sm:$0xff] }
0x1f92   :  { %5671 = vtanh.f32 %v1426_v43 }
0x1f9f   :  { %v5672_v11 = vpop.eup %5671 }
0x1fa0   :  { %1429 = vrot.lane.b32.xlu0 %v5672_v11, %s5869_s10 }
0x2012   :  { %v1430_v44 = vpop.permute.xlu0 %1429 }
0x2013   :  { %v1432_v45 = vmul.f32 %v5670_v12, %v1430_v44 }
0x2015   :  { %v1434_v46 = vrot.slane %v1432_v45, 6 }
0x2017   :  { %1435 = vrot.lane.b32.xlu1 %v1434_v46, %s5870_s3 }
0x2089   :  { %v6235_v48 = vpop.permute.xlu1 %1435 }
0x208a   :  { %5172 = vmatmul.mubr.msk.f32.vlgmr.msra.gmra.mxu1 %vm166_vm3, %v6235_v48 }
0x208b   :  { %5186 = vmatpush3.msra.mxu1 %v5936_v3  ;;  %5193 = vmatprep.mubr.msk.f32.mxu1 %vm5868_vm0, %v5867_v1  ;;  %v6251_v3 = vadd.f32 %v6028_v32, %v5994_v10  ;;  %v1518_v10 = vrot.slane %v1426_v43, 6  ;;  %v6316_v43 = vld [vmem:[%s6867_s4] sm:$0xff] }
0x208c   :  { %5187 = vmatprep.subr.mxu1 %v5867_v1 }
0x208d   :  { %5188 = vmatpush3.msra.mxu1 %v5948_v6 }
0x208e   :  { %5189 = vmatprep.subr.mxu1 %v5867_v1 }
0x208f   :  { %5190 = vmatpush3.msra.mxu1 %v5956_v7 }
0x2090   :  { %5191 = vmatprep.subr.mxu1 %v5867_v1 }
0x2091   :  { %5192 = vmatpush3.msra.mxu1 %v5964_v8 }
0x2092   :  { %5207 = vmatprep.subr.mxu1 %v5867_v1 }
0x214a   :  { %v1505_v49 = vpop.f32.mrf.mxu1 }
0x214b   :  { %v1509_v50 = vadd.f32 %v1505_v49, %v6251_v3 }
0x214c   :  { %v5173_v9 = vpop.f32.mrf.mxu1 }
0x214d   :  { %5673 = vtanh.f32 %v1509_v50  ;;  %v4716_v51 = vmul.f32 -1.442695, %v1509_v50 }
0x214f   :  { %5675 = vpow2.f32 %v4716_v51 }
0x215a   :  { %v5674_v6 = vpop.eup %5673 }
0x215b   :  { %1522 = vrot.lane.b32.xlu0 %v5674_v6, %s5869_s10 }
0x215c   :  { %v5676_v7 = vpop.eup %5675 }
0x215d   :  { %v1513_v52 = vadd.f32 1.0, %v5676_v7 }
0x215f   :  { %5677 = vrcp.f32 %v1513_v52 }
0x216c   :  { %v5678_v8 = vpop.eup %5677 }
0x216d   :  { %v1520_v32 = vmul.f32 %v5678_v8, %v1518_v10 }
0x21cd   :  { %v1523_v54 = vpop.permute.xlu0 %1522 }
0x21ce   :  { %v1525_v55 = vmul.f32 %v5678_v8, %v1523_v54 }
0x21d0   :  { %1527 = vrot.lane.b32.xlu1 %v1525_v55, %s5870_s3 }
0x2242   :  { %v1528_v57 = vpop.permute.xlu1 %1527 }
0x2243   :  { %v1530_v59 = vadd.f32 %v1528_v57, %v1520_v32 }
0x2245   :  { %5679 = vtanh.f32 %v1530_v59  ;;  %v1624_v26 = vrot.slane %v1530_v59, 6 }
0x2252   :  { %v5680_v60 = vpop.eup %5679 }
0x2253   :  { %1533 = vrot.lane.b32.xlu0 %v5680_v60, %s5869_s10 }
0x22c5   :  { %v1534_v61 = vpop.permute.xlu0 %1533 }
0x22c6   :  { %v1536_v62 = vmul.f32 %v5678_v8, %v1534_v61 }
0x22c8   :  { %1538 = vrot.lane.b32.xlu1 %v1536_v62, %s5870_s3 }
0x233a   :  { %v6258_v63 = vpop.permute.xlu1 %1538 }
0x233b   :  { %5183 = vmatmul.mubr.msk.f32.vlgmr.msra.gmra.mxu0 %vm166_vm3, %v6258_v63 }
0x233c   :  { %5197 = vmatpush3.msra.mxu0 %v5833_v40  ;;  %5204 = vmatprep.mubr.msk.f32.mxu0 %vm5868_vm0, %v5867_v1 }
0x233d   :  { %5198 = vmatprep.subr.mxu0 %v5867_v1 }
0x233e   :  { %5199 = vmatpush3.msra.mxu0 %v5834_v0 }
0x233f   :  { %5200 = vmatprep.subr.mxu0 %v5867_v1 }
0x2340   :  { %5201 = vmatpush3.msra.mxu0 %v5835_v2 }
0x2341   :  { %5202 = vmatprep.subr.mxu0 %v5867_v1 }
0x2342   :  { %5203 = vmatpush3.msra.mxu0 %v5836_v4 }
0x2343   :  { %5218 = vmatprep.subr.mxu0 %v5867_v1 }
0x23fb   :  { %v1608_v13 = vpop.f32.mrf.mxu0 }
0x23fc   :  { %v1613_v14 = vrot.slane %v1608_v13, 6 }
0x23fd   :  { %v5184_v15 = vpop.f32.mrf.mxu0 }
0x23fe   :  { %v1615_v16 = vadd.f32 %v1613_v14, %v6251_v3  ;;  %v6429_v14 = vld [vmem:[#allocation3 + $0x18] sm:$0xff] }
0x2400   :  { %5681 = vtanh.f32 %v1615_v16  ;;  %v4718_v19 = vmul.f32 -1.442695, %v1615_v16  ;;  %v6433_v16 = vld [vmem:[#allocation3 + $0x10] sm:$0xff] }
0x2402   :  { %5683 = vpow2.f32 %v4718_v19  ;;  %v6447_v19 = vld [vmem:[#allocation3] sm:$0xff] }
0x240d   :  { %v5682_v18 = vpop.eup %5681 }
0x240e   :  { %1628 = vrot.lane.b32.xlu0 %v5682_v18, %s5869_s10  ;;  %v6439_v18 = vld [vmem:[#allocation3 + $0x8] sm:$0xff] }
0x240f   :  { %v5684_v20 = vpop.eup %5683 }
0x2410   :  { %v1619_v21 = vadd.f32 1.0, %v5684_v20  ;;  %v6560_v20 = vld [vmem:[%s6869_s6] ss:$0 sm:$0xff] }
0x2412   :  { %5685 = vrcp.f32 %v1619_v21 }
0x241f   :  { %v5686_v22 = vpop.eup %5685 }
0x2420   :  { %v1626_v27 = vmul.f32 %v5686_v22, %v1624_v26 }
0x2480   :  { %v1629_v33 = vpop.permute.xlu0 %1628 }
0x2481   :  { %v1631_v25 = vmul.f32 %v5686_v22, %v1629_v33 }
0x2483   :  { %1633 = vrot.lane.b32.xlu1 %v1631_v25, %s5870_s3 }
0x24f5   :  { %v1634_v28 = vpop.permute.xlu1 %1633 }
0x24f6   :  { %v6283_v29 = vadd.f32 %v1634_v28, %v1626_v27 }
0x24f8   :  { %5687 = vtanh.f32 %v6283_v29  ;;  %v1731_v61 = vrot.slane %v6283_v29, 6 }
0x2505   :  { %v5688_v30 = vpop.eup %5687 }
0x2506   :  { %1639 = vrot.lane.b32.xlu0 %v5688_v30, %s5869_s10 }
0x2578   :  { %v1640_v35 = vpop.permute.xlu0 %1639 }
0x2579   :  { %v1642_v12 = vmul.f32 %v5686_v22, %v1640_v35 }
0x257b   :  { %v1644_v36 = vrot.slane %v1642_v12, 2 }
0x257d   :  { %1645 = vrot.lane.b32.xlu1 %v1644_v36, %s5870_s3 }
0x25ef   :  { %v6293_v38 = vpop.permute.xlu1 %1645 }
0x25f0   :  { %5194 = vmatmul.mubr.msk.f32.vlgmr.msra.gmra.mxu1 %vm166_vm3, %v6293_v38 }
0x25f1   :  { %5208 = vmatpush3.msra.mxu1 %v6291_v37  ;;  %5215 = vmatprep.mubr.msk.f32.mxu1 %vm5868_vm0, %v5867_v1 }
0x25f2   :  { %5209 = vmatprep.subr.mxu1 %v5867_v1 }
0x25f3   :  { %5210 = vmatpush3.msra.mxu1 %v6300_v41 }
0x25f4   :  { %5211 = vmatprep.subr.mxu1 %v5867_v1 }
0x25f5   :  { %5212 = vmatpush3.msra.mxu1 %v6309_v42 }
0x25f6   :  { %5213 = vmatprep.subr.mxu1 %v5867_v1 }
0x25f7   :  { %5214 = vmatpush3.msra.mxu1 %v6316_v43 }
0x25f8   :  { %5216 = vmatmul.mubr.msk.f32.vlgmr.msra.gmra.mxu1 %vm166_vm3, %v6014_v31  ;;  %5229 = vmatprep.subr.mxu1 %v5867_v1 }
0x25f9   :  { %5230 = vmatpush3.msra.mxu1 %v6291_v37  ;;  %5237 = vmatprep.mubr.msk.f32.mxu1 %vm5868_vm0, %v5867_v1 }
0x25fa   :  { %5231 = vmatprep.subr.mxu1 %v5867_v1 }
0x25fb   :  { %5232 = vmatpush3.msra.mxu1 %v6300_v41 }
0x25fc   :  { %5233 = vmatprep.subr.mxu1 %v5867_v1 }
0x25fd   :  { %5234 = vmatpush3.msra.mxu1 %v6309_v42 }
0x25fe   :  { %5235 = vmatprep.subr.mxu1 %v5867_v1 }
0x25ff   :  { %5236 = vmatpush3.msra.mxu1 %v6316_v43 }
0x2600   :  { %5238 = vmatmul.mubr.msk.f32.vlgmr.msra.gmra.mxu1 %vm166_vm3, %v6056_v17  ;;  %5251 = vmatprep.subr.mxu1 %v5867_v1 }
0x2601   :  { %5252 = vmatpush3.msra.mxu1 %v6291_v37  ;;  %5259 = vmatprep.mubr.msk.f32.mxu1 %vm5868_vm0, %v5867_v1 }
0x2602   :  { %5253 = vmatprep.subr.mxu1 %v5867_v1 }
0x2603   :  { %5254 = vmatpush3.msra.mxu1 %v6300_v41 }
0x2604   :  { %5255 = vmatprep.subr.mxu1 %v5867_v1 }
0x2605   :  { %5256 = vmatpush3.msra.mxu1 %v6309_v42 }
0x2606   :  { %5257 = vmatprep.subr.mxu1 %v5867_v1 }
0x2607   :  { %5258 = vmatpush3.msra.mxu1 %v6316_v43 }
0x2608   :  { %5260 = vmatmul.mubr.msk.f32.vlgmr.msra.gmra.mxu1 %vm166_vm3, %v6098_v58  ;;  %5273 = vmatprep.subr.mxu1 %v5867_v1 }
0x2609   :  { %5274 = vmatpush3.msra.mxu1 %v6291_v37  ;;  %5281 = vmatprep.mubr.msk.f32.mxu1 %vm5868_vm0, %v5867_v1 }
0x260a   :  { %5275 = vmatprep.subr.mxu1 %v5867_v1 }
0x260b   :  { %5276 = vmatpush3.msra.mxu1 %v6300_v41 }
0x260c   :  { %5277 = vmatprep.subr.mxu1 %v5867_v1 }
0x260d   :  { %5278 = vmatpush3.msra.mxu1 %v6309_v42 }
0x260e   :  { %5279 = vmatprep.subr.mxu1 %v5867_v1 }
0x260f   :  { %5280 = vmatpush3.msra.mxu1 %v6316_v43 }
0x2610   :  { %5282 = vmatmul.mubr.msk.f32.vlgmr.msra.gmra.mxu1 %vm166_vm3, %v6136_v47  ;;  %5295 = vmatprep.subr.mxu1 %v5867_v1 }
0x2611   :  { %5296 = vmatpush3.msra.mxu1 %v6291_v37  ;;  %5303 = vmatprep.mubr.msk.f32.mxu1 %vm5868_vm0, %v5867_v1 }
0x2612   :  { %5297 = vmatprep.subr.mxu1 %v5867_v1 }
0x2613   :  { %5298 = vmatpush3.msra.mxu1 %v6300_v41 }
0x2614   :  { %5299 = vmatprep.subr.mxu1 %v5867_v1 }
0x2615   :  { %5300 = vmatpush3.msra.mxu1 %v6309_v42 }
0x2616   :  { %5301 = vmatprep.subr.mxu1 %v5867_v1 }
0x2617   :  { %5302 = vmatpush3.msra.mxu1 %v6316_v43 }
0x2618   :  { %5304 = vmatmul.mubr.msk.f32.vlgmr.msra.gmra.mxu1 %vm166_vm3, %v6178_v34  ;;  %5317 = vmatprep.subr.mxu1 %v5867_v1 }
0x2619   :  { %5318 = vmatpush3.msra.mxu1 %v6291_v37  ;;  %5325 = vmatprep.mubr.msk.f32.mxu1 %vm5868_vm0, %v5867_v1 }
0x261a   :  { %5319 = vmatprep.subr.mxu1 %v5867_v1 }
0x261b   :  { %5320 = vmatpush3.msra.mxu1 %v6300_v41 }
0x261c   :  { %5321 = vmatprep.subr.mxu1 %v5867_v1 }
0x261d   :  { %5322 = vmatpush3.msra.mxu1 %v6309_v42 }
0x261e   :  { %5323 = vmatprep.subr.mxu1 %v5867_v1 }
0x261f   :  { %5324 = vmatpush3.msra.mxu1 %v6316_v43 }
0x2620   :  { %5326 = vmatmul.mubr.msk.f32.vlgmr.msra.gmra.mxu1 %vm166_vm3, %v6216_v24  ;;  %5339 = vmatprep.subr.mxu1 %v5867_v1 }
0x2621   :  { %5340 = vmatpush3.msra.mxu1 %v6291_v37  ;;  %5347 = vmatprep.mubr.msk.f32.mxu1 %vm5868_vm0, %v5867_v1 }
0x2622   :  { %5341 = vmatprep.subr.mxu1 %v5867_v1 }
0x2623   :  { %5342 = vmatpush3.msra.mxu1 %v6300_v41 }
0x2624   :  { %5343 = vmatprep.subr.mxu1 %v5867_v1 }
0x2625   :  { %5344 = vmatpush3.msra.mxu1 %v6309_v42 }
0x2626   :  { %5345 = vmatprep.subr.mxu1 %v5867_v1 }
0x2627   :  { %5346 = vmatpush3.msra.mxu1 %v6316_v43 }
0x2628   :  { %5348 = vmatmul.mubr.msk.f32.vlgmr.msra.gmra.mxu1 %vm166_vm3, %v6258_v63  ;;  %5361 = vmatprep.subr.mxu1 %v5867_v1 }
0x2629   :  { %5362 = vmatpush3.msra.mxu1 %v6291_v37  ;;  %5369 = vmatprep.mubr.msk.f32.mxu1 %vm5868_vm0, %v5867_v1 }
0x262a   :  { %5363 = vmatprep.subr.mxu1 %v5867_v1 }
0x262b   :  { %5364 = vmatpush3.msra.mxu1 %v6300_v41 }
0x262c   :  { %5365 = vmatprep.subr.mxu1 %v5867_v1 }
0x262d   :  { %5366 = vmatpush3.msra.mxu1 %v6309_v42 }
0x262e   :  { %5367 = vmatprep.subr.mxu1 %v5867_v1 }
0x262f   :  { %5368 = vmatpush3.msra.mxu1 %v6316_v43 }
0x2630   :  { %5383 = vmatprep.subr.mxu1 %v5867_v1 }
0x26b0   :  { %v1715_v31 = vpop.f32.mrf.mxu1 }
0x26b1   :  { %v1720_v17 = vrot.slane %v1715_v31, 4 }
0x26b2   :  { %v5195_v58 = vpop.f32.mrf.mxu1 }
0x26b3   :  { %v1722_v47 = vadd.f32 %v1720_v17, %v6251_v3 }
0x26b5   :  { %5689 = vtanh.f32 %v1722_v47  ;;  %v4720_v55 = vmul.f32 -1.442695, %v1722_v47 }
0x26b7   :  { %5691 = vpow2.f32 %v4720_v55 }
0x26b8   :  { %v6407_v34 = vpop.f32.mrf.mxu1 }
0x26b9   :  { %v1939_v21 = vadd.f32 %v6560_v20, %v6407_v34 }
0x26ba   :  { %v5217_v24 = vpop.f32.mrf.mxu1 }
0x26c0   :  { %v6409_v11 = vpop.f32.mrf.mxu1 }
0x26c2   :  { %v5690_v44 = vpop.eup %5689  ;;  %v5239_v45 = vpop.f32.mrf.mxu1 }
0x26c3   :  { %1735 = vrot.lane.b32.xlu0 %v5690_v44, %s5869_s10 }
0x26c4   :  { %v5692_v10 = vpop.eup %5691 }
0x26c5   :  { %v1726_v32 = vadd.f32 1.0, %v5692_v10 }
0x26c7   :  { %5693 = vrcp.f32 %v1726_v32 }
0x26c8   :  { %v6412_v46 = vpop.f32.mrf.mxu1 }
0x26ca   :  { %v5261_v49 = vpop.f32.mrf.mxu1 }
0x26d0   :  { %v6414_v50 = vpop.f32.mrf.mxu1 }
0x26d2   :  { %v5283_v9 = vpop.f32.mrf.mxu1 }
0x26d4   :  { %v5694_v57 = vpop.eup %5693 }
0x26d5   :  { %v1733_v62 = vmul.f32 %v5694_v57, %v1731_v61 }
0x26d8   :  { %v6416_v6 = vpop.f32.mrf.mxu1 }
0x26da   :  { %v5305_v51 = vpop.f32.mrf.mxu1 }
0x26e0   :  { %v6418_v7 = vpop.f32.mrf.mxu1 }
0x26e2   :  { %v5327_v52 = vpop.f32.mrf.mxu1 }
0x26e8   :  { %v6420_v8 = vpop.f32.mrf.mxu1 }
0x26ea   :  { %v5349_v54 = vpop.f32.mrf.mxu1 }
0x2735   :  { %v1736_v59 = vpop.permute.xlu0 %1735 }
0x2736   :  { %v1738_v60 = vmul.f32 %v5694_v57, %v1736_v59 }
0x2738   :  { %1740 = vrot.lane.b32.xlu1 %v1738_v60, %s5870_s3 }
0x27aa   :  { %v1741_v63 = vpop.permute.xlu1 %1740 }
0x27ab   :  { %v6424_v40 = vadd.f32 %v1741_v63, %v1733_v62 }
0x27ad   :  { %5695 = vtanh.f32 %v6424_v40  ;;  %v1838_v10 = vrot.slane %v6424_v40, 6 }
0x27ba   :  { %v5696_v0 = vpop.eup %5695 }
0x27bb   :  { %1746 = vrot.lane.b32.xlu0 %v5696_v0, %s5869_s10 }
0x282d   :  { %v1747_v2 = vpop.permute.xlu0 %1746 }
0x282e   :  { %v1749_v4 = vmul.f32 %v5694_v57, %v1747_v2 }
0x2830   :  { %v1751_v13 = vrot.slane %v1749_v4, 4 }
0x2832   :  { %1752 = vrot.lane.b32.xlu1 %v1751_v13, %s5870_s3 }
0x28a4   :  { %v1753_v15 = vpop.permute.xlu1 %1752 }
0x28a5   :  { %5205 = vmatmul.mubr.msk.f32.vlgmr.msra.gmra.mxu0 %vm166_vm3, %v1753_v15  ;;  %5370 = vmatmul.mubr.msk.f32.vlgmr.msra.gmra.mxu1 %vm166_vm3, %v1753_v15 }
0x28a6   :  { %5219 = vmatpush3.msra.mxu0 %v6291_v37  ;;  %5384 = vmatpush3.msra.mxu1 %v6429_v14 }
0x28a7   :  { %5220 = vmatprep.subr.mxu0 %v5867_v1  ;;  %5385 = vmatprep.subr.mxu1 %v5867_v1 }
0x28a8   :  { %5221 = vmatpush3.msra.mxu0 %v6300_v41  ;;  %5386 = vmatpush3.msra.mxu1 %v6433_v16 }
0x28a9   :  { %5222 = vmatprep.subr.mxu0 %v5867_v1  ;;  %5387 = vmatprep.subr.mxu1 %v5867_v1 }
0x28aa   :  { %5223 = vmatpush3.msra.mxu0 %v6309_v42  ;;  %5388 = vmatpush3.msra.mxu1 %v6439_v18 }
0x28ab   :  { %5224 = vmatprep.subr.mxu0 %v5867_v1  ;;  %5389 = vmatprep.subr.mxu1 %v5867_v1 }
0x28ac   :  { %5225 = vmatpush3.msra.mxu0 %v6316_v43  ;;  %5226 = vmatprep.mubr.msk.f32.mxu0 %vm5868_vm0, %v5867_v1 }
0x28ad   :  { %5390 = vmatpush3.msra.mxu1 %v6447_v19  ;;  %5391 = vmatprep.mubr.msk.f32.mxu1 %vm5868_vm0, %v5867_v1 }
0x28ae   :  { %5227 = vmatmul.mubr.msk.f32.vlgmr.msra.gmra.mxu0 %vm166_vm3, %v6037_v53  ;;  %5240 = vmatprep.subr.mxu0 %v5867_v1 }
0x28af   :  { %5392 = vmatmul.mubr.f32.vlgmr.msra.gmra.mxu1 %v5867_v1  ;;  %5241 = vmatpush3.msra.mxu0 %v6291_v37 }
0x28b0   :  { %5242 = vmatprep.subr.mxu0 %v5867_v1  ;;  %5248 = vmatprep.mubr.msk.f32.mxu0 %vm5868_vm0, %v5867_v1 }
0x28b1   :  { %5243 = vmatpush3.msra.mxu0 %v6300_v41  ;;  %5405 = vmatprep.subr.mxu1 %v5867_v1 }
0x28b2   :  { %5244 = vmatprep.subr.mxu0 %v5867_v1  ;;  %5406 = vmatpush3.msra.mxu1 %v6429_v14 }
0x28b3   :  { %5245 = vmatpush3.msra.mxu0 %v6309_v42  ;;  %5407 = vmatprep.subr.mxu1 %v5867_v1 }
0x28b4   :  { %5246 = vmatprep.subr.mxu0 %v5867_v1  ;;  %5408 = vmatpush3.msra.mxu1 %v6433_v16 }
0x28b5   :  { %5247 = vmatpush3.msra.mxu0 %v6316_v43  ;;  %5409 = vmatprep.subr.mxu1 %v5867_v1 }
0x28b6   :  { %5249 = vmatmul.mubr.msk.f32.vlgmr.msra.gmra.mxu0 %vm166_vm3, %v6075_v39  ;;  %5262 = vmatprep.subr.mxu0 %v5867_v1 }
0x28b7   :  { %5263 = vmatpush3.msra.mxu0 %v6291_v37  ;;  %5270 = vmatprep.mubr.msk.f32.mxu0 %vm5868_vm0, %v5867_v1 }
0x28b8   :  { %5264 = vmatprep.subr.mxu0 %v5867_v1  ;;  %5410 = vmatpush3.msra.mxu1 %v6439_v18 }
0x28b9   :  { %5265 = vmatpush3.msra.mxu0 %v6300_v41  ;;  %5411 = vmatprep.subr.mxu1 %v5867_v1 }
0x28ba   :  { %5266 = vmatprep.subr.mxu0 %v5867_v1  ;;  %5412 = vmatpush3.msra.mxu1 %v6447_v19 }
0x28bb   :  { %5267 = vmatpush3.msra.mxu0 %v6309_v42  ;;  %5413 = vmatprep.mubr.msk.f32.mxu1 %vm5868_vm0, %v5867_v1 }
0x28bc   :  { %5268 = vmatprep.subr.mxu0 %v5867_v1  ;;  %5427 = vmatprep.subr.mxu1 %v5867_v1 }
0x28bd   :  { %5269 = vmatpush3.msra.mxu0 %v6316_v43 }
0x28be   :  { %5271 = vmatmul.mubr.msk.f32.vlgmr.msra.gmra.mxu0 %vm166_vm3, %v6117_v23  ;;  %5284 = vmatprep.subr.mxu0 %v5867_v1 }
0x28bf   :  { %5285 = vmatpush3.msra.mxu0 %v6291_v37  ;;  %5292 = vmatprep.mubr.msk.f32.mxu0 %vm5868_vm0, %v5867_v1 }
0x28c0   :  { %5286 = vmatprep.subr.mxu0 %v5867_v1 }
0x28c1   :  { %5287 = vmatpush3.msra.mxu0 %v6300_v41 }
0x28c2   :  { %5288 = vmatprep.subr.mxu0 %v5867_v1 }
0x28c3   :  { %5289 = vmatpush3.msra.mxu0 %v6309_v42 }
0x28c4   :  { %5290 = vmatprep.subr.mxu0 %v5867_v1 }
0x28c5   :  { %5291 = vmatpush3.msra.mxu0 %v6316_v43 }
0x28c6   :  { %5293 = vmatmul.mubr.msk.f32.vlgmr.msra.gmra.mxu0 %vm166_vm3, %v6155_v5  ;;  %5306 = vmatprep.subr.mxu0 %v5867_v1 }
0x28c7   :  { %5307 = vmatpush3.msra.mxu0 %v6291_v37  ;;  %5314 = vmatprep.mubr.msk.f32.mxu0 %vm5868_vm0, %v5867_v1 }
0x28c8   :  { %5308 = vmatprep.subr.mxu0 %v5867_v1 }
0x28c9   :  { %5309 = vmatpush3.msra.mxu0 %v6300_v41 }
0x28ca   :  { %5310 = vmatprep.subr.mxu0 %v5867_v1 }
0x28cb   :  { %5311 = vmatpush3.msra.mxu0 %v6309_v42 }
0x28cc   :  { %5312 = vmatprep.subr.mxu0 %v5867_v1 }
0x28cd   :  { %5313 = vmatpush3.msra.mxu0 %v6316_v43 }
0x28ce   :  { %5315 = vmatmul.mubr.msk.f32.vlgmr.msra.gmra.mxu0 %vm166_vm3, %v6197_v56  ;;  %5328 = vmatprep.subr.mxu0 %v5867_v1 }
0x28cf   :  { %5329 = vmatpush3.msra.mxu0 %v6291_v37  ;;  %5336 = vmatprep.mubr.msk.f32.mxu0 %vm5868_vm0, %v5867_v1 }
0x28d0   :  { %5330 = vmatprep.subr.mxu0 %v5867_v1 }
0x28d1   :  { %5331 = vmatpush3.msra.mxu0 %v6300_v41 }
0x28d2   :  { %5332 = vmatprep.subr.mxu0 %v5867_v1 }
0x28d3   :  { %5333 = vmatpush3.msra.mxu0 %v6309_v42 }
0x28d4   :  { %5334 = vmatprep.subr.mxu0 %v5867_v1 }
0x28d5   :  { %5335 = vmatpush3.msra.mxu0 %v6316_v43 }
0x28d6   :  { %5337 = vmatmul.mubr.msk.f32.vlgmr.msra.gmra.mxu0 %vm166_vm3, %v6235_v48  ;;  %5350 = vmatprep.subr.mxu0 %v5867_v1 }
0x28d7   :  { %5351 = vmatpush3.msra.mxu0 %v6291_v37  ;;  %5358 = vmatprep.mubr.msk.f32.mxu0 %vm5868_vm0, %v5867_v1 }
0x28d8   :  { %5352 = vmatprep.subr.mxu0 %v5867_v1 }
0x28d9   :  { %5353 = vmatpush3.msra.mxu0 %v6300_v41 }
0x28da   :  { %5354 = vmatprep.subr.mxu0 %v5867_v1 }
0x28db   :  { %5355 = vmatpush3.msra.mxu0 %v6309_v42 }
0x28dc   :  { %5356 = vmatprep.subr.mxu0 %v5867_v1 }
0x28dd   :  { %5357 = vmatpush3.msra.mxu0 %v6316_v43 }
0x28de   :  { %5359 = vmatmul.mubr.msk.f32.vlgmr.msra.gmra.mxu0 %vm166_vm3, %v6293_v38  ;;  %5372 = vmatprep.subr.mxu0 %v5867_v1 }
0x28df   :  { %5373 = vmatpush3.msra.mxu0 %v6291_v37  ;;  %5380 = vmatprep.mubr.msk.f32.mxu0 %vm5868_vm0, %v5867_v1 }
0x28e0   :  { %5374 = vmatprep.subr.mxu0 %v5867_v1 }
0x28e1   :  { %5375 = vmatpush3.msra.mxu0 %v6300_v41 }
0x28e2   :  { %5376 = vmatprep.subr.mxu0 %v5867_v1 }
0x28e3   :  { %5377 = vmatpush3.msra.mxu0 %v6309_v42 }
0x28e4   :  { %5378 = vmatprep.subr.mxu0 %v5867_v1 }
0x28e5   :  { %5379 = vmatpush3.msra.mxu0 %v6316_v43 }
0x28e6   :  { %5394 = vmatprep.subr.mxu0 %v5867_v1 }
0x2965   :  { %v1822_v53 = vpop.f32.mrf.mxu0  ;;  %v6554_v39 = vpop.f32.mrf.mxu1 }
0x2966   :  { %v1827_v23 = vrot.slane %v1822_v53, 2 }
0x2967   :  { %v5206_v5 = vpop.f32.mrf.mxu0  ;;  %v5371_v56 = vpop.f32.mrf.mxu1 }
0x2968   :  { %v1829_v48 = vadd.f32 %v1827_v23, %v6251_v3 }
0x296a   :  { %5697 = vtanh.f32 %v1829_v48  ;;  %v4722_v58 = vmul.f32 -1.442695, %v1829_v48 }
0x296e   :  { %v6564_v22 = vpop.f32.mrf.mxu0 }
0x296f   :  { %v3064_v33 = vpop.f32.mrf.mxu1  ;;  %v2009_v48 = vadd.f32 %v6560_v20, %v6564_v22 }
0x2970   :  { %v3068_v25 = vadd.f32 %v3064_v33, %v1939_v21  ;;  %v5228_v26 = vpop.f32.mrf.mxu0 }
0x2971   :  { %v5393_v27 = vpop.f32.mrf.mxu1 }
0x2972   :  { %5699 = vtanh.f32 %v3068_v25  ;;  %v4740_v47 = vmul.f32 -1.442695, %v3068_v25 }
0x2973   :  { %5701 = vpow2.f32 %v4722_v58 }
0x2974   :  { %5703 = vpow2.f32 %v4740_v47 }
0x2976   :  { %v6566_v28 = vpop.f32.mrf.mxu0 }
0x2977   :  { %v5698_v29 = vpop.eup %5697 }
0x2978   :  { %v5250_v3 = vpop.f32.mrf.mxu0  ;;  %1842 = vrot.lane.b32.xlu0 %v5698_v29, %s5869_s10 }
0x297e   :  { %v6569_v30 = vpop.f32.mrf.mxu0 }
0x297f   :  { %v5700_v35 = vpop.eup %5699 }
0x2980   :  { %3078 = vrot.lane.b32.xlu1 %v5700_v35, %s5869_s10  ;;  %v5272_v12 = vpop.f32.mrf.mxu0  ;;  %v5702_v34 = vpop.eup %5701 }
0x2981   :  { %v1833_v24 = vadd.f32 1.0, %v5702_v34  ;;  %v5704_v44 = vpop.eup %5703 }
0x2982   :  { %v3072_v45 = vadd.f32 1.0, %v5704_v44 }
0x2983   :  { %5705 = vrcp.f32 %v1833_v24  ;;  %v2079_v24 = vadd.f32 %v6560_v20, %v6409_v11 }
0x2984   :  { %5707 = vrcp.f32 %v3072_v45 }
0x2986   :  { %v6572_v36 = vpop.f32.mrf.mxu0 }
0x2988   :  { %v5294_v37 = vpop.f32.mrf.mxu0 }
0x298e   :  { %v6574_v38 = vpop.f32.mrf.mxu0 }
0x2990   :  { %v5316_v41 = vpop.f32.mrf.mxu0  ;;  %v5706_v49 = vpop.eup %5705 }
0x2991   :  { %v5708_v52 = vpop.eup %5707  ;;  %v1840_v32 = vmul.f32 %v5706_v49, %v1838_v10 }
0x2992   :  { %v3076_v60 = vmul.f32 0.0, %v5708_v52 }
0x2996   :  { %v6576_v42 = vpop.f32.mrf.mxu0 }
0x2998   :  { %v5338_v43 = vpop.f32.mrf.mxu0 }
0x299e   :  { %v6578_v31 = vpop.f32.mrf.mxu0 }
0x29a0   :  { %v5360_v17 = vpop.f32.mrf.mxu0 }
0x29ea   :  { %v1843_v9 = vpop.permute.xlu0 %1842 }
0x29eb   :  { %v1845_v51 = vmul.f32 %v5706_v49, %v1843_v9 }
0x29ed   :  { %1847 = vrot.lane.b32.xlu0 %v1845_v51, %s5870_s3 }
0x29f2   :  { %v3079_v54 = vpop.permute.xlu1 %3078 }
0x29f3   :  { %v3081_v55 = vmul.f32 %v5708_v52, %v3079_v54 }
0x29f5   :  { %3083 = vrot.lane.b32.xlu1 %v3081_v55, %s5870_s3 }
0x2a5f   :  { %v1848_v57 = vpop.permute.xlu0 %1847 }
0x2a60   :  { %v1850_v59 = vadd.f32 %v1848_v57, %v1840_v32 }
0x2a62   :  { %5709 = vtanh.f32 %v1850_v59 }
0x2a67   :  { %v3084_v61 = vpop.permute.xlu1 %3083 }
0x2a68   :  { %v3086_v62 = vadd.f32 %v3084_v61, %v3076_v60 }
0x2a6a   :  { %5711 = vtanh.f32 %v3086_v62 }
0x2a6f   :  { %v5710_v63 = vpop.eup %5709 }
0x2a70   :  { %1853 = vrot.lane.b32.xlu0 %v5710_v63, %s5869_s10 }
0x2a77   :  { %v5712_v0 = vpop.eup %5711 }
0x2a78   :  { %3089 = vrot.lane.b32.xlu1 %v5712_v0, %s5869_s10  ;;  %v2149_v0 = vadd.f32 %v6560_v20, %v6566_v28 }
0x2ae2   :  { %v1854_v2 = vpop.permute.xlu0 %1853 }
0x2ae3   :  { %v1856_v4 = vmul.f32 %v5706_v49, %v1854_v2 }
0x2ae5   :  { %v2923_v13 = vrot.slane %v1856_v4, 6 }
0x2ae7   :  { %2924 = vrot.lane.b32.xlu0 %v2923_v13, %s5870_s3 }
0x2aea   :  { %v3090_v40 = vpop.permute.xlu1 %3089 }
0x2aeb   :  { %v3092_v15 = vmul.f32 %v5708_v52, %v3090_v40 }
0x2aed   :  { %3094 = vrot.lane.b32.xlu1 %v3092_v15, %s5870_s3 }
0x2b59   :  { %v2925_v53 = vpop.permute.xlu0 %2924 }
0x2b5a   :  { %5381 = vmatmul.mubr.msk.f32.vlgmr.msra.gmra.mxu0 %vm166_vm3, %v2925_v53 }
0x2b5b   :  { %5395 = vmatpush3.msra.mxu0 %v6429_v14  ;;  %5402 = vmatprep.mubr.msk.f32.mxu0 %vm5868_vm0, %v5867_v1 }
0x2b5c   :  { %5396 = vmatprep.subr.mxu0 %v5867_v1 }
0x2b5d   :  { %5397 = vmatpush3.msra.mxu0 %v6433_v16 }
0x2b5e   :  { %5398 = vmatprep.subr.mxu0 %v5867_v1 }
0x2b5f   :  { %5399 = vmatpush3.msra.mxu0 %v6439_v18  ;;  %v3095_v23 = vpop.permute.xlu1 %3094 }
0x2b60   :  { %5400 = vmatprep.subr.mxu0 %v5867_v1 }
0x2b61   :  { %5401 = vmatpush3.msra.mxu0 %v6447_v19 }
0x2b62   :  { %5403 = vmatmul.mubr.msk.f32.vlgmr.msra.gmra.mxu0 %vm166_vm3, %v3095_v23  ;;  %5416 = vmatprep.subr.mxu0 %v5867_v1 }
0x2b63   :  { %5417 = vmatpush3.msra.mxu0 %v6429_v14  ;;  %5424 = vmatprep.mubr.msk.f32.mxu0 %vm5868_vm0, %v5867_v1 }
0x2b64   :  { %5418 = vmatprep.subr.mxu0 %v5867_v1 }
0x2b65   :  { %5419 = vmatpush3.msra.mxu0 %v6433_v16 }
0x2b66   :  { %5420 = vmatprep.subr.mxu0 %v5867_v1 }
0x2b67   :  { %5421 = vmatpush3.msra.mxu0 %v6439_v18 }
0x2b68   :  { %5422 = vmatprep.subr.mxu0 %v5867_v1 }
0x2b69   :  { %5423 = vmatpush3.msra.mxu0 %v6447_v19 }
0x2b6a   :  { %5438 = vmatprep.subr.mxu0 %v5867_v1 }
0x2c1a   :  { %v6609_v5 = vpop.f32.mrf.mxu0 }
0x2c1c   :  { %v5382_v56 = vpop.f32.mrf.mxu0 }
0x2c22   :  { %v3164_v21 = vpop.f32.mrf.mxu0 }
0x2c23   :  { %v3168_v33 = vadd.f32 %v3164_v21, %v2009_v48 }
0x2c24   :  { %v5404_v25 = vpop.f32.mrf.mxu0 }
0x2c25   :  { %5713 = vtanh.f32 %v3168_v33  ;;  %v4742_v27 = vmul.f32 -1.442695, %v3168_v33 }
0x2c27   :  { %5715 = vpow2.f32 %v4742_v27 }
0x2c32   :  { %v5714_v26 = vpop.eup %5713 }
0x2c33   :  { %3178 = vrot.lane.b32.xlu0 %v5714_v26, %s5869_s10 }
0x2c34   :  { %v5716_v29 = vpop.eup %5715 }
0x2c35   :  { %v3172_v3 = vadd.f32 1.0, %v5716_v29 }
0x2c37   :  { %5717 = vrcp.f32 %v3172_v3 }
0x2c44   :  { %v5718_v35 = vpop.eup %5717 }
0x2c45   :  { %v3176_v41 = vmul.f32 %v5718_v35, %v3086_v62 }
0x2ca5   :  { %v3179_v12 = vpop.permute.xlu0 %3178 }
0x2ca6   :  { %v3181_v37 = vmul.f32 %v5718_v35, %v3179_v12 }
0x2ca8   :  { %3183 = vrot.lane.b32.xlu1 %v3181_v37, %s5870_s3 }
0x2d1a   :  { %v3184_v43 = vpop.permute.xlu1 %3183 }
0x2d1b   :  { %v3186_v22 = vadd.f32 %v3184_v43, %v3176_v41 }
0x2d1d   :  { %5719 = vtanh.f32 %v3186_v22 }
0x2d2a   :  { %v5720_v17 = vpop.eup %5719 }
0x2d2b   :  { %3189 = vrot.lane.b32.xlu0 %v5720_v17, %s5869_s10 }
0x2d9d   :  { %v3190_v58 = vpop.permute.xlu0 %3189 }
0x2d9e   :  { %v3192_v47 = vmul.f32 %v5718_v35, %v3190_v58  ;;  %v2219_v35 = vadd.f32 %v6560_v20, %v6412_v46 }
0x2da0   :  { %3194 = vrot.lane.b32.xlu1 %v3192_v47, %s5870_s3 }
0x2e12   :  { %v3195_v34 = vpop.permute.xlu1 %3194 }
0x2e13   :  { %5414 = vmatmul.mubr.msk.f32.vlgmr.msra.gmra.mxu1 %vm166_vm3, %v3195_v34 }
0x2e14   :  { %5428 = vmatpush3.msra.mxu1 %v6429_v14  ;;  %5435 = vmatprep.mubr.msk.f32.mxu1 %vm5868_vm0, %v5867_v1 }
0x2e15   :  { %5429 = vmatprep.subr.mxu1 %v5867_v1 }
0x2e16   :  { %5430 = vmatpush3.msra.mxu1 %v6433_v16 }
0x2e17   :  { %5431 = vmatprep.subr.mxu1 %v5867_v1 }
0x2e18   :  { %5432 = vmatpush3.msra.mxu1 %v6439_v18 }
0x2e19   :  { %5433 = vmatprep.subr.mxu1 %v5867_v1 }
0x2e1a   :  { %5434 = vmatpush3.msra.mxu1 %v6447_v19 }
0x2e1b   :  { %5449 = vmatprep.subr.mxu1 %v5867_v1 }
0x2ed3   :  { %v3264_v44 = vpop.f32.mrf.mxu1 }
0x2ed4   :  { %v3268_v45 = vadd.f32 %v3264_v44, %v2079_v24 }
0x2ed5   :  { %v5415_v49 = vpop.f32.mrf.mxu1 }
0x2ed6   :  { %5721 = vtanh.f32 %v3268_v45  ;;  %v4744_v51 = vmul.f32 -1.442695, %v3268_v45 }
0x2ed8   :  { %5723 = vpow2.f32 %v4744_v51 }
0x2ee3   :  { %v5722_v9 = vpop.eup %5721 }
0x2ee4   :  { %3278 = vrot.lane.b32.xlu0 %v5722_v9, %s5869_s10 }
0x2ee5   :  { %v5724_v52 = vpop.eup %5723 }
0x2ee6   :  { %v3272_v54 = vadd.f32 1.0, %v5724_v52 }
0x2ee8   :  { %5725 = vrcp.f32 %v3272_v54  ;;  %v2289_v54 = vadd.f32 %v6560_v20, %v6569_v30 }
0x2ef5   :  { %v5726_v55 = vpop.eup %5725 }
0x2ef6   :  { %v3276_v57 = vmul.f32 %v5726_v55, %v3186_v22 }
0x2f56   :  { %v3279_v10 = vpop.permute.xlu0 %3278 }
0x2f57   :  { %v3281_v32 = vmul.f32 %v5726_v55, %v3279_v10 }
0x2f59   :  { %3283 = vrot.lane.b32.xlu1 %v3281_v32, %s5870_s3 }
0x2fcb   :  { %v3284_v59 = vpop.permute.xlu1 %3283 }
0x2fcc   :  { %v3286_v11 = vadd.f32 %v3284_v59, %v3276_v57 }
0x2fce   :  { %5727 = vtanh.f32 %v3286_v11 }
0x2fdb   :  { %v5728_v60 = vpop.eup %5727 }
0x2fdc   :  { %3289 = vrot.lane.b32.xlu0 %v5728_v60, %s5869_s10 }
0x304e   :  { %v3290_v61 = vpop.permute.xlu0 %3289 }
0x304f   :  { %v3292_v62 = vmul.f32 %v5726_v55, %v3290_v61 }
0x3051   :  { %3294 = vrot.lane.b32.xlu1 %v3292_v62, %s5870_s3 }
0x30c3   :  { %v3295_v63 = vpop.permute.xlu1 %3294 }
0x30c4   :  { %5425 = vmatmul.mubr.msk.f32.vlgmr.msra.gmra.mxu0 %vm166_vm3, %v3295_v63 }
0x30c5   :  { %5439 = vmatpush3.msra.mxu0 %v6429_v14  ;;  %5446 = vmatprep.mubr.msk.f32.mxu0 %vm5868_vm0, %v5867_v1 }
0x30c6   :  { %5440 = vmatprep.subr.mxu0 %v5867_v1 }
0x30c7   :  { %5441 = vmatpush3.msra.mxu0 %v6433_v16 }
0x30c8   :  { %5442 = vmatprep.subr.mxu0 %v5867_v1 }
0x30c9   :  { %5443 = vmatpush3.msra.mxu0 %v6439_v18 }
0x30ca   :  { %5444 = vmatprep.subr.mxu0 %v5867_v1 }
0x30cb   :  { %5445 = vmatpush3.msra.mxu0 %v6447_v19 }
0x30cc   :  { %5460 = vmatprep.subr.mxu0 %v5867_v1 }
0x3184   :  { %v3364_v2 = vpop.f32.mrf.mxu0 }
0x3185   :  { %v3368_v4 = vadd.f32 %v3364_v2, %v2149_v0 }
0x3186   :  { %v5426_v13 = vpop.f32.mrf.mxu0 }
0x3187   :  { %5729 = vtanh.f32 %v3368_v4  ;;  %v4746_v15 = vmul.f32 -1.442695, %v3368_v4 }
0x3189   :  { %5731 = vpow2.f32 %v4746_v15 }
0x3194   :  { %v5730_v40 = vpop.eup %5729 }
0x3195   :  { %3378 = vrot.lane.b32.xlu0 %v5730_v40, %s5869_s10 }
0x3196   :  { %v5732_v53 = vpop.eup %5731 }
0x3197   :  { %v3372_v23 = vadd.f32 1.0, %v5732_v53  ;;  %v2359_v53 = vadd.f32 %v6560_v20, %v6414_v50 }
0x3199   :  { %5733 = vrcp.f32 %v3372_v23 }
0x31a6   :  { %v5734_v56 = vpop.eup %5733 }
0x31a7   :  { %v3376_v33 = vmul.f32 %v5734_v56, %v3286_v11 }
0x3207   :  { %v3379_v48 = vpop.permute.xlu0 %3378 }
0x3208   :  { %v3381_v21 = vmul.f32 %v5734_v56, %v3379_v48 }
0x320a   :  { %3383 = vrot.lane.b32.xlu1 %v3381_v21, %s5870_s3 }
0x327c   :  { %v3384_v25 = vpop.permute.xlu1 %3383 }
0x327d   :  { %v3386_v28 = vadd.f32 %v3384_v25, %v3376_v33 }
0x327f   :  { %5735 = vtanh.f32 %v3386_v28 }
0x328c   :  { %v5736_v26 = vpop.eup %5735 }
0x328d   :  { %3389 = vrot.lane.b32.xlu0 %v5736_v26, %s5869_s10 }
0x32ff   :  { %v3390_v27 = vpop.permute.xlu0 %3389 }
0x3300   :  { %v3392_v29 = vmul.f32 %v5734_v56, %v3390_v27 }
0x3302   :  { %3394 = vrot.lane.b32.xlu1 %v3392_v29, %s5870_s3 }
0x3374   :  { %v3395_v3 = vpop.permute.xlu1 %3394 }
0x3375   :  { %5436 = vmatmul.mubr.msk.f32.vlgmr.msra.gmra.mxu1 %vm166_vm3, %v3395_v3 }
0x3376   :  { %5450 = vmatpush3.msra.mxu1 %v6429_v14  ;;  %5457 = vmatprep.mubr.msk.f32.mxu1 %vm5868_vm0, %v5867_v1 }
0x3377   :  { %5451 = vmatprep.subr.mxu1 %v5867_v1 }
0x3378   :  { %5452 = vmatpush3.msra.mxu1 %v6433_v16 }
0x3379   :  { %5453 = vmatprep.subr.mxu1 %v5867_v1 }
0x337a   :  { %5454 = vmatpush3.msra.mxu1 %v6439_v18 }
0x337b   :  { %5455 = vmatprep.subr.mxu1 %v5867_v1 }
0x337c   :  { %5456 = vmatpush3.msra.mxu1 %v6447_v19 }
0x337d   :  { %5471 = vmatprep.subr.mxu1 %v5867_v1 }
0x3435   :  { %v3464_v12 = vpop.f32.mrf.mxu1 }
0x3436   :  { %v3468_v37 = vadd.f32 %v3464_v12, %v2219_v35 }
0x3437   :  { %v5437_v41 = vpop.f32.mrf.mxu1 }
0x3438   :  { %5737 = vtanh.f32 %v3468_v37  ;;  %v4748_v22 = vmul.f32 -1.442695, %v3468_v37 }
0x343a   :  { %5739 = vpow2.f32 %v4748_v22  ;;  %v2429_v22 = vadd.f32 %v6560_v20, %v6572_v36 }
0x3445   :  { %v5738_v43 = vpop.eup %5737 }
0x3446   :  { %3478 = vrot.lane.b32.xlu0 %v5738_v43, %s5869_s10 }
0x3447   :  { %v5740_v17 = vpop.eup %5739 }
0x3448   :  { %v3472_v58 = vadd.f32 1.0, %v5740_v17 }
0x344a   :  { %5741 = vrcp.f32 %v3472_v58 }
0x3457   :  { %v5742_v47 = vpop.eup %5741 }
0x3458   :  { %v3476_v44 = vmul.f32 %v5742_v47, %v3386_v28 }
0x34b8   :  { %v3479_v34 = vpop.permute.xlu0 %3478 }
0x34b9   :  { %v3481_v24 = vmul.f32 %v5742_v47, %v3479_v34 }
0x34bb   :  { %3483 = vrot.lane.b32.xlu1 %v3481_v24, %s5870_s3 }
0x352d   :  { %v3484_v45 = vpop.permute.xlu1 %3483 }
0x352e   :  { %v3486_v46 = vadd.f32 %v3484_v45, %v3476_v44 }
0x3530   :  { %5743 = vtanh.f32 %v3486_v46 }
0x353d   :  { %v5744_v49 = vpop.eup %5743 }
0x353e   :  { %3489 = vrot.lane.b32.xlu0 %v5744_v49, %s5869_s10 }
0x35b0   :  { %v3490_v9 = vpop.permute.xlu0 %3489 }
0x35b1   :  { %v3492_v51 = vmul.f32 %v5742_v47, %v3490_v9 }
0x35b3   :  { %3494 = vrot.lane.b32.xlu1 %v3492_v51, %s5870_s3 }
0x3625   :  { %v3495_v52 = vpop.permute.xlu1 %3494 }
0x3626   :  { %5447 = vmatmul.mubr.msk.f32.vlgmr.msra.gmra.mxu0 %vm166_vm3, %v3495_v52 }
0x3627   :  { %5461 = vmatpush3.msra.mxu0 %v6429_v14  ;;  %5468 = vmatprep.mubr.msk.f32.mxu0 %vm5868_vm0, %v5867_v1 }
0x3628   :  { %5462 = vmatprep.subr.mxu0 %v5867_v1 }
0x3629   :  { %5463 = vmatpush3.msra.mxu0 %v6433_v16 }
0x362a   :  { %5464 = vmatprep.subr.mxu0 %v5867_v1 }
0x362b   :  { %5465 = vmatpush3.msra.mxu0 %v6439_v18 }
0x362c   :  { %5466 = vmatprep.subr.mxu0 %v5867_v1 }
0x362d   :  { %5467 = vmatpush3.msra.mxu0 %v6447_v19 }
0x362e   :  { %5482 = vmatprep.subr.mxu0 %v5867_v1 }
0x36e6   :  { %v3564_v55 = vpop.f32.mrf.mxu0 }
0x36e7   :  { %v3568_v10 = vadd.f32 %v3564_v55, %v2289_v54 }
0x36e8   :  { %v5448_v32 = vpop.f32.mrf.mxu0 }
0x36e9   :  { %5745 = vtanh.f32 %v3568_v10  ;;  %v4750_v59 = vmul.f32 -1.442695, %v3568_v10 }
0x36eb   :  { %5747 = vpow2.f32 %v4750_v59 }
0x36f6   :  { %v5746_v57 = vpop.eup %5745 }
0x36f7   :  { %3578 = vrot.lane.b32.xlu0 %v5746_v57, %s5869_s10  ;;  %v2499_v57 = vadd.f32 %v6560_v20, %v6416_v6 }
0x36f8   :  { %v5748_v11 = vpop.eup %5747 }
0x36f9   :  { %v3572_v60 = vadd.f32 1.0, %v5748_v11 }
0x36fb   :  { %5749 = vrcp.f32 %v3572_v60 }
0x3708   :  { %v5750_v61 = vpop.eup %5749 }
0x3709   :  { %v3576_v0 = vmul.f32 %v5750_v61, %v3486_v46 }
0x3769   :  { %v3579_v62 = vpop.permute.xlu0 %3578 }
0x376a   :  { %v3581_v63 = vmul.f32 %v5750_v61, %v3579_v62 }
0x376c   :  { %3583 = vrot.lane.b32.xlu1 %v3581_v63, %s5870_s3 }
0x37de   :  { %v3584_v2 = vpop.permute.xlu1 %3583 }
0x37df   :  { %v3586_v30 = vadd.f32 %v3584_v2, %v3576_v0 }
0x37e1   :  { %5751 = vtanh.f32 %v3586_v30 }
0x37ee   :  { %v5752_v4 = vpop.eup %5751 }
0x37ef   :  { %3589 = vrot.lane.b32.xlu0 %v5752_v4, %s5869_s10 }
0x3861   :  { %v3590_v13 = vpop.permute.xlu0 %3589 }
0x3862   :  { %v3592_v40 = vmul.f32 %v5750_v61, %v3590_v13 }
0x3864   :  { %3594 = vrot.lane.b32.xlu1 %v3592_v40, %s5870_s3 }
0x38d6   :  { %v3595_v15 = vpop.permute.xlu1 %3594 }
0x38d7   :  { %5458 = vmatmul.mubr.msk.f32.vlgmr.msra.gmra.mxu1 %vm166_vm3, %v3595_v15 }
0x38d8   :  { %5472 = vmatpush3.msra.mxu1 %v6429_v14  ;;  %5479 = vmatprep.mubr.msk.f32.mxu1 %vm5868_vm0, %v5867_v1 }
0x38d9   :  { %5473 = vmatprep.subr.mxu1 %v5867_v1 }
0x38da   :  { %5474 = vmatpush3.msra.mxu1 %v6433_v16 }
0x38db   :  { %5475 = vmatprep.subr.mxu1 %v5867_v1 }
0x38dc   :  { %5476 = vmatpush3.msra.mxu1 %v6439_v18 }
0x38dd   :  { %5477 = vmatprep.subr.mxu1 %v5867_v1 }
0x38de   :  { %5478 = vmatpush3.msra.mxu1 %v6447_v19 }
0x38df   :  { %5493 = vmatprep.subr.mxu1 %v5867_v1 }
0x3997   :  { %v3664_v23 = vpop.f32.mrf.mxu1 }
0x3998   :  { %v3668_v56 = vadd.f32 %v3664_v23, %v2359_v53 }
0x3999   :  { %v5459_v48 = vpop.f32.mrf.mxu1 }
0x399a   :  { %5753 = vtanh.f32 %v3668_v56  ;;  %v4752_v33 = vmul.f32 -1.442695, %v3668_v56 }
0x399c   :  { %5755 = vpow2.f32 %v4752_v33 }
0x39a7   :  { %v5754_v21 = vpop.eup %5753 }
0x39a8   :  { %3678 = vrot.lane.b32.xlu0 %v5754_v21, %s5869_s10 }
0x39a9   :  { %v5756_v25 = vpop.eup %5755 }
0x39aa   :  { %v3672_v28 = vadd.f32 1.0, %v5756_v25 }
0x39ac   :  { %5757 = vrcp.f32 %v3672_v28 }
0x39b9   :  { %v5758_v26 = vpop.eup %5757 }
0x39ba   :  { %v3676_v3 = vmul.f32 %v5758_v26, %v3586_v30 }
0x3a1a   :  { %v3679_v27 = vpop.permute.xlu0 %3678 }
0x3a1b   :  { %v3681_v29 = vmul.f32 %v5758_v26, %v3679_v27 }
0x3a1d   :  { %3683 = vrot.lane.b32.xlu1 %v3681_v29, %s5870_s3 }
0x3a8f   :  { %v3684_v35 = vpop.permute.xlu1 %3683 }
0x3a90   :  { %v3686_v50 = vadd.f32 %v3684_v35, %v3676_v3 }
0x3a92   :  { %5759 = vtanh.f32 %v3686_v50 }
0x3a9f   :  { %v5760_v12 = vpop.eup %5759 }
0x3aa0   :  { %3689 = vrot.lane.b32.xlu0 %v5760_v12, %s5869_s10 }
0x3b12   :  { %v3690_v37 = vpop.permute.xlu0 %3689 }
0x3b13   :  { %v3692_v41 = vmul.f32 %v5758_v26, %v3690_v37 }
0x3b15   :  { %3694 = vrot.lane.b32.xlu1 %v3692_v41, %s5870_s3 }
0x3b87   :  { %v3695_v43 = vpop.permute.xlu1 %3694 }
0x3b88   :  { %5469 = vmatmul.mubr.msk.f32.vlgmr.msra.gmra.mxu0 %vm166_vm3, %v3695_v43 }
0x3b89   :  { %5483 = vmatpush3.msra.mxu0 %v6429_v14  ;;  %5490 = vmatprep.mubr.msk.f32.mxu0 %vm5868_vm0, %v5867_v1 }
0x3b8a   :  { %5484 = vmatprep.subr.mxu0 %v5867_v1 }
0x3b8b   :  { %5485 = vmatpush3.msra.mxu0 %v6433_v16 }
0x3b8c   :  { %5486 = vmatprep.subr.mxu0 %v5867_v1 }
0x3b8d   :  { %5487 = vmatpush3.msra.mxu0 %v6439_v18 }
0x3b8e   :  { %5488 = vmatprep.subr.mxu0 %v5867_v1 }
0x3b8f   :  { %5489 = vmatpush3.msra.mxu0 %v6447_v19 }
0x3b90   :  { %5504 = vmatprep.subr.mxu0 %v5867_v1 }
0x3c48   :  { %v3764_v17 = vpop.f32.mrf.mxu0 }
0x3c49   :  { %v3768_v58 = vadd.f32 %v3764_v17, %v2429_v22  ;;  %v6754_v22 = vld [vmem:[#allocation3 + $0x18] sm:$0xff]  ;;  %v6760_v17 = vld [vmem:[#allocation3 + $0x10] sm:$0xff] }
0x3c4a   :  { %v5470_v47 = vpop.f32.mrf.mxu0 }
0x3c4b   :  { %5761 = vtanh.f32 %v3768_v58  ;;  %v4754_v24 = vmul.f32 -1.442695, %v3768_v58  ;;  %v2639_v58 = vadd.f32 %v6560_v20, %v6418_v7 }
0x3c4d   :  { %5763 = vpow2.f32 %v4754_v24 }
0x3c58   :  { %v5762_v34 = vpop.eup %5761 }
0x3c59   :  { %3778 = vrot.lane.b32.xlu0 %v5762_v34, %s5869_s10 }
0x3c5a   :  { %v5764_v44 = vpop.eup %5763 }
0x3c5b   :  { %v3772_v45 = vadd.f32 1.0, %v5764_v44 }
0x3c5d   :  { %5765 = vrcp.f32 %v3772_v45 }
0x3c6a   :  { %v5766_v46 = vpop.eup %5765 }
0x3c6b   :  { %v3776_v51 = vmul.f32 %v5766_v46, %v3686_v50 }
0x3ccb   :  { %v3779_v49 = vpop.permute.xlu0 %3778 }
0x3ccc   :  { %v3781_v9 = vmul.f32 %v5766_v46, %v3779_v49 }
0x3cce   :  { %3783 = vrot.lane.b32.xlu1 %v3781_v9, %s5870_s3 }
0x3d40   :  { %v3784_v52 = vpop.permute.xlu1 %3783 }
0x3d41   :  { %v3786_v36 = vadd.f32 %v3784_v52, %v3776_v51 }
0x3d43   :  { %5767 = vtanh.f32 %v3786_v36 }
0x3d50   :  { %v5768_v54 = vpop.eup %5767 }
0x3d51   :  { %3789 = vrot.lane.b32.xlu0 %v5768_v54, %s5869_s10 }
0x3dc3   :  { %v3790_v55 = vpop.permute.xlu0 %3789 }
0x3dc4   :  { %v3792_v10 = vmul.f32 %v5766_v46, %v3790_v55 }
0x3dc6   :  { %3794 = vrot.lane.b32.xlu1 %v3792_v10, %s5870_s3 }
0x3e38   :  { %v3795_v32 = vpop.permute.xlu1 %3794 }
0x3e39   :  { %5480 = vmatmul.mubr.msk.f32.vlgmr.msra.gmra.mxu1 %vm166_vm3, %v3795_v32  ;;  %v6781_v32 = vld [vmem:[#allocation3 + $0x8] sm:$0xff] }
0x3e3a   :  { %5494 = vmatpush3.msra.mxu1 %v6429_v14  ;;  %5501 = vmatprep.mubr.msk.f32.mxu1 %vm5868_vm0, %v5867_v1 }
0x3e3b   :  { %5495 = vmatprep.subr.mxu1 %v5867_v1 }
0x3e3c   :  { %5496 = vmatpush3.msra.mxu1 %v6433_v16 }
0x3e3d   :  { %5497 = vmatprep.subr.mxu1 %v5867_v1 }
0x3e3e   :  { %5498 = vmatpush3.msra.mxu1 %v6439_v18 }
0x3e3f   :  { %5499 = vmatprep.subr.mxu1 %v5867_v1 }
0x3e40   :  { %5500 = vmatpush3.msra.mxu1 %v6447_v19 }
0x3e41   :  { %5515 = vmatprep.subr.mxu1 %v5867_v1 }
0x3ef9   :  { %v3864_v59 = vpop.f32.mrf.mxu1 }
0x3efa   :  { %v3868_v11 = vadd.f32 %v3864_v59, %v2499_v57  ;;  %v6785_v57 = vld [vmem:[#allocation3] sm:$0xff]  ;;  %v2709_v59 = vadd.f32 %v6560_v20, %v6576_v42 }
0x3efb   :  { %v5481_v60 = vpop.f32.mrf.mxu1 }
0x3efc   :  { %5769 = vtanh.f32 %v3868_v11  ;;  %v4756_v62 = vmul.f32 -1.442695, %v3868_v11 }
0x3efe   :  { %5771 = vpow2.f32 %v4756_v62 }
0x3f09   :  { %v5770_v61 = vpop.eup %5769 }
0x3f0a   :  { %3878 = vrot.lane.b32.xlu0 %v5770_v61, %s5869_s10 }
0x3f0b   :  { %v5772_v63 = vpop.eup %5771 }
0x3f0c   :  { %v3872_v0 = vadd.f32 1.0, %v5772_v63 }
0x3f0e   :  { %5773 = vrcp.f32 %v3872_v0 }
0x3f1b   :  { %v5774_v2 = vpop.eup %5773 }
0x3f1c   :  { %v3876_v13 = vmul.f32 %v5774_v2, %v3786_v36 }
0x3f7c   :  { %v3879_v30 = vpop.permute.xlu0 %3878 }
0x3f7d   :  { %v3881_v4 = vmul.f32 %v5774_v2, %v3879_v30 }
0x3f7f   :  { %3883 = vrot.lane.b32.xlu1 %v3881_v4, %s5870_s3 }
0x3ff1   :  { %v3884_v40 = vpop.permute.xlu1 %3883 }
0x3ff2   :  { %v3886_v6 = vadd.f32 %v3884_v40, %v3876_v13 }
0x3ff4   :  { %5775 = vtanh.f32 %v3886_v6 }
0x4001   :  { %v5776_v15 = vpop.eup %5775 }
0x4002   :  { %3889 = vrot.lane.b32.xlu0 %v5776_v15, %s5869_s10 }
0x4074   :  { %v3890_v53 = vpop.permute.xlu0 %3889 }
0x4075   :  { %v3892_v23 = vmul.f32 %v5774_v2, %v3890_v53 }
0x4077   :  { %3894 = vrot.lane.b32.xlu1 %v3892_v23, %s5870_s3 }
0x40e9   :  { %v3895_v56 = vpop.permute.xlu1 %3894 }
0x40ea   :  { %5491 = vmatmul.mubr.msk.f32.vlgmr.msra.gmra.mxu0 %vm166_vm3, %v3895_v56 }
0x40eb   :  { %5505 = vmatpush3.msra.mxu0 %v6429_v14  ;;  %5512 = vmatprep.mubr.msk.f32.mxu0 %vm5868_vm0, %v5867_v1  ;;  %v2569_v14 = vadd.f32 %v6560_v20, %v6574_v38 }
0x40ec   :  { %5506 = vmatprep.subr.mxu0 %v5867_v1 }
0x40ed   :  { %5507 = vmatpush3.msra.mxu0 %v6433_v16 }
0x40ee   :  { %5508 = vmatprep.subr.mxu0 %v5867_v1 }
0x40ef   :  { %5509 = vmatpush3.msra.mxu0 %v6439_v18 }
0x40f0   :  { %5510 = vmatprep.subr.mxu0 %v5867_v1 }
0x40f1   :  { %5511 = vmatpush3.msra.mxu0 %v6447_v19 }
0x40f2   :  { %5526 = vmatprep.subr.mxu0 %v5867_v1 }
0x41aa   :  { %v3964_v48 = vpop.f32.mrf.mxu0 }
0x41ab   :  { %v3968_v21 = vadd.f32 %v3964_v48, %v2569_v14  ;;  %v2779_v14 = vadd.f32 %v6560_v20, %v6420_v8 }
0x41ac   :  { %v5492_v33 = vpop.f32.mrf.mxu0 }
0x41ad   :  { %5777 = vtanh.f32 %v3968_v21  ;;  %v4758_v16 = vmul.f32 -1.442695, %v3968_v21 }
0x41af   :  { %5779 = vpow2.f32 %v4758_v16 }
0x41ba   :  { %v5778_v25 = vpop.eup %5777 }
0x41bb   :  { %3978 = vrot.lane.b32.xlu0 %v5778_v25, %s5869_s10 }
0x41bc   :  { %v5780_v28 = vpop.eup %5779 }
0x41bd   :  { %v3972_v26 = vadd.f32 1.0, %v5780_v28 }
0x41bf   :  { %5781 = vrcp.f32 %v3972_v26 }
0x41cc   :  { %v5782_v27 = vpop.eup %5781 }
0x41cd   :  { %v3976_v35 = vmul.f32 %v5782_v27, %v3886_v6 }
0x422d   :  { %v3979_v29 = vpop.permute.xlu0 %3978 }
0x422e   :  { %v3981_v3 = vmul.f32 %v5782_v27, %v3979_v29 }
0x4230   :  { %3983 = vrot.lane.b32.xlu1 %v3981_v3, %s5870_s3 }
0x42a2   :  { %v3984_v50 = vpop.permute.xlu1 %3983 }
0x42a3   :  { %v3986_v38 = vadd.f32 %v3984_v50, %v3976_v35 }
0x42a5   :  { %5783 = vtanh.f32 %v3986_v38 }
0x42b2   :  { %v5784_v12 = vpop.eup %5783 }
0x42b3   :  { %3989 = vrot.lane.b32.xlu0 %v5784_v12, %s5869_s10 }
0x4325   :  { %v3990_v37 = vpop.permute.xlu0 %3989 }
0x4326   :  { %v3992_v41 = vmul.f32 %v5782_v27, %v3990_v37 }
0x4328   :  { %3994 = vrot.lane.b32.xlu1 %v3992_v41, %s5870_s3  ;;  %v5841_v41 = vld [vmem:[%s6869_s6] ss:$0 sm:$0xff] }
0x439a   :  { %v3995_v43 = vpop.permute.xlu1 %3994 }
0x439b   :  { %5502 = vmatmul.mubr.msk.f32.vlgmr.msra.gmra.mxu1 %vm166_vm3, %v3995_v43  ;;  %v2849_v43 = vadd.f32 %v5841_v41, %v6578_v31 }
0x439c   :  { %5516 = vmatpush3.msra.mxu1 %v6754_v22  ;;  %5523 = vmatprep.mubr.msk.f32.mxu1 %vm5868_vm0, %v5867_v1 }
0x439d   :  { %5517 = vmatprep.subr.mxu1 %v5867_v1 }
0x439e   :  { %5518 = vmatpush3.msra.mxu1 %v6760_v17 }
0x439f   :  { %5519 = vmatprep.subr.mxu1 %v5867_v1 }
0x43a0   :  { %5520 = vmatpush3.msra.mxu1 %v6439_v18 }
0x43a1   :  { %5521 = vmatprep.subr.mxu1 %v5867_v1 }
0x43a2   :  { %5522 = vmatpush3.msra.mxu1 %v6447_v19 }
0x43a3   :  { %5537 = vmatprep.subr.mxu1 %v5867_v1 }
0x445b   :  { %v4064_v47 = vpop.f32.mrf.mxu1 }
0x445c   :  { %v4068_v34 = vadd.f32 %v4064_v47, %v2639_v58 }
0x445d   :  { %v5503_v24 = vpop.f32.mrf.mxu1 }
0x445e   :  { %5785 = vtanh.f32 %v4068_v34  ;;  %v4760_v45 = vmul.f32 -1.442695, %v4068_v34 }
0x4460   :  { %5787 = vpow2.f32 %v4760_v45 }
0x446b   :  { %v5786_v44 = vpop.eup %5785 }
0x446c   :  { %4078 = vrot.lane.b32.xlu0 %v5786_v44, %s5869_s10 }
0x446d   :  { %v5788_v46 = vpop.eup %5787 }
0x446e   :  { %v4072_v18 = vadd.f32 1.0, %v5788_v46 }
0x4470   :  { %5789 = vrcp.f32 %v4072_v18 }
0x447d   :  { %v5790_v49 = vpop.eup %5789 }
0x447e   :  { %v4076_v51 = vmul.f32 %v5790_v49, %v3986_v38 }
0x44de   :  { %v4079_v9 = vpop.permute.xlu0 %4078 }
0x44df   :  { %v4081_v19 = vmul.f32 %v5790_v49, %v4079_v9 }
0x44e1   :  { %4083 = vrot.lane.b32.xlu1 %v4081_v19, %s5870_s3 }
0x4553   :  { %v4084_v52 = vpop.permute.xlu1 %4083 }
0x4554   :  { %v4086_v7 = vadd.f32 %v4084_v52, %v4076_v51 }
0x4556   :  { %5791 = vtanh.f32 %v4086_v7 }
0x4563   :  { %v5792_v36 = vpop.eup %5791 }
0x4564   :  { %4089 = vrot.lane.b32.xlu0 %v5792_v36, %s5869_s10  ;;  %v2919_v36 = vadd.f32 %v5841_v41, %v6554_v39 }
0x45d6   :  { %v4090_v54 = vpop.permute.xlu0 %4089 }
0x45d7   :  { %v4092_v55 = vmul.f32 %v5790_v49, %v4090_v54 }
0x45d9   :  { %4094 = vrot.lane.b32.xlu1 %v4092_v55, %s5870_s3 }
0x464b   :  { %v4095_v10 = vpop.permute.xlu1 %4094 }
0x464c   :  { %5513 = vmatmul.mubr.msk.f32.vlgmr.msra.gmra.mxu0 %vm166_vm3, %v4095_v10 }
0x464d   :  { %5527 = vmatpush3.msra.mxu0 %v6754_v22  ;;  %5534 = vmatprep.mubr.msk.f32.mxu0 %vm5868_vm0, %v5867_v1 }
0x464e   :  { %5528 = vmatprep.subr.mxu0 %v5867_v1 }
0x464f   :  { %5529 = vmatpush3.msra.mxu0 %v6760_v17 }
0x4650   :  { %5530 = vmatprep.subr.mxu0 %v5867_v1 }
0x4651   :  { %5531 = vmatpush3.msra.mxu0 %v6781_v32 }
0x4652   :  { %5532 = vmatprep.subr.mxu0 %v5867_v1 }
0x4653   :  { %5533 = vmatpush3.msra.mxu0 %v6785_v57 }
0x4654   :  { %5548 = vmatprep.subr.mxu0 %v5867_v1 }
0x470c   :  { %v4164_v11 = vpop.f32.mrf.mxu0 }
0x470d   :  { %v4168_v60 = vadd.f32 %v4164_v11, %v2709_v59 }
0x470e   :  { %v5514_v61 = vpop.f32.mrf.mxu0 }
0x470f   :  { %5793 = vtanh.f32 %v4168_v60  ;;  %v4762_v63 = vmul.f32 -1.442695, %v4168_v60 }
0x4711   :  { %5795 = vpow2.f32 %v4762_v63 }
0x471c   :  { %v5794_v62 = vpop.eup %5793 }
0x471d   :  { %4178 = vrot.lane.b32.xlu0 %v5794_v62, %s5869_s10 }
0x471e   :  { %v5796_v0 = vpop.eup %5795 }
0x471f   :  { %v4172_v2 = vadd.f32 1.0, %v5796_v0 }
0x4721   :  { %5797 = vrcp.f32 %v4172_v2 }
0x472e   :  { %v5798_v30 = vpop.eup %5797 }
0x472f   :  { %v4176_v40 = vmul.f32 %v5798_v30, %v4086_v7 }
0x478f   :  { %v4179_v4 = vpop.permute.xlu0 %4178 }
0x4790   :  { %v4181_v13 = vmul.f32 %v5798_v30, %v4179_v4 }
0x4792   :  { %4183 = vrot.lane.b32.xlu1 %v4181_v13, %s5870_s3 }
0x4804   :  { %v4184_v6 = vpop.permute.xlu1 %4183 }
0x4805   :  { %v4186_v42 = vadd.f32 %v4184_v6, %v4176_v40  ;;  %v2995_v40 = vadd.f32 %v5841_v41, %v6609_v5 }
0x4807   :  { %5799 = vtanh.f32 %v4186_v42 }
0x4814   :  { %v5800_v15 = vpop.eup %5799 }
0x4815   :  { %4189 = vrot.lane.b32.xlu0 %v5800_v15, %s5869_s10 }
0x4887   :  { %v4190_v53 = vpop.permute.xlu0 %4189 }
0x4888   :  { %v4192_v23 = vmul.f32 %v5798_v30, %v4190_v53 }
0x488a   :  { %4194 = vrot.lane.b32.xlu1 %v4192_v23, %s5870_s3 }
0x48fc   :  { %v4195_v56 = vpop.permute.xlu1 %4194 }
0x48fd   :  { %5524 = vmatmul.mubr.msk.f32.vlgmr.msra.gmra.mxu1 %vm166_vm3, %v4195_v56 }
0x48fe   :  { %5538 = vmatpush3.msra.mxu1 %v6754_v22  ;;  %5545 = vmatprep.mubr.msk.f32.mxu1 %vm5868_vm0, %v5867_v1 }
0x48ff   :  { %5539 = vmatprep.subr.mxu1 %v5867_v1 }
0x4900   :  { %5540 = vmatpush3.msra.mxu1 %v6760_v17 }
0x4901   :  { %5541 = vmatprep.subr.mxu1 %v5867_v1 }
0x4902   :  { %5542 = vmatpush3.msra.mxu1 %v6781_v32 }
0x4903   :  { %5543 = vmatprep.subr.mxu1 %v5867_v1 }
0x4904   :  { %5544 = vmatpush3.msra.mxu1 %v6785_v57 }
0x4905   :  { %5559 = vmatprep.subr.mxu1 %v5867_v1 }
0x49bd   :  { %v4264_v48 = vpop.f32.mrf.mxu1 }
0x49be   :  { %v4268_v21 = vadd.f32 %v4264_v48, %v2779_v14 }
0x49bf   :  { %v5525_v33 = vpop.f32.mrf.mxu1 }
0x49c0   :  { %5801 = vtanh.f32 %v4268_v21  ;;  %v4764_v16 = vmul.f32 -1.442695, %v4268_v21 }
0x49c2   :  { %5803 = vpow2.f32 %v4764_v16 }
0x49cd   :  { %v5802_v25 = vpop.eup %5801 }
0x49ce   :  { %4278 = vrot.lane.b32.xlu0 %v5802_v25, %s5869_s10 }
0x49cf   :  { %v5804_v28 = vpop.eup %5803 }
0x49d0   :  { %v4272_v26 = vadd.f32 1.0, %v5804_v28  ;;  %v4596_v28 = vld [vmem:[%s6870_s7 + $0x18] sm:$0xff] }
0x49d2   :  { %5805 = vrcp.f32 %v4272_v26  ;;  %v4595_v26 = vld [vmem:[%s6870_s7 + $0x10] sm:$0xff] }
0x49df   :  { %v5806_v27 = vpop.eup %5805 }
0x49e0   :  { %v4276_v35 = vmul.f32 %v5806_v27, %v4186_v42 }
0x4a40   :  { %v4279_v29 = vpop.permute.xlu0 %4278 }
0x4a41   :  { %v4281_v3 = vmul.f32 %v5806_v27, %v4279_v29  ;;  %v4593_v29 = vld [vmem:[%s6870_s7] sm:$0xff] }
0x4a43   :  { %4283 = vrot.lane.b32.xlu1 %v4281_v3, %s5870_s3 }
0x4ab5   :  { %v4284_v50 = vpop.permute.xlu1 %4283 }
0x4ab6   :  { %v4286_v8 = vadd.f32 %v4284_v50, %v4276_v35 }
0x4ab8   :  { %5807 = vtanh.f32 %v4286_v8 }
0x4ac5   :  { %v5808_v20 = vpop.eup %5807 }
0x4ac6   :  { %4289 = vrot.lane.b32.xlu0 %v5808_v20, %s5869_s10  ;;  %v4771_v20 = vld [vmem:[#allocation2] ss:$0 sm:$0xff] }
0x4b38   :  { %v4290_v38 = vpop.permute.xlu0 %4289 }
0x4b39   :  { %v4292_v12 = vmul.f32 %v5806_v27, %v4290_v38  ;;  %v4594_v27 = vld [vmem:[%s6870_s7 + $0x8] sm:$0xff] }
0x4b3b   :  { %4294 = vrot.lane.b32.xlu1 %v4292_v12, %s5870_s3 }
0x4bad   :  { %v4295_v37 = vpop.permute.xlu1 %4294 }
0x4bae   :  { %5535 = vmatmul.mubr.msk.f32.vlgmr.msra.gmra.mxu0 %vm166_vm3, %v4295_v37 }
0x4baf   :  { %5549 = vmatpush3.msra.mxu0 %v6754_v22  ;;  %5556 = vmatprep.mubr.msk.f32.mxu0 %vm5868_vm0, %v5867_v1 }
0x4bb0   :  { %5550 = vmatprep.subr.mxu0 %v5867_v1 }
0x4bb1   :  { %5551 = vmatpush3.msra.mxu0 %v6760_v17 }
0x4bb2   :  { %5552 = vmatprep.subr.mxu0 %v5867_v1 }
0x4bb3   :  { %5553 = vmatpush3.msra.mxu0 %v6781_v32 }
0x4bb4   :  { %5554 = vmatprep.subr.mxu0 %v5867_v1 }
0x4bb5   :  { %5555 = vmatpush3.msra.mxu0 %v6785_v57 }
0x4c6e   :  { %v4364_v22 = vpop.f32.mrf.mxu0 }
0x4c6f   :  { %v4368_v58 = vadd.f32 %v4364_v22, %v2849_v43 }
0x4c70   :  { %v5536_v47 = vpop.f32.mrf.mxu0 }
0x4c71   :  { %5809 = vtanh.f32 %v4368_v58  ;;  %v4766_v17 = vmul.f32 -1.442695, %v4368_v58 }
0x4c73   :  { %5811 = vpow2.f32 %v4766_v17 }
0x4c7e   :  { %v5810_v34 = vpop.eup %5809 }
0x4c7f   :  { %4378 = vrot.lane.b32.xlu0 %v5810_v34, %s5869_s10 }
0x4c80   :  { %v5812_v24 = vpop.eup %5811 }
0x4c81   :  { %v4372_v44 = vadd.f32 1.0, %v5812_v24 }
0x4c83   :  { %5813 = vrcp.f32 %v4372_v44 }
0x4c90   :  { %v5814_v45 = vpop.eup %5813 }
0x4c91   :  { %v4376_v49 = vmul.f32 %v5814_v45, %v4286_v8 }
0x4cf1   :  { %v4379_v46 = vpop.permute.xlu0 %4378 }
0x4cf2   :  { %v4381_v18 = vmul.f32 %v5814_v45, %v4379_v46 }
0x4cf4   :  { %4383 = vrot.lane.b32.xlu1 %v4381_v18, %s5870_s3 }
0x4d66   :  { %v4384_v9 = vpop.permute.xlu1 %4383 }
0x4d67   :  { %v4386_v31 = vadd.f32 %v4384_v9, %v4376_v49 }
0x4d69   :  { %5815 = vtanh.f32 %v4386_v31 }
0x4d76   :  { %v5816_v19 = vpop.eup %5815 }
0x4d77   :  { %4389 = vrot.lane.b32.xlu0 %v5816_v19, %s5869_s10 }
0x4de9   :  { %v4390_v51 = vpop.permute.xlu0 %4389 }
0x4dea   :  { %v4392_v52 = vmul.f32 %v5814_v45, %v4390_v51 }
0x4dec   :  { %4394 = vrot.lane.b32.xlu1 %v4392_v52, %s5870_s3 }
0x4e5e   :  { %v4395_v7 = vpop.permute.xlu1 %4394 }
0x4e5f   :  { %5546 = vmatmul.mubr.msk.f32.vlgmr.msra.gmra.mxu1 %vm166_vm3, %v4395_v7 }
0x4e60   :  { %5567 = vmatprep.mubr.msk.f32.mxu1 %vm5868_vm0, %v5867_v1  ;;  %5560 = vmatpush3.msra.mxu1 %v4596_v28 }
0x4e61   :  { %5561 = vmatprep.subr.mxu1 %v5867_v1 }
0x4e62   :  { %5562 = vmatpush3.msra.mxu1 %v4595_v26 }
0x4e63   :  { %5563 = vmatprep.subr.mxu1 %v5867_v1 }
0x4e64   :  { %5564 = vmatpush3.msra.mxu1 %v4594_v27 }
0x4e65   :  { %5565 = vmatprep.subr.mxu1 %v5867_v1 }
0x4e66   :  { %5566 = vmatpush3.msra.mxu1 %v4593_v29 }
0x4f1f   :  { %v4464_v54 = vpop.f32.mrf.mxu1 }
0x4f20   :  { %v4468_v55 = vadd.f32 %v4464_v54, %v2919_v36 }
0x4f21   :  { %v5547_v10 = vpop.f32.mrf.mxu1 }
0x4f22   :  { %5817 = vtanh.f32 %v4468_v55  ;;  %v4768_v57 = vmul.f32 -1.442695, %v4468_v55 }
0x4f24   :  { %5819 = vpow2.f32 %v4768_v57 }
0x4f2f   :  { %v5818_v32 = vpop.eup %5817 }
0x4f30   :  { %4478 = vrot.lane.b32.xlu0 %v5818_v32, %s5869_s10 }
0x4f31   :  { %v5820_v59 = vpop.eup %5819 }
0x4f32   :  { %v4472_v11 = vadd.f32 1.0, %v5820_v59 }
0x4f34   :  { %5821 = vrcp.f32 %v4472_v11 }
0x4f41   :  { %v5822_v60 = vpop.eup %5821 }
0x4f42   :  { %v4476_v63 = vmul.f32 %v5822_v60, %v4386_v31 }
0x4fa2   :  { %v4479_v61 = vpop.permute.xlu0 %4478 }
0x4fa3   :  { %v4481_v62 = vmul.f32 %v5822_v60, %v4479_v61 }
0x4fa5   :  { %4483 = vrot.lane.b32.xlu1 %v4481_v62, %s5870_s3 }
0x5017   :  { %v4484_v0 = vpop.permute.xlu1 %4483 }
0x5018   :  { %v4486_v39 = vadd.f32 %v4484_v0, %v4476_v63 }
0x501a   :  { %5823 = vtanh.f32 %v4486_v39 }
0x5027   :  { %v5824_v2 = vpop.eup %5823 }
0x5028   :  { %4489 = vrot.lane.b32.xlu0 %v5824_v2, %s5869_s10 }
0x509a   :  { %v4490_v30 = vpop.permute.xlu0 %4489 }
0x509b   :  { %v4492_v4 = vmul.f32 %v5822_v60, %v4490_v30 }
0x509d   :  { %4494 = vrot.lane.b32.xlu1 %v4492_v4, %s5870_s3 }
0x510f   :  { %v4495_v13 = vpop.permute.xlu1 %4494 }
0x5110   :  { %5557 = vmatmul.mubr.msk.f32.vlgmr.msra.gmra.mxu0 %vm166_vm3, %v4495_v13 }
0x51d0   :  { %v4564_v6 = vpop.f32.mrf.mxu0 }
0x51d1   :  { %v4568_v42 = vadd.f32 %v4564_v6, %v2995_v40 }
0x51d2   :  { %v5558_v15 = vpop.f32.mrf.mxu0 }
0x51d3   :  { %5825 = vtanh.f32 %v4568_v42  ;;  %v4770_v23 = vmul.f32 -1.442695, %v4568_v42 }
0x51d5   :  { %5827 = vpow2.f32 %v4770_v23 }
0x51e0   :  { %v5826_v53 = vpop.eup %5825 }
0x51e1   :  { %4578 = vrot.lane.b32.xlu0 %v5826_v53, %s5869_s10 }
0x51e2   :  { %v5828_v56 = vpop.eup %5827 }
0x51e3   :  { %v4572_v14 = vadd.f32 1.0, %v5828_v56 }
0x51e5   :  { %5829 = vrcp.f32 %v4572_v14 }
0x51f2   :  { %v5830_v48 = vpop.eup %5829 }
0x51f3   :  { %v4576_v25 = vmul.f32 %v5830_v48, %v4486_v39 }
0x5253   :  { %v4579_v21 = vpop.permute.xlu0 %4578 }
0x5254   :  { %v4581_v33 = vmul.f32 %v5830_v48, %v4579_v21 }
0x5256   :  { %4583 = vrot.lane.b32.xlu1 %v4581_v33, %s5870_s3 }
0x52c8   :  { %v4584_v16 = vpop.permute.xlu1 %4583 }
0x52c9   :  { %v4586_v5 = vadd.f32 %v4584_v16, %v4576_v25 }
0x52cb   :  { %5831 = vtanh.f32 %v4586_v5 }
0x52d8   :  { %v5832_v3 = vpop.eup %5831 }
0x52d9   :  { %4589 = vrot.lane.b32.xlu0 %v5832_v3, %s5869_s10 }
0x534b   :  { %v4590_v35 = vpop.permute.xlu0 %4589 }
0x534c   :  { %v4592_v50 = vmul.f32 %v5830_v48, %v4590_v35 }
0x534e   :  { %4605 = vrot.lane.b32.xlu1 %v4592_v50, %s5870_s3 }
0x53c0   :  { %v4606_v8 = vpop.permute.xlu1 %4605 }
0x53c1   :  { %5568 = vmatmul.mubr.msk.f32.vlgmr.msra.gmra.mxu1 %vm166_vm3, %v4606_v8 }
0x5481   :  { %v4675_v38 = vpop.f32.mrf.mxu1 }
0x5482   :  { %v4676_v12 = vadd.f32 %v4771_v20, %v4675_v38 }
0x5483   :  { %v5569_v37 = vpop.f32.mrf.mxu1 }
0x5484   :  { %4680 = vst.msk [vmem:[%s6872_s9] sm:$0x3] %vm4679_vm4, %v4676_v12 }
0x5485   :  { %4685 = vsyncpa [#allocation4], 1 }

</bundles_post_ra>
